<compile_context>
chip_gen: v7x
topology: tpu7x:2x2x1
jax: 0.10.0
libtpu: 0.0.40
codegen_flags: <defaults>
</compile_context>

<pallas_src>
import functools

import jax
import jax.numpy as jnp
from jax.experimental import pallas as pl
from jax.experimental.pallas import tpu as pltpu

NEG_SLOPE = 0.2  # GATv2Conv default negative_slope


# ----------------------------------------------------------------------------
# Fused Pallas kernel: no grid, all layers statically unrolled in the body
# ----------------------------------------------------------------------------
def graph_encoder_kernel(n_layers,
                         x0_ref, rel0_ref, src_oh_ref, dst_oh_ref, edge_map_ref,
                         expand_ref, headmean_ref,
                         wlr_ref, blr_ref, we_ref, attp_ref, bias_ref,
                         wblk_ref, bblk_ref,
                         x_out_ref, rel_out_ref):
    f32 = jnp.float32
    bf16 = jnp.bfloat16

    src_oh = src_oh_ref[...]          # [E, N]   bf16 (exact 0/1)
    dst_oh = dst_oh_ref[...]          # [E, N]   bf16 (exact 0/1)
    edge_map = edge_map_ref[...]      # [E, R]   bf16
    expand = expand_ref[...]          # [H, H*D] bf16 (exact 0/1 head broadcast)
    headmean = headmean_ref[...]      # [H*D, D] bf16 (entries 0 or 1/H, exact)

    x = x0_ref[...]                   # [N, D] f32 carried node state
    rel = rel0_ref[...]               # [R, D] f32 carried relation state
    hd = headmean.shape[0]

    dn = (((0,), (0,)), ((), ()))     # contract the edge axis of dst_oh

    for l in range(n_layers):         # static unroll (n_layers = 4)
        x_b = x.astype(bf16)
        rel_b = rel.astype(bf16)

        # --- GATv2Conv node update (concat=False, heads averaged) -------------
        # Fused left/right projection: one [N,D]x[D,2*H*D] matmul, lane split.
        x_lr = jnp.dot(x_b, wlr_ref[l], preferred_element_type=f32) + blr_ref[l]
        x_l = x_lr[:, :hd]                                            # [N, H*D]
        x_r = x_lr[:, hd:]                                            # [N, H*D]

        # Reassociated edge-feature path: rel @ We once, shared with the
        # relation MLP below (edge_map rows are the relation one-hots plus the
        # mean-fill self-loop rows, so edge_map @ (rel @ We) == lin_edge(edge_attr)).
        rel_we = jnp.dot(rel_b, we_ref[l], preferred_element_type=f32)    # [R, H*D]
        e_feat = jnp.dot(edge_map, rel_we.astype(bf16),
                         preferred_element_type=f32)                      # [E, H*D]

        # gather x_l[src], x_r[dst] via one-hot matmuls (bf16 MXU, f32 acc)
        xl_e = jnp.dot(src_oh, x_l.astype(bf16), preferred_element_type=f32)
        xr_e = jnp.dot(dst_oh, x_r.astype(bf16), preferred_element_type=f32)

        feat = xl_e + xr_e + e_feat
        feat = jnp.where(feat >= 0, feat, NEG_SLOPE * feat)           # leaky_relu(0.2)

        # per-head attention logits; softmax over edges sharing the same dst.
        logits = jnp.dot(feat.astype(bf16), attp_ref[l],
                         preferred_element_type=f32)                  # [E, H]
        # Global per-head shift (shift-invariant softmax == PyG per-dst max).
        logits = logits - jnp.max(logits, axis=0, keepdims=True)
        exp_l = jnp.exp(logits).astype(bf16)                          # [E, H]

        # per-dst denominator (contract edge axis of dst_oh; bf16 x bf16, f32 acc)
        denom = jax.lax.dot_general(dst_oh, exp_l, dimension_numbers=dn,
                                    preferred_element_type=f32)       # [N, H]
        inv = pl.reciprocal(denom + 1e-16, approx=True)               # EUP, [N, H]

        # unnormalized message aggregation; normalization folded after the
        # destination scatter (no per-edge alpha, no [E,N]x[N,H] inv gather).
        exp_b = jnp.dot(exp_l, expand, preferred_element_type=f32)    # [E, H*D]
        msg = xl_e * exp_b                                            # [E, H*D]
        agg = jax.lax.dot_general(dst_oh, msg.astype(bf16),
                                  dimension_numbers=dn,
                                  preferred_element_type=f32)         # [N, H*D]
        inv_b = jnp.dot(inv.astype(bf16), expand,
                        preferred_element_type=f32)                   # [N, H*D]
        agg = agg * inv_b
        # head mean -> [N, D]; attention dropout skipped (p = 0.0).
        x = jnp.dot(agg.astype(bf16), headmean,
                    preferred_element_type=f32) + bias_ref[l]         # [N, D]

        # --- relation update: Linear(relu(conv.lin_edge(rel))), reuses rel_we -
        rel_h = jnp.maximum(rel_we, 0.0)                              # [R, H*D]
        rel = jnp.dot(rel_h.astype(bf16), wblk_ref[l],
                      preferred_element_type=f32) + bblk_ref[l]       # [R, D]

    # Single HBM writeback for the whole stack.
    x_out_ref[...] = x
    rel_out_ref[...] = rel


# ----------------------------------------------------------------------------
# Wrapper / glue
# ----------------------------------------------------------------------------
def build_structure(edge_index, relation_index, num_nodes, num_relations):
    """Fixed structural one-hot matrices (graph topology glue), bf16."""
    src, dst = edge_index[0], edge_index[1]
    n = num_nodes
    self_idx = jnp.arange(n, dtype=src.dtype)
    src_all = jnp.concatenate([src, self_idx])          # add_self_loops appends loops
    dst_all = jnp.concatenate([dst, self_idx])

    src_oh = jax.nn.one_hot(src_all, n, dtype=jnp.float32)          # [E_tot, N]
    dst_oh = jax.nn.one_hot(dst_all, n, dtype=jnp.float32)          # [E_tot, N]

    # edge_attr_all = edge_map @ relations  (self-loop rows: fill_value='mean')
    rel_sel = jax.nn.one_hot(relation_index, num_relations, dtype=jnp.float32)  # [E, R]
    dst_oh_orig = jax.nn.one_hot(dst, n, dtype=jnp.float32)                     # [E, N]
    counts = dst_oh_orig.sum(axis=0)                                            # [N]
    loop_map = (dst_oh_orig.T @ rel_sel) / jnp.maximum(counts, 1.0)[:, None]
    edge_map = jnp.concatenate([rel_sel, loop_map], axis=0)                     # [E_tot, R]

    bf16 = jnp.bfloat16   # exact for 0/1 rows; only 1/deg loop rows round
    return src_oh.astype(bf16), dst_oh.astype(bf16), edge_map.astype(bf16)


def graph_encoder_pallas(x, edge_index, relations, relation_index, layer_params):
    n, dim = x.shape
    r = relations.shape[0]
    n_layers = len(layer_params)
    hd = layer_params[0]['Wl'].shape[1]
    n_head = layer_params[0]['att_proj'].shape[1]

    src_oh, dst_oh, edge_map = build_structure(edge_index, relation_index, n, r)

    bf16, f32 = jnp.bfloat16, jnp.float32
    stack = lambda name, dt: jnp.stack([p[name] for p in layer_params]).astype(dt)

    # Fused left/right projection weights & biases.
    wlr = jnp.stack([jnp.concatenate([p['Wl'], p['Wr']], axis=1)
                     for p in layer_params]).astype(bf16)            # [L, D, 2*H*D]
    blr = jnp.stack([jnp.concatenate([p['bl'], p['br']], axis=1)
                     for p in layer_params]).astype(f32)             # [L, 1, 2*H*D]
    we = stack('We', bf16)                                           # [L, D, H*D]
    attp = stack('att_proj', bf16)                                   # [L, H*D, H]
    bias = stack('bias', f32)                                        # [L, 1, D]
    wblk = stack('Wblk', bf16)                                       # [L, H*D, D]
    bblk = stack('bblk', f32)                                        # [L, 1, D]

    headmean = layer_params[0]['headmean'].astype(bf16)              # [H*D, D]
    # 0/1 head-expand matrix: expand[h, h*D + k] = 1  (bf16-exact)
    expand = jnp.repeat(jnp.eye(n_head, dtype=f32), dim, axis=1).astype(bf16)  # [H, H*D]

    kernel = functools.partial(graph_encoder_kernel, n_layers)

    # Gridless call: every operand is fully VMEM-resident (tiny footprint);
    # no pipelining machinery, no per-layer grid overhead.
    return pl.pallas_call(
        kernel,
        out_shape=(jax.ShapeDtypeStruct((n, dim), f32),
                   jax.ShapeDtypeStruct((r, dim), f32)),
        compiler_params=pltpu.CompilerParams(
            vmem_limit_bytes=32 * 1024 * 1024,   # explicit headroom (v7x-safe)
        ),
    )(x, relations, src_oh, dst_oh, edge_map, expand, headmean,
      wlr, blr, we, attp, bias, wblk, bblk)


# ----------------------------------------------------------------------------
# Deterministic parameter init (shapes from GATBlock.__init__).
# Weights are rounded to bf16-representable values so the kernel's bf16 copies
# are exact and the f32 reference uses identical numerics.
# ----------------------------------------------------------------------------
def init_layer_params(key, dim, n_head):
    hd = n_head * dim
    k = jax.random.split(key, 8)
    q = lambda w: w.astype(jnp.bfloat16).astype(jnp.float32)
    att = q(jax.random.normal(k[5], (n_head, dim), jnp.float32) / jnp.sqrt(dim))
    # att_proj[h*dim + d, h] = att[h, d]
    rows = jnp.arange(hd)
    cols = jnp.repeat(jnp.arange(n_head), dim)
    att_proj = jnp.zeros((hd, n_head), jnp.float32).at[rows, cols].set(att.reshape(-1))
    headmean = jnp.tile(jnp.eye(dim, dtype=jnp.float32), (n_head, 1)) / n_head  # [H*D, D]
    return {
        'Wl': q(jax.random.normal(k[0], (dim, hd), jnp.float32) / jnp.sqrt(dim)),
        'bl': jax.random.normal(k[1], (1, hd), jnp.float32) * 0.02,
        'Wr': q(jax.random.normal(k[2], (dim, hd), jnp.float32) / jnp.sqrt(dim)),
        'br': jax.random.normal(k[3], (1, hd), jnp.float32) * 0.02,
        'We': q(jax.random.normal(k[4], (dim, hd), jnp.float32) / jnp.sqrt(dim)),
        'att': att, 'att_proj': att_proj, 'headmean': headmean,
        'bias': jnp.zeros((1, dim), jnp.float32),
        'Wblk': q(jax.random.normal(k[6], (hd, dim), jnp.float32) / jnp.sqrt(hd)),
        'bblk': jax.random.normal(k[7], (1, dim), jnp.float32) * 0.02,
    }


# ----------------------------------------------------------------------------
# Pure-JAX f32 reference (mirrors the PyTorch / PyG semantics) for validation
# ----------------------------------------------------------------------------
def gat_block_ref(x, relations, edge_index, relation_index, prm, n_head):
    n, dim = x.shape
    src, dst = edge_index[0], edge_index[1]
    e = src.shape[0]
    edge_attr = relations[relation_index]
    seg_sum = jax.ops.segment_sum(edge_attr, dst, n)
    counts = jax.ops.segment_sum(jnp.ones((e,), jnp.float32), dst, n)
    loop_attr = seg_sum / jnp.maximum(counts, 1.0)[:, None]
    src_all = jnp.concatenate([src, jnp.arange(n, dtype=src.dtype)])
    dst_all = jnp.concatenate([dst, jnp.arange(n, dtype=dst.dtype)])
    ea_all = jnp.concatenate([edge_attr, loop_attr], axis=0)

    x_l = (x @ prm['Wl'] + prm['bl']).reshape(n, n_head, dim)
    x_r = (x @ prm['Wr'] + prm['br']).reshape(n, n_head, dim)
    e_f = (ea_all @ prm['We']).reshape(-1, n_head, dim)
    f = x_l[src_all] + x_r[dst_all] + e_f
    f = jnp.where(f >= 0, f, NEG_SLOPE * f)
    logits = (f * prm['att'][None]).sum(-1)                         # [E_tot, H]
    mx = jax.ops.segment_max(logits, dst_all, n)
    ex = jnp.exp(logits - mx[dst_all])
    den = jax.ops.segment_sum(ex, dst_all, n) + 1e-16
    alpha = ex / den[dst_all]
    msg = x_l[src_all] * alpha[..., None]
    agg = jax.ops.segment_sum(msg, dst_all, n)
    x_out = agg.mean(axis=1) + prm['bias'][0]

    rel_h = jnp.maximum(relations @ prm['We'], 0.0)
    rel_out = rel_h @ prm['Wblk'] + prm['bblk'][0]
    return x_out, rel_out


def graph_encoder_ref(x, edge_index, relations, relation_index, layer_params, n_head):
    for prm in layer_params:
        x, relations = gat_block_ref(x, relations, edge_index, relation_index, prm, n_head)
    return x, relations


# ----------------------------------------------------------------------------
if __name__ == "__main__":
    dim, n_head, n_layers = 32, 8, 4
    num_nodes, num_edges, num_relations = 16, 24, 8

    key = jax.random.PRNGKey(0)
    k_x, k_rel, k_src, k_dst, k_ri, k_p = jax.random.split(key, 6)

    # Inputs rounded to bf16-representable values so the kernel's bf16 view of
    # the initial tensors is exact; only cross-layer activation re-quantisation
    # differs from the pure-f32 reference.
    x = jax.random.normal(k_x, (num_nodes, dim), jnp.float32)
    x = x.astype(jnp.bfloat16).astype(jnp.float32)
    relations = jax.random.normal(k_rel, (num_relations, dim), jnp.float32)
    relations = relations.astype(jnp.bfloat16).astype(jnp.float32)
    edge_index = jnp.stack([
        jax.random.randint(k_src, (num_edges,), 0, num_nodes),
        jax.random.randint(k_dst, (num_edges,), 0, num_nodes),
    ])
    relation_index = jax.random.randint(k_ri, (num_edges,), 0, num_relations)

    layer_params = [init_layer_params(jax.random.fold_in(k_p, l), dim, n_head)
                    for l in range(n_layers)]

    x_out, rel_out = graph_encoder_pallas(x, edge_index, relations,
                                          relation_index, layer_params)
    x_out = jax.block_until_ready(x_out)
    rel_out = jax.block_until_ready(rel_out)

    x_ref, rel_ref = graph_encoder_ref(x, edge_index, relations, relation_index,
                                       layer_params, n_head)
    assert x_out.shape == (num_nodes, dim) and rel_out.shape == (num_relations, dim)
    # Kernel feeds the MXU bf16 operands (f32 accumulation, f32 softmax denom);
    # the reference is pure f32, so the tolerance covers bf16 activation
    # rounding accumulated over 4 stacked attention layers.
    assert jnp.allclose(x_out, x_ref, rtol=5e-2, atol=5e-2)
    assert jnp.allclose(rel_out, rel_ref, rtol=5e-2, atol=5e-2)

    print("KERNEL_OK")
</pallas_src>

<mosaic_0001>
module attributes {stable_mosaic.version = 11 : i64} {
  func.func @graph_encoder_kernel(%arg0: memref<16x32xf32, #tpu.memory_space<vmem>>, %arg1: memref<8x32xf32, #tpu.memory_space<vmem>>, %arg2: memref<40x16xbf16, #tpu.memory_space<vmem>>, %arg3: memref<40x16xbf16, #tpu.memory_space<vmem>>, %arg4: memref<40x8xbf16, #tpu.memory_space<vmem>>, %arg5: memref<8x256xbf16, #tpu.memory_space<vmem>>, %arg6: memref<256x32xbf16, #tpu.memory_space<vmem>>, %arg7: memref<4x32x512xbf16, #tpu.memory_space<vmem>>, %arg8: memref<4x1x512xf32, #tpu.memory_space<vmem>>, %arg9: memref<4x32x256xbf16, #tpu.memory_space<vmem>>, %arg10: memref<4x256x8xbf16, #tpu.memory_space<vmem>>, %arg11: memref<4x1x32xf32, #tpu.memory_space<vmem>>, %arg12: memref<4x256x32xbf16, #tpu.memory_space<vmem>>, %arg13: memref<4x1x32xf32, #tpu.memory_space<vmem>>, %arg14: memref<16x32xf32, #tpu.memory_space<vmem>>, %arg15: memref<8x32xf32, #tpu.memory_space<vmem>>) attributes {dimension_semantics = [], scalar_prefetch = 0 : i64, scratch_operands = 0 : i64, tpu.core_type = #tpu.core_type<tc>} {
    %c0 = arith.constant 0 : index
    %c0_0 = arith.constant 0 : index
    %0 = vector.load %arg2[%c0, %c0_0] : memref<40x16xbf16, #tpu.memory_space<vmem>>, vector<40x16xbf16>
    %c0_1 = arith.constant 0 : index
    %c0_2 = arith.constant 0 : index
    %1 = vector.load %arg3[%c0_1, %c0_2] : memref<40x16xbf16, #tpu.memory_space<vmem>>, vector<40x16xbf16>
    %c0_3 = arith.constant 0 : index
    %c0_4 = arith.constant 0 : index
    %2 = vector.load %arg4[%c0_3, %c0_4] : memref<40x8xbf16, #tpu.memory_space<vmem>>, vector<40x8xbf16>
    %c0_5 = arith.constant 0 : index
    %c0_6 = arith.constant 0 : index
    %3 = vector.load %arg5[%c0_5, %c0_6] : memref<8x256xbf16, #tpu.memory_space<vmem>>, vector<8x256xbf16>
    %c0_7 = arith.constant 0 : index
    %c0_8 = arith.constant 0 : index
    %4 = vector.load %arg6[%c0_7, %c0_8] : memref<256x32xbf16, #tpu.memory_space<vmem>>, vector<256x32xbf16>
    %c0_9 = arith.constant 0 : index
    %c0_10 = arith.constant 0 : index
    %5 = vector.load %arg0[%c0_9, %c0_10] : memref<16x32xf32, #tpu.memory_space<vmem>>, vector<16x32xf32>
    %c0_11 = arith.constant 0 : index
    %c0_12 = arith.constant 0 : index
    %6 = vector.load %arg1[%c0_11, %c0_12] : memref<8x32xf32, #tpu.memory_space<vmem>>, vector<8x32xf32>
    %7 = arith.truncf %5 : vector<16x32xf32> to vector<16x32xbf16>
    %8 = arith.truncf %6 : vector<8x32xf32> to vector<8x32xbf16>
    %c0_13 = arith.constant 0 : index
    %c0_14 = arith.constant 0 : index
    %c0_15 = arith.constant 0 : index
    %9 = vector.load %arg7[%c0_13, %c0_14, %c0_15] : memref<4x32x512xbf16, #tpu.memory_space<vmem>>, vector<1x32x512xbf16>
    %10 = vector.shape_cast %9 : vector<1x32x512xbf16> to vector<32x512xbf16>
    %cst = arith.constant dense<0.000000e+00> : vector<16x512xf32>
    %11 = tpu.matmul %7, %10, %cst {dimension_numbers = #tpu.dot_dimension_numbers<[1], [0], [0], [1], [0, 0, 1, 1], [], []>} : vector<16x32xbf16>, vector<32x512xbf16>, vector<16x512xf32> -> vector<16x512xf32>
    %c0_16 = arith.constant 0 : index
    %c0_17 = arith.constant 0 : index
    %c0_18 = arith.constant 0 : index
    %12 = vector.load %arg8[%c0_16, %c0_17, %c0_18] : memref<4x1x512xf32, #tpu.memory_space<vmem>>, vector<1x1x512xf32>
    %13 = vector.shape_cast %12 : vector<1x1x512xf32> to vector<1x512xf32>
    %14 = vector.broadcast %13 : vector<1x512xf32> to vector<16x512xf32>
    %15 = arith.addf %11, %14 : vector<16x512xf32>
    %16 = vector.extract_strided_slice %15 {offsets = [0, 0], sizes = [16, 256], strides = [1, 1]} : vector<16x512xf32> to vector<16x256xf32>
    %17 = vector.extract_strided_slice %15 {offsets = [0, 256], sizes = [16, 256], strides = [1, 1]} : vector<16x512xf32> to vector<16x256xf32>
    %c0_19 = arith.constant 0 : index
    %c0_20 = arith.constant 0 : index
    %c0_21 = arith.constant 0 : index
    %18 = vector.load %arg9[%c0_19, %c0_20, %c0_21] : memref<4x32x256xbf16, #tpu.memory_space<vmem>>, vector<1x32x256xbf16>
    %19 = vector.shape_cast %18 : vector<1x32x256xbf16> to vector<32x256xbf16>
    %cst_22 = arith.constant dense<0.000000e+00> : vector<8x256xf32>
    %20 = tpu.matmul %8, %19, %cst_22 {dimension_numbers = #tpu.dot_dimension_numbers<[1], [0], [0], [1], [0, 0, 1, 1], [], []>} : vector<8x32xbf16>, vector<32x256xbf16>, vector<8x256xf32> -> vector<8x256xf32>
    %21 = arith.truncf %20 : vector<8x256xf32> to vector<8x256xbf16>
    %cst_23 = arith.constant dense<0.000000e+00> : vector<40x256xf32>
    %22 = tpu.matmul %2, %21, %cst_23 {dimension_numbers = #tpu.dot_dimension_numbers<[1], [0], [0], [1], [0, 0, 1, 1], [], []>} : vector<40x8xbf16>, vector<8x256xbf16>, vector<40x256xf32> -> vector<40x256xf32>
    %23 = arith.truncf %16 : vector<16x256xf32> to vector<16x256xbf16>
    %cst_24 = arith.constant dense<0.000000e+00> : vector<40x256xf32>
    %24 = tpu.matmul %0, %23, %cst_24 {dimension_numbers = #tpu.dot_dimension_numbers<[1], [0], [0], [1], [0, 0, 1, 1], [], []>} : vector<40x16xbf16>, vector<16x256xbf16>, vector<40x256xf32> -> vector<40x256xf32>
    %25 = arith.truncf %17 : vector<16x256xf32> to vector<16x256xbf16>
    %cst_25 = arith.constant dense<0.000000e+00> : vector<40x256xf32>
    %26 = tpu.matmul %1, %25, %cst_25 {dimension_numbers = #tpu.dot_dimension_numbers<[1], [0], [0], [1], [0, 0, 1, 1], [], []>} : vector<40x16xbf16>, vector<16x256xbf16>, vector<40x256xf32> -> vector<40x256xf32>
    %27 = arith.addf %24, %26 : vector<40x256xf32>
    %28 = arith.addf %27, %22 : vector<40x256xf32>
    %cst_26 = arith.constant 0.000000e+00 : f32
    %29 = vector.broadcast %cst_26 : f32 to vector<40x256xf32>
    %30 = arith.cmpf oge, %28, %29 : vector<40x256xf32>
    %cst_27 = arith.constant 2.000000e-01 : f32
    %31 = vector.broadcast %cst_27 : f32 to vector<40x256xf32>
    %32 = arith.mulf %31, %28 : vector<40x256xf32>
    %33 = arith.select %30, %28, %32 : vector<40x256xi1>, vector<40x256xf32>
    %34 = arith.truncf %33 : vector<40x256xf32> to vector<40x256xbf16>
    %c0_28 = arith.constant 0 : index
    %c0_29 = arith.constant 0 : index
    %c0_30 = arith.constant 0 : index
    %35 = vector.load %arg10[%c0_28, %c0_29, %c0_30] : memref<4x256x8xbf16, #tpu.memory_space<vmem>>, vector<1x256x8xbf16>
    %36 = vector.shape_cast %35 : vector<1x256x8xbf16> to vector<256x8xbf16>
    %cst_31 = arith.constant dense<0.000000e+00> : vector<40x8xf32>
    %37 = tpu.matmul %34, %36, %cst_31 {dimension_numbers = #tpu.dot_dimension_numbers<[1], [0], [0], [1], [0, 0, 1, 1], [], []>} : vector<40x256xbf16>, vector<256x8xbf16>, vector<40x8xf32> -> vector<40x8xf32>
    %cst_32 = arith.constant dense<0xFF800000> : vector<8xf32>
    %38 = vector.multi_reduction <maximumf>, %37, %cst_32 [0] : vector<40x8xf32> to vector<8xf32>
    %39 = vector.shape_cast %38 : vector<8xf32> to vector<1x8xf32>
    %40 = vector.broadcast %39 : vector<1x8xf32> to vector<40x8xf32>
    %41 = arith.subf %37, %40 : vector<40x8xf32>
    %42 = math.exp %41 : vector<40x8xf32>
    %43 = arith.truncf %42 : vector<40x8xf32> to vector<40x8xbf16>
    %cst_33 = arith.constant dense<0.000000e+00> : vector<16x8xf32>
    %44 = tpu.matmul %1, %43, %cst_33 {dimension_numbers = #tpu.dot_dimension_numbers<[0], [0], [1], [1], [0, 1, 1, 1], [], []>} : vector<40x16xbf16>, vector<40x8xbf16>, vector<16x8xf32> -> vector<16x8xf32>
    %cst_34 = arith.constant 1.000000e-16 : f32
    %45 = vector.broadcast %cst_34 : f32 to vector<16x8xf32>
    %46 = arith.addf %44, %45 : vector<16x8xf32>
    %47 = tpu.reciprocal %46 {approx = true} : vector<16x8xf32> -> vector<16x8xf32>
    %cst_35 = arith.constant dense<0.000000e+00> : vector<40x256xf32>
    %48 = tpu.matmul %43, %3, %cst_35 {dimension_numbers = #tpu.dot_dimension_numbers<[1], [0], [0], [1], [0, 0, 1, 1], [], []>} : vector<40x8xbf16>, vector<8x256xbf16>, vector<40x256xf32> -> vector<40x256xf32>
    %49 = arith.mulf %24, %48 : vector<40x256xf32>
    %50 = arith.truncf %49 : vector<40x256xf32> to vector<40x256xbf16>
    %cst_36 = arith.constant dense<0.000000e+00> : vector<16x256xf32>
    %51 = tpu.matmul %1, %50, %cst_36 {dimension_numbers = #tpu.dot_dimension_numbers<[0], [0], [1], [1], [0, 1, 1, 1], [], []>} : vector<40x16xbf16>, vector<40x256xbf16>, vector<16x256xf32> -> vector<16x256xf32>
    %52 = arith.truncf %47 : vector<16x8xf32> to vector<16x8xbf16>
    %cst_37 = arith.constant dense<0.000000e+00> : vector<16x256xf32>
    %53 = tpu.matmul %52, %3, %cst_37 {dimension_numbers = #tpu.dot_dimension_numbers<[1], [0], [0], [1], [0, 0, 1, 1], [], []>} : vector<16x8xbf16>, vector<8x256xbf16>, vector<16x256xf32> -> vector<16x256xf32>
    %54 = arith.mulf %51, %53 : vector<16x256xf32>
    %55 = arith.truncf %54 : vector<16x256xf32> to vector<16x256xbf16>
    %cst_38 = arith.constant dense<0.000000e+00> : vector<16x32xf32>
    %56 = tpu.matmul %55, %4, %cst_38 {dimension_numbers = #tpu.dot_dimension_numbers<[1], [0], [0], [1], [0, 0, 1, 1], [], []>} : vector<16x256xbf16>, vector<256x32xbf16>, vector<16x32xf32> -> vector<16x32xf32>
    %c0_39 = arith.constant 0 : index
    %c0_40 = arith.constant 0 : index
    %c0_41 = arith.constant 0 : index
    %57 = vector.load %arg11[%c0_39, %c0_40, %c0_41] : memref<4x1x32xf32, #tpu.memory_space<vmem>>, vector<1x1x32xf32>
    %58 = vector.shape_cast %57 : vector<1x1x32xf32> to vector<1x32xf32>
    %59 = vector.broadcast %58 : vector<1x32xf32> to vector<16x32xf32>
    %60 = arith.addf %56, %59 : vector<16x32xf32>
    %cst_42 = arith.constant 0.000000e+00 : f32
    %61 = vector.broadcast %cst_42 : f32 to vector<8x256xf32>
    %62 = arith.maximumf %20, %61 : vector<8x256xf32>
    %63 = arith.truncf %62 : vector<8x256xf32> to vector<8x256xbf16>
    %c0_43 = arith.constant 0 : index
    %c0_44 = arith.constant 0 : index
    %c0_45 = arith.constant 0 : index
    %64 = vector.load %arg12[%c0_43, %c0_44, %c0_45] : memref<4x256x32xbf16, #tpu.memory_space<vmem>>, vector<1x256x32xbf16>
    %65 = vector.shape_cast %64 : vector<1x256x32xbf16> to vector<256x32xbf16>
    %cst_46 = arith.constant dense<0.000000e+00> : vector<8x32xf32>
    %66 = tpu.matmul %63, %65, %cst_46 {dimension_numbers = #tpu.dot_dimension_numbers<[1], [0], [0], [1], [0, 0, 1, 1], [], []>} : vector<8x256xbf16>, vector<256x32xbf16>, vector<8x32xf32> -> vector<8x32xf32>
    %c0_47 = arith.constant 0 : index
    %c0_48 = arith.constant 0 : index
    %c0_49 = arith.constant 0 : index
    %67 = vector.load %arg13[%c0_47, %c0_48, %c0_49] : memref<4x1x32xf32, #tpu.memory_space<vmem>>, vector<1x1x32xf32>
    %68 = vector.shape_cast %67 : vector<1x1x32xf32> to vector<1x32xf32>
    %69 = vector.broadcast %68 : vector<1x32xf32> to vector<8x32xf32>
    %70 = arith.addf %66, %69 : vector<8x32xf32>
    %71 = arith.truncf %60 : vector<16x32xf32> to vector<16x32xbf16>
    %72 = arith.truncf %70 : vector<8x32xf32> to vector<8x32xbf16>
    %c1 = arith.constant 1 : index
    %c0_50 = arith.constant 0 : index
    %c0_51 = arith.constant 0 : index
    %73 = vector.load %arg7[%c1, %c0_50, %c0_51] : memref<4x32x512xbf16, #tpu.memory_space<vmem>>, vector<1x32x512xbf16>
    %74 = vector.shape_cast %73 : vector<1x32x512xbf16> to vector<32x512xbf16>
    %cst_52 = arith.constant dense<0.000000e+00> : vector<16x512xf32>
    %75 = tpu.matmul %71, %74, %cst_52 {dimension_numbers = #tpu.dot_dimension_numbers<[1], [0], [0], [1], [0, 0, 1, 1], [], []>} : vector<16x32xbf16>, vector<32x512xbf16>, vector<16x512xf32> -> vector<16x512xf32>
    %c1_53 = arith.constant 1 : index
    %c0_54 = arith.constant 0 : index
    %c0_55 = arith.constant 0 : index
    %76 = vector.load %arg8[%c1_53, %c0_54, %c0_55] : memref<4x1x512xf32, #tpu.memory_space<vmem>>, vector<1x1x512xf32>
    %77 = vector.shape_cast %76 : vector<1x1x512xf32> to vector<1x512xf32>
    %78 = vector.broadcast %77 : vector<1x512xf32> to vector<16x512xf32>
    %79 = arith.addf %75, %78 : vector<16x512xf32>
    %80 = vector.extract_strided_slice %79 {offsets = [0, 0], sizes = [16, 256], strides = [1, 1]} : vector<16x512xf32> to vector<16x256xf32>
    %81 = vector.extract_strided_slice %79 {offsets = [0, 256], sizes = [16, 256], strides = [1, 1]} : vector<16x512xf32> to vector<16x256xf32>
    %c1_56 = arith.constant 1 : index
    %c0_57 = arith.constant 0 : index
    %c0_58 = arith.constant 0 : index
    %82 = vector.load %arg9[%c1_56, %c0_57, %c0_58] : memref<4x32x256xbf16, #tpu.memory_space<vmem>>, vector<1x32x256xbf16>
    %83 = vector.shape_cast %82 : vector<1x32x256xbf16> to vector<32x256xbf16>
    %cst_59 = arith.constant dense<0.000000e+00> : vector<8x256xf32>
    %84 = tpu.matmul %72, %83, %cst_59 {dimension_numbers = #tpu.dot_dimension_numbers<[1], [0], [0], [1], [0, 0, 1, 1], [], []>} : vector<8x32xbf16>, vector<32x256xbf16>, vector<8x256xf32> -> vector<8x256xf32>
    %85 = arith.truncf %84 : vector<8x256xf32> to vector<8x256xbf16>
    %cst_60 = arith.constant dense<0.000000e+00> : vector<40x256xf32>
    %86 = tpu.matmul %2, %85, %cst_60 {dimension_numbers = #tpu.dot_dimension_numbers<[1], [0], [0], [1], [0, 0, 1, 1], [], []>} : vector<40x8xbf16>, vector<8x256xbf16>, vector<40x256xf32> -> vector<40x256xf32>
    %87 = arith.truncf %80 : vector<16x256xf32> to vector<16x256xbf16>
    %cst_61 = arith.constant dense<0.000000e+00> : vector<40x256xf32>
    %88 = tpu.matmul %0, %87, %cst_61 {dimension_numbers = #tpu.dot_dimension_numbers<[1], [0], [0], [1], [0, 0, 1, 1], [], []>} : vector<40x16xbf16>, vector<16x256xbf16>, vector<40x256xf32> -> vector<40x256xf32>
    %89 = arith.truncf %81 : vector<16x256xf32> to vector<16x256xbf16>
    %cst_62 = arith.constant dense<0.000000e+00> : vector<40x256xf32>
    %90 = tpu.matmul %1, %89, %cst_62 {dimension_numbers = #tpu.dot_dimension_numbers<[1], [0], [0], [1], [0, 0, 1, 1], [], []>} : vector<40x16xbf16>, vector<16x256xbf16>, vector<40x256xf32> -> vector<40x256xf32>
    %91 = arith.addf %88, %90 : vector<40x256xf32>
    %92 = arith.addf %91, %86 : vector<40x256xf32>
    %cst_63 = arith.constant 0.000000e+00 : f32
    %93 = vector.broadcast %cst_63 : f32 to vector<40x256xf32>
    %94 = arith.cmpf oge, %92, %93 : vector<40x256xf32>
    %cst_64 = arith.constant 2.000000e-01 : f32
    %95 = vector.broadcast %cst_64 : f32 to vector<40x256xf32>
    %96 = arith.mulf %95, %92 : vector<40x256xf32>
    %97 = arith.select %94, %92, %96 : vector<40x256xi1>, vector<40x256xf32>
    %98 = arith.truncf %97 : vector<40x256xf32> to vector<40x256xbf16>
    %c1_65 = arith.constant 1 : index
    %c0_66 = arith.constant 0 : index
    %c0_67 = arith.constant 0 : index
    %99 = vector.load %arg10[%c1_65, %c0_66, %c0_67] : memref<4x256x8xbf16, #tpu.memory_space<vmem>>, vector<1x256x8xbf16>
    %100 = vector.shape_cast %99 : vector<1x256x8xbf16> to vector<256x8xbf16>
    %cst_68 = arith.constant dense<0.000000e+00> : vector<40x8xf32>
    %101 = tpu.matmul %98, %100, %cst_68 {dimension_numbers = #tpu.dot_dimension_numbers<[1], [0], [0], [1], [0, 0, 1, 1], [], []>} : vector<40x256xbf16>, vector<256x8xbf16>, vector<40x8xf32> -> vector<40x8xf32>
    %cst_69 = arith.constant dense<0xFF800000> : vector<8xf32>
    %102 = vector.multi_reduction <maximumf>, %101, %cst_69 [0] : vector<40x8xf32> to vector<8xf32>
    %103 = vector.shape_cast %102 : vector<8xf32> to vector<1x8xf32>
    %104 = vector.broadcast %103 : vector<1x8xf32> to vector<40x8xf32>
    %105 = arith.subf %101, %104 : vector<40x8xf32>
    %106 = math.exp %105 : vector<40x8xf32>
    %107 = arith.truncf %106 : vector<40x8xf32> to vector<40x8xbf16>
    %cst_70 = arith.constant dense<0.000000e+00> : vector<16x8xf32>
    %108 = tpu.matmul %1, %107, %cst_70 {dimension_numbers = #tpu.dot_dimension_numbers<[0], [0], [1], [1], [0, 1, 1, 1], [], []>} : vector<40x16xbf16>, vector<40x8xbf16>, vector<16x8xf32> -> vector<16x8xf32>
    %cst_71 = arith.constant 1.000000e-16 : f32
    %109 = vector.broadcast %cst_71 : f32 to vector<16x8xf32>
    %110 = arith.addf %108, %109 : vector<16x8xf32>
    %111 = tpu.reciprocal %110 {approx = true} : vector<16x8xf32> -> vector<16x8xf32>
    %cst_72 = arith.constant dense<0.000000e+00> : vector<40x256xf32>
    %112 = tpu.matmul %107, %3, %cst_72 {dimension_numbers = #tpu.dot_dimension_numbers<[1], [0], [0], [1], [0, 0, 1, 1], [], []>} : vector<40x8xbf16>, vector<8x256xbf16>, vector<40x256xf32> -> vector<40x256xf32>
    %113 = arith.mulf %88, %112 : vector<40x256xf32>
    %114 = arith.truncf %113 : vector<40x256xf32> to vector<40x256xbf16>
    %cst_73 = arith.constant dense<0.000000e+00> : vector<16x256xf32>
    %115 = tpu.matmul %1, %114, %cst_73 {dimension_numbers = #tpu.dot_dimension_numbers<[0], [0], [1], [1], [0, 1, 1, 1], [], []>} : vector<40x16xbf16>, vector<40x256xbf16>, vector<16x256xf32> -> vector<16x256xf32>
    %116 = arith.truncf %111 : vector<16x8xf32> to vector<16x8xbf16>
    %cst_74 = arith.constant dense<0.000000e+00> : vector<16x256xf32>
    %117 = tpu.matmul %116, %3, %cst_74 {dimension_numbers = #tpu.dot_dimension_numbers<[1], [0], [0], [1], [0, 0, 1, 1], [], []>} : vector<16x8xbf16>, vector<8x256xbf16>, vector<16x256xf32> -> vector<16x256xf32>
    %118 = arith.mulf %115, %117 : vector<16x256xf32>
    %119 = arith.truncf %118 : vector<16x256xf32> to vector<16x256xbf16>
    %cst_75 = arith.constant dense<0.000000e+00> : vector<16x32xf32>
    %120 = tpu.matmul %119, %4, %cst_75 {dimension_numbers = #tpu.dot_dimension_numbers<[1], [0], [0], [1], [0, 0, 1, 1], [], []>} : vector<16x256xbf16>, vector<256x32xbf16>, vector<16x32xf32> -> vector<16x32xf32>
    %c1_76 = arith.constant 1 : index
    %c0_77 = arith.constant 0 : index
    %c0_78 = arith.constant 0 : index
    %121 = vector.load %arg11[%c1_76, %c0_77, %c0_78] : memref<4x1x32xf32, #tpu.memory_space<vmem>>, vector<1x1x32xf32>
    %122 = vector.shape_cast %121 : vector<1x1x32xf32> to vector<1x32xf32>
    %123 = vector.broadcast %122 : vector<1x32xf32> to vector<16x32xf32>
    %124 = arith.addf %120, %123 : vector<16x32xf32>
    %cst_79 = arith.constant 0.000000e+00 : f32
    %125 = vector.broadcast %cst_79 : f32 to vector<8x256xf32>
    %126 = arith.maximumf %84, %125 : vector<8x256xf32>
    %127 = arith.truncf %126 : vector<8x256xf32> to vector<8x256xbf16>
    %c1_80 = arith.constant 1 : index
    %c0_81 = arith.constant 0 : index
    %c0_82 = arith.constant 0 : index
    %128 = vector.load %arg12[%c1_80, %c0_81, %c0_82] : memref<4x256x32xbf16, #tpu.memory_space<vmem>>, vector<1x256x32xbf16>
    %129 = vector.shape_cast %128 : vector<1x256x32xbf16> to vector<256x32xbf16>
    %cst_83 = arith.constant dense<0.000000e+00> : vector<8x32xf32>
    %130 = tpu.matmul %127, %129, %cst_83 {dimension_numbers = #tpu.dot_dimension_numbers<[1], [0], [0], [1], [0, 0, 1, 1], [], []>} : vector<8x256xbf16>, vector<256x32xbf16>, vector<8x32xf32> -> vector<8x32xf32>
    %c1_84 = arith.constant 1 : index
    %c0_85 = arith.constant 0 : index
    %c0_86 = arith.constant 0 : index
    %131 = vector.load %arg13[%c1_84, %c0_85, %c0_86] : memref<4x1x32xf32, #tpu.memory_space<vmem>>, vector<1x1x32xf32>
    %132 = vector.shape_cast %131 : vector<1x1x32xf32> to vector<1x32xf32>
    %133 = vector.broadcast %132 : vector<1x32xf32> to vector<8x32xf32>
    %134 = arith.addf %130, %133 : vector<8x32xf32>
    %135 = arith.truncf %124 : vector<16x32xf32> to vector<16x32xbf16>
    %136 = arith.truncf %134 : vector<8x32xf32> to vector<8x32xbf16>
    %c2 = arith.constant 2 : index
    %c0_87 = arith.constant 0 : index
    %c0_88 = arith.constant 0 : index
    %137 = vector.load %arg7[%c2, %c0_87, %c0_88] : memref<4x32x512xbf16, #tpu.memory_space<vmem>>, vector<1x32x512xbf16>
    %138 = vector.shape_cast %137 : vector<1x32x512xbf16> to vector<32x512xbf16>
    %cst_89 = arith.constant dense<0.000000e+00> : vector<16x512xf32>
    %139 = tpu.matmul %135, %138, %cst_89 {dimension_numbers = #tpu.dot_dimension_numbers<[1], [0], [0], [1], [0, 0, 1, 1], [], []>} : vector<16x32xbf16>, vector<32x512xbf16>, vector<16x512xf32> -> vector<16x512xf32>
    %c2_90 = arith.constant 2 : index
    %c0_91 = arith.constant 0 : index
    %c0_92 = arith.constant 0 : index
    %140 = vector.load %arg8[%c2_90, %c0_91, %c0_92] : memref<4x1x512xf32, #tpu.memory_space<vmem>>, vector<1x1x512xf32>
    %141 = vector.shape_cast %140 : vector<1x1x512xf32> to vector<1x512xf32>
    %142 = vector.broadcast %141 : vector<1x512xf32> to vector<16x512xf32>
    %143 = arith.addf %139, %142 : vector<16x512xf32>
    %144 = vector.extract_strided_slice %143 {offsets = [0, 0], sizes = [16, 256], strides = [1, 1]} : vector<16x512xf32> to vector<16x256xf32>
    %145 = vector.extract_strided_slice %143 {offsets = [0, 256], sizes = [16, 256], strides = [1, 1]} : vector<16x512xf32> to vector<16x256xf32>
    %c2_93 = arith.constant 2 : index
    %c0_94 = arith.constant 0 : index
    %c0_95 = arith.constant 0 : index
    %146 = vector.load %arg9[%c2_93, %c0_94, %c0_95] : memref<4x32x256xbf16, #tpu.memory_space<vmem>>, vector<1x32x256xbf16>
    %147 = vector.shape_cast %146 : vector<1x32x256xbf16> to vector<32x256xbf16>
    %cst_96 = arith.constant dense<0.000000e+00> : vector<8x256xf32>
    %148 = tpu.matmul %136, %147, %cst_96 {dimension_numbers = #tpu.dot_dimension_numbers<[1], [0], [0], [1], [0, 0, 1, 1], [], []>} : vector<8x32xbf16>, vector<32x256xbf16>, vector<8x256xf32> -> vector<8x256xf32>
    %149 = arith.truncf %148 : vector<8x256xf32> to vector<8x256xbf16>
    %cst_97 = arith.constant dense<0.000000e+00> : vector<40x256xf32>
    %150 = tpu.matmul %2, %149, %cst_97 {dimension_numbers = #tpu.dot_dimension_numbers<[1], [0], [0], [1], [0, 0, 1, 1], [], []>} : vector<40x8xbf16>, vector<8x256xbf16>, vector<40x256xf32> -> vector<40x256xf32>
    %151 = arith.truncf %144 : vector<16x256xf32> to vector<16x256xbf16>
    %cst_98 = arith.constant dense<0.000000e+00> : vector<40x256xf32>
    %152 = tpu.matmul %0, %151, %cst_98 {dimension_numbers = #tpu.dot_dimension_numbers<[1], [0], [0], [1], [0, 0, 1, 1], [], []>} : vector<40x16xbf16>, vector<16x256xbf16>, vector<40x256xf32> -> vector<40x256xf32>
    %153 = arith.truncf %145 : vector<16x256xf32> to vector<16x256xbf16>
    %cst_99 = arith.constant dense<0.000000e+00> : vector<40x256xf32>
    %154 = tpu.matmul %1, %153, %cst_99 {dimension_numbers = #tpu.dot_dimension_numbers<[1], [0], [0], [1], [0, 0, 1, 1], [], []>} : vector<40x16xbf16>, vector<16x256xbf16>, vector<40x256xf32> -> vector<40x256xf32>
    %155 = arith.addf %152, %154 : vector<40x256xf32>
    %156 = arith.addf %155, %150 : vector<40x256xf32>
    %cst_100 = arith.constant 0.000000e+00 : f32
    %157 = vector.broadcast %cst_100 : f32 to vector<40x256xf32>
    %158 = arith.cmpf oge, %156, %157 : vector<40x256xf32>
    %cst_101 = arith.constant 2.000000e-01 : f32
    %159 = vector.broadcast %cst_101 : f32 to vector<40x256xf32>
    %160 = arith.mulf %159, %156 : vector<40x256xf32>
    %161 = arith.select %158, %156, %160 : vector<40x256xi1>, vector<40x256xf32>
    %162 = arith.truncf %161 : vector<40x256xf32> to vector<40x256xbf16>
    %c2_102 = arith.constant 2 : index
    %c0_103 = arith.constant 0 : index
    %c0_104 = arith.constant 0 : index
    %163 = vector.load %arg10[%c2_102, %c0_103, %c0_104] : memref<4x256x8xbf16, #tpu.memory_space<vmem>>, vector<1x256x8xbf16>
    %164 = vector.shape_cast %163 : vector<1x256x8xbf16> to vector<256x8xbf16>
    %cst_105 = arith.constant dense<0.000000e+00> : vector<40x8xf32>
    %165 = tpu.matmul %162, %164, %cst_105 {dimension_numbers = #tpu.dot_dimension_numbers<[1], [0], [0], [1], [0, 0, 1, 1], [], []>} : vector<40x256xbf16>, vector<256x8xbf16>, vector<40x8xf32> -> vector<40x8xf32>
    %cst_106 = arith.constant dense<0xFF800000> : vector<8xf32>
    %166 = vector.multi_reduction <maximumf>, %165, %cst_106 [0] : vector<40x8xf32> to vector<8xf32>
    %167 = vector.shape_cast %166 : vector<8xf32> to vector<1x8xf32>
    %168 = vector.broadcast %167 : vector<1x8xf32> to vector<40x8xf32>
    %169 = arith.subf %165, %168 : vector<40x8xf32>
    %170 = math.exp %169 : vector<40x8xf32>
    %171 = arith.truncf %170 : vector<40x8xf32> to vector<40x8xbf16>
    %cst_107 = arith.constant dense<0.000000e+00> : vector<16x8xf32>
    %172 = tpu.matmul %1, %171, %cst_107 {dimension_numbers = #tpu.dot_dimension_numbers<[0], [0], [1], [1], [0, 1, 1, 1], [], []>} : vector<40x16xbf16>, vector<40x8xbf16>, vector<16x8xf32> -> vector<16x8xf32>
    %cst_108 = arith.constant 1.000000e-16 : f32
    %173 = vector.broadcast %cst_108 : f32 to vector<16x8xf32>
    %174 = arith.addf %172, %173 : vector<16x8xf32>
    %175 = tpu.reciprocal %174 {approx = true} : vector<16x8xf32> -> vector<16x8xf32>
    %cst_109 = arith.constant dense<0.000000e+00> : vector<40x256xf32>
    %176 = tpu.matmul %171, %3, %cst_109 {dimension_numbers = #tpu.dot_dimension_numbers<[1], [0], [0], [1], [0, 0, 1, 1], [], []>} : vector<40x8xbf16>, vector<8x256xbf16>, vector<40x256xf32> -> vector<40x256xf32>
    %177 = arith.mulf %152, %176 : vector<40x256xf32>
    %178 = arith.truncf %177 : vector<40x256xf32> to vector<40x256xbf16>
    %cst_110 = arith.constant dense<0.000000e+00> : vector<16x256xf32>
    %179 = tpu.matmul %1, %178, %cst_110 {dimension_numbers = #tpu.dot_dimension_numbers<[0], [0], [1], [1], [0, 1, 1, 1], [], []>} : vector<40x16xbf16>, vector<40x256xbf16>, vector<16x256xf32> -> vector<16x256xf32>
    %180 = arith.truncf %175 : vector<16x8xf32> to vector<16x8xbf16>
    %cst_111 = arith.constant dense<0.000000e+00> : vector<16x256xf32>
    %181 = tpu.matmul %180, %3, %cst_111 {dimension_numbers = #tpu.dot_dimension_numbers<[1], [0], [0], [1], [0, 0, 1, 1], [], []>} : vector<16x8xbf16>, vector<8x256xbf16>, vector<16x256xf32> -> vector<16x256xf32>
    %182 = arith.mulf %179, %181 : vector<16x256xf32>
    %183 = arith.truncf %182 : vector<16x256xf32> to vector<16x256xbf16>
    %cst_112 = arith.constant dense<0.000000e+00> : vector<16x32xf32>
    %184 = tpu.matmul %183, %4, %cst_112 {dimension_numbers = #tpu.dot_dimension_numbers<[1], [0], [0], [1], [0, 0, 1, 1], [], []>} : vector<16x256xbf16>, vector<256x32xbf16>, vector<16x32xf32> -> vector<16x32xf32>
    %c2_113 = arith.constant 2 : index
    %c0_114 = arith.constant 0 : index
    %c0_115 = arith.constant 0 : index
    %185 = vector.load %arg11[%c2_113, %c0_114, %c0_115] : memref<4x1x32xf32, #tpu.memory_space<vmem>>, vector<1x1x32xf32>
    %186 = vector.shape_cast %185 : vector<1x1x32xf32> to vector<1x32xf32>
    %187 = vector.broadcast %186 : vector<1x32xf32> to vector<16x32xf32>
    %188 = arith.addf %184, %187 : vector<16x32xf32>
    %cst_116 = arith.constant 0.000000e+00 : f32
    %189 = vector.broadcast %cst_116 : f32 to vector<8x256xf32>
    %190 = arith.maximumf %148, %189 : vector<8x256xf32>
    %191 = arith.truncf %190 : vector<8x256xf32> to vector<8x256xbf16>
    %c2_117 = arith.constant 2 : index
    %c0_118 = arith.constant 0 : index
    %c0_119 = arith.constant 0 : index
    %192 = vector.load %arg12[%c2_117, %c0_118, %c0_119] : memref<4x256x32xbf16, #tpu.memory_space<vmem>>, vector<1x256x32xbf16>
    %193 = vector.shape_cast %192 : vector<1x256x32xbf16> to vector<256x32xbf16>
    %cst_120 = arith.constant dense<0.000000e+00> : vector<8x32xf32>
    %194 = tpu.matmul %191, %193, %cst_120 {dimension_numbers = #tpu.dot_dimension_numbers<[1], [0], [0], [1], [0, 0, 1, 1], [], []>} : vector<8x256xbf16>, vector<256x32xbf16>, vector<8x32xf32> -> vector<8x32xf32>
    %c2_121 = arith.constant 2 : index
    %c0_122 = arith.constant 0 : index
    %c0_123 = arith.constant 0 : index
    %195 = vector.load %arg13[%c2_121, %c0_122, %c0_123] : memref<4x1x32xf32, #tpu.memory_space<vmem>>, vector<1x1x32xf32>
    %196 = vector.shape_cast %195 : vector<1x1x32xf32> to vector<1x32xf32>
    %197 = vector.broadcast %196 : vector<1x32xf32> to vector<8x32xf32>
    %198 = arith.addf %194, %197 : vector<8x32xf32>
    %199 = arith.truncf %188 : vector<16x32xf32> to vector<16x32xbf16>
    %200 = arith.truncf %198 : vector<8x32xf32> to vector<8x32xbf16>
    %c3 = arith.constant 3 : index
    %c0_124 = arith.constant 0 : index
    %c0_125 = arith.constant 0 : index
    %201 = vector.load %arg7[%c3, %c0_124, %c0_125] : memref<4x32x512xbf16, #tpu.memory_space<vmem>>, vector<1x32x512xbf16>
    %202 = vector.shape_cast %201 : vector<1x32x512xbf16> to vector<32x512xbf16>
    %cst_126 = arith.constant dense<0.000000e+00> : vector<16x512xf32>
    %203 = tpu.matmul %199, %202, %cst_126 {dimension_numbers = #tpu.dot_dimension_numbers<[1], [0], [0], [1], [0, 0, 1, 1], [], []>} : vector<16x32xbf16>, vector<32x512xbf16>, vector<16x512xf32> -> vector<16x512xf32>
    %c3_127 = arith.constant 3 : index
    %c0_128 = arith.constant 0 : index
    %c0_129 = arith.constant 0 : index
    %204 = vector.load %arg8[%c3_127, %c0_128, %c0_129] : memref<4x1x512xf32, #tpu.memory_space<vmem>>, vector<1x1x512xf32>
    %205 = vector.shape_cast %204 : vector<1x1x512xf32> to vector<1x512xf32>
    %206 = vector.broadcast %205 : vector<1x512xf32> to vector<16x512xf32>
    %207 = arith.addf %203, %206 : vector<16x512xf32>
    %208 = vector.extract_strided_slice %207 {offsets = [0, 0], sizes = [16, 256], strides = [1, 1]} : vector<16x512xf32> to vector<16x256xf32>
    %209 = vector.extract_strided_slice %207 {offsets = [0, 256], sizes = [16, 256], strides = [1, 1]} : vector<16x512xf32> to vector<16x256xf32>
    %c3_130 = arith.constant 3 : index
    %c0_131 = arith.constant 0 : index
    %c0_132 = arith.constant 0 : index
    %210 = vector.load %arg9[%c3_130, %c0_131, %c0_132] : memref<4x32x256xbf16, #tpu.memory_space<vmem>>, vector<1x32x256xbf16>
    %211 = vector.shape_cast %210 : vector<1x32x256xbf16> to vector<32x256xbf16>
    %cst_133 = arith.constant dense<0.000000e+00> : vector<8x256xf32>
    %212 = tpu.matmul %200, %211, %cst_133 {dimension_numbers = #tpu.dot_dimension_numbers<[1], [0], [0], [1], [0, 0, 1, 1], [], []>} : vector<8x32xbf16>, vector<32x256xbf16>, vector<8x256xf32> -> vector<8x256xf32>
    %213 = arith.truncf %212 : vector<8x256xf32> to vector<8x256xbf16>
    %cst_134 = arith.constant dense<0.000000e+00> : vector<40x256xf32>
    %214 = tpu.matmul %2, %213, %cst_134 {dimension_numbers = #tpu.dot_dimension_numbers<[1], [0], [0], [1], [0, 0, 1, 1], [], []>} : vector<40x8xbf16>, vector<8x256xbf16>, vector<40x256xf32> -> vector<40x256xf32>
    %215 = arith.truncf %208 : vector<16x256xf32> to vector<16x256xbf16>
    %cst_135 = arith.constant dense<0.000000e+00> : vector<40x256xf32>
    %216 = tpu.matmul %0, %215, %cst_135 {dimension_numbers = #tpu.dot_dimension_numbers<[1], [0], [0], [1], [0, 0, 1, 1], [], []>} : vector<40x16xbf16>, vector<16x256xbf16>, vector<40x256xf32> -> vector<40x256xf32>
    %217 = arith.truncf %209 : vector<16x256xf32> to vector<16x256xbf16>
    %cst_136 = arith.constant dense<0.000000e+00> : vector<40x256xf32>
    %218 = tpu.matmul %1, %217, %cst_136 {dimension_numbers = #tpu.dot_dimension_numbers<[1], [0], [0], [1], [0, 0, 1, 1], [], []>} : vector<40x16xbf16>, vector<16x256xbf16>, vector<40x256xf32> -> vector<40x256xf32>
    %219 = arith.addf %216, %218 : vector<40x256xf32>
    %220 = arith.addf %219, %214 : vector<40x256xf32>
    %cst_137 = arith.constant 0.000000e+00 : f32
    %221 = vector.broadcast %cst_137 : f32 to vector<40x256xf32>
    %222 = arith.cmpf oge, %220, %221 : vector<40x256xf32>
    %cst_138 = arith.constant 2.000000e-01 : f32
    %223 = vector.broadcast %cst_138 : f32 to vector<40x256xf32>
    %224 = arith.mulf %223, %220 : vector<40x256xf32>
    %225 = arith.select %222, %220, %224 : vector<40x256xi1>, vector<40x256xf32>
    %226 = arith.truncf %225 : vector<40x256xf32> to vector<40x256xbf16>
    %c3_139 = arith.constant 3 : index
    %c0_140 = arith.constant 0 : index
    %c0_141 = arith.constant 0 : index
    %227 = vector.load %arg10[%c3_139, %c0_140, %c0_141] : memref<4x256x8xbf16, #tpu.memory_space<vmem>>, vector<1x256x8xbf16>
    %228 = vector.shape_cast %227 : vector<1x256x8xbf16> to vector<256x8xbf16>
    %cst_142 = arith.constant dense<0.000000e+00> : vector<40x8xf32>
    %229 = tpu.matmul %226, %228, %cst_142 {dimension_numbers = #tpu.dot_dimension_numbers<[1], [0], [0], [1], [0, 0, 1, 1], [], []>} : vector<40x256xbf16>, vector<256x8xbf16>, vector<40x8xf32> -> vector<40x8xf32>
    %cst_143 = arith.constant dense<0xFF800000> : vector<8xf32>
    %230 = vector.multi_reduction <maximumf>, %229, %cst_143 [0] : vector<40x8xf32> to vector<8xf32>
    %231 = vector.shape_cast %230 : vector<8xf32> to vector<1x8xf32>
    %232 = vector.broadcast %231 : vector<1x8xf32> to vector<40x8xf32>
    %233 = arith.subf %229, %232 : vector<40x8xf32>
    %234 = math.exp %233 : vector<40x8xf32>
    %235 = arith.truncf %234 : vector<40x8xf32> to vector<40x8xbf16>
    %cst_144 = arith.constant dense<0.000000e+00> : vector<16x8xf32>
    %236 = tpu.matmul %1, %235, %cst_144 {dimension_numbers = #tpu.dot_dimension_numbers<[0], [0], [1], [1], [0, 1, 1, 1], [], []>} : vector<40x16xbf16>, vector<40x8xbf16>, vector<16x8xf32> -> vector<16x8xf32>
    %cst_145 = arith.constant 1.000000e-16 : f32
    %237 = vector.broadcast %cst_145 : f32 to vector<16x8xf32>
    %238 = arith.addf %236, %237 : vector<16x8xf32>
    %239 = tpu.reciprocal %238 {approx = true} : vector<16x8xf32> -> vector<16x8xf32>
    %cst_146 = arith.constant dense<0.000000e+00> : vector<40x256xf32>
    %240 = tpu.matmul %235, %3, %cst_146 {dimension_numbers = #tpu.dot_dimension_numbers<[1], [0], [0], [1], [0, 0, 1, 1], [], []>} : vector<40x8xbf16>, vector<8x256xbf16>, vector<40x256xf32> -> vector<40x256xf32>
    %241 = arith.mulf %216, %240 : vector<40x256xf32>
    %242 = arith.truncf %241 : vector<40x256xf32> to vector<40x256xbf16>
    %cst_147 = arith.constant dense<0.000000e+00> : vector<16x256xf32>
    %243 = tpu.matmul %1, %242, %cst_147 {dimension_numbers = #tpu.dot_dimension_numbers<[0], [0], [1], [1], [0, 1, 1, 1], [], []>} : vector<40x16xbf16>, vector<40x256xbf16>, vector<16x256xf32> -> vector<16x256xf32>
    %244 = arith.truncf %239 : vector<16x8xf32> to vector<16x8xbf16>
    %cst_148 = arith.constant dense<0.000000e+00> : vector<16x256xf32>
    %245 = tpu.matmul %244, %3, %cst_148 {dimension_numbers = #tpu.dot_dimension_numbers<[1], [0], [0], [1], [0, 0, 1, 1], [], []>} : vector<16x8xbf16>, vector<8x256xbf16>, vector<16x256xf32> -> vector<16x256xf32>
    %246 = arith.mulf %243, %245 : vector<16x256xf32>
    %247 = arith.truncf %246 : vector<16x256xf32> to vector<16x256xbf16>
    %cst_149 = arith.constant dense<0.000000e+00> : vector<16x32xf32>
    %248 = tpu.matmul %247, %4, %cst_149 {dimension_numbers = #tpu.dot_dimension_numbers<[1], [0], [0], [1], [0, 0, 1, 1], [], []>} : vector<16x256xbf16>, vector<256x32xbf16>, vector<16x32xf32> -> vector<16x32xf32>
    %c3_150 = arith.constant 3 : index
    %c0_151 = arith.constant 0 : index
    %c0_152 = arith.constant 0 : index
    %249 = vector.load %arg11[%c3_150, %c0_151, %c0_152] : memref<4x1x32xf32, #tpu.memory_space<vmem>>, vector<1x1x32xf32>
    %250 = vector.shape_cast %249 : vector<1x1x32xf32> to vector<1x32xf32>
    %251 = vector.broadcast %250 : vector<1x32xf32> to vector<16x32xf32>
    %252 = arith.addf %248, %251 : vector<16x32xf32>
    %cst_153 = arith.constant 0.000000e+00 : f32
    %253 = vector.broadcast %cst_153 : f32 to vector<8x256xf32>
    %254 = arith.maximumf %212, %253 : vector<8x256xf32>
    %255 = arith.truncf %254 : vector<8x256xf32> to vector<8x256xbf16>
    %c3_154 = arith.constant 3 : index
    %c0_155 = arith.constant 0 : index
    %c0_156 = arith.constant 0 : index
    %256 = vector.load %arg12[%c3_154, %c0_155, %c0_156] : memref<4x256x32xbf16, #tpu.memory_space<vmem>>, vector<1x256x32xbf16>
    %257 = vector.shape_cast %256 : vector<1x256x32xbf16> to vector<256x32xbf16>
    %cst_157 = arith.constant dense<0.000000e+00> : vector<8x32xf32>
    %258 = tpu.matmul %255, %257, %cst_157 {dimension_numbers = #tpu.dot_dimension_numbers<[1], [0], [0], [1], [0, 0, 1, 1], [], []>} : vector<8x256xbf16>, vector<256x32xbf16>, vector<8x32xf32> -> vector<8x32xf32>
    %c3_158 = arith.constant 3 : index
    %c0_159 = arith.constant 0 : index
    %c0_160 = arith.constant 0 : index
    %259 = vector.load %arg13[%c3_158, %c0_159, %c0_160] : memref<4x1x32xf32, #tpu.memory_space<vmem>>, vector<1x1x32xf32>
    %260 = vector.shape_cast %259 : vector<1x1x32xf32> to vector<1x32xf32>
    %261 = vector.broadcast %260 : vector<1x32xf32> to vector<8x32xf32>
    %262 = arith.addf %258, %261 : vector<8x32xf32>
    %c0_161 = arith.constant 0 : index
    %c0_162 = arith.constant 0 : index
    %263 = vector.load %arg14[%c0_161, %c0_162] : memref<16x32xf32, #tpu.memory_space<vmem>>, vector<16x32xf32>
    tpu.vector_store %arg14[%c0_161, %c0_162], %252 {strides = array<i32>} : memref<16x32xf32, #tpu.memory_space<vmem>>, vector<16x32xf32>,
    %c0_163 = arith.constant 0 : index
    %c0_164 = arith.constant 0 : index
    %264 = vector.load %arg15[%c0_163, %c0_164] : memref<8x32xf32, #tpu.memory_space<vmem>>, vector<8x32xf32>
    tpu.vector_store %arg15[%c0_163, %c0_164], %262 {strides = array<i32>} : memref<8x32xf32, #tpu.memory_space<vmem>>, vector<8x32xf32>,
    return
  }
}

</mosaic_0001>

<bundles_post_ra>
// kernel: tpu_custom_call.1
= control target key start
LH: loop header
LB: loop body
LE: loop exit
PB: predicated region body
PF: predicated region fallthrough
CT: control target
= control target key end

     0   :  { %21 = vsyncpa [#allocation3], 0  ;;  %v7871_v2 = vmov 0   ;;  %vm175_vm0 = vcmask 261120   ;;  %s7855_s0 = inlined_call_operand.vmem [shape: f32[16,32], index: 0, kind: input, shape index: {}]   ;;  %s7856_s1 = inlined_call_operand.vmem [shape: f32[8,32], index: 1, kind: input, shape index: {}]   ;;  %s7857_s2 = inlined_call_operand.vmem [shape: bf16[40,16], index: 2, kind: input, shape index: {}]   ;;  %s7858_s3 = inlined_call_operand.vmem [shape: bf16[40,16], index: 3, kind: input, shape index: {}]   ;;  %s7859_s4 = inlined_call_operand.vmem [shape: bf16[40,8], index: 4, kind: input, shape index: {}]   ;;  %s7860_s5 = inlined_call_operand.vmem [shape: bf16[8,256], index: 5, kind: input, shape index: {}]   ;;  %s7861_s6 = inlined_call_operand.vmem [shape: bf16[256,32], index: 6, kind: input, shape index: {}]   ;;  %s7862_s7 = inlined_call_operand.vmem [shape: bf16[4,32,512], index: 7, kind: input, shape index: {}]   ;;  %s7863_s8 = inlined_call_operand.vmem [shape: f32[4,1,512], index: 8, kind: input, shape index: {}]   ;;  %s7864_s9 = inlined_call_operand.vmem [shape: bf16[4,32,256], index: 9, kind: input, shape index: {}]   ;;  %s7865_s10 = inlined_call_operand.vmem [shape: bf16[4,256,8], index: 10, kind: input, shape index: {}]   ;;  %s7866_s11 = inlined_call_operand.vmem [shape: f32[4,1,32], index: 11, kind: input, shape index: {}]   ;;  %s7867_s12 = inlined_call_operand.vmem [shape: bf16[4,256,32], index: 12, kind: input, shape index: {}]   ;;  %s7868_s13 = inlined_call_operand.vmem [shape: f32[4,1,32], index: 13, kind: input, shape index: {}]   ;;  %s7869_s14 = inlined_call_operand.hbm [shape: f32[16,32], index: 14, kind: output, shape index: {0}]   ;;  %s7870_s15 = inlined_call_operand.hbm [shape: f32[8,32], index: 15, kind: output, shape index: {1}]  }
   0x1   :  { %v5984_v0 = vld [vmem:[%s7864_s9 + $0x4] ss:$8 sps:$4 sm:$0xff]   ;;  %v5986_v1 = vld [vmem:[%s7864_s9] ss:$8 sps:$4 sm:$0xff]   ;;  %324 = vmatprep.mubr.bf16.mxu0 %v7871_v2  ;;  %211 = vmatprep.mubr.bf16.mxu1 %v7871_v2  ;;  %v5987_v3 = vld [vmem:[%s7864_s9 + $0x14] ss:$8 sps:$4 sm:$0xff]  }
   0x2   :  { %292 = vmatprep.subr.bf16.mxu0 %v5984_v0  ;;  %v5989_v4 = vld [vmem:[%s7864_s9 + $0x10] ss:$8 sps:$4 sm:$0xff]   ;;  %v5990_v5 = vld [vmem:[%s7862_s7 + $0x4] ss:$16 sps:$4 sm:$0xff]   ;;  %v101_v12 = vld [vmem:[%s7855_s0 + $0x8] sm:$0xff] }
   0x3   :  { %293 = vmatpush1.bf16.msra.mxu0 %v5986_v1  ;;  %v102_v6 = vld [vmem:[%s7856_s1] sm:$0xff]  ;;  %179 = vmatprep.subr.bf16.mxu1 %v5990_v5  ;;  %v5998_v13 = vld [vmem:[%s7862_s7 + $0xc] ss:$16 sps:$4 sm:$0xff]   ;;  %v5996_v14 = vld [vmem:[%s7862_s7 + $0x8] ss:$16 sps:$4 sm:$0xff]  }
   0x4   :  { %294 = vmatprep.subr.bf16.mxu0 %v5987_v3  ;;  %v5992_v7 = vld [vmem:[%s7862_s7] ss:$16 sps:$4 sm:$0xff]   ;;  %v5993_v8 = vld [vmem:[%s7862_s7 + $0x24] ss:$16 sps:$4 sm:$0xff]   ;;  %v104_v11 = vpack.c.bf16 %v102_v6, %v102_v6  ;;  %v6001_v16 = vld [vmem:[%s7862_s7 + $0x2c] ss:$16 sps:$4 sm:$0xff]  }
   0x5   :  { %v5995_v9 = vld [vmem:[%s7862_s7 + $0x20] ss:$16 sps:$4 sm:$0xff]   ;;  %180 = vmatpush1.bf16.msra.mxu1 %v5992_v7  ;;  %v5999_v17 = vld [vmem:[%s7862_s7 + $0x28] ss:$16 sps:$4 sm:$0xff]  }
   0x6   :  { %v100_v10 = vld [vmem:[%s7855_s0] sm:$0xff]  ;;  %181 = vmatprep.subr.bf16.mxu1 %v5993_v8 }
   0x7   :  { %295 = vmatpush1.bf16.msra.mxu0 %v5989_v4  ;;  %v103_v15 = vpack.c.bf16 %v101_v12, %v100_v10  ;;  %v6486_v18 = vld [vmem:[%s7858_s3] sm:$0xff]  }
   0x8   :  { %873 = vxpose.xlu0.c.b16.start [1/3] (short) (narrow) %v6486_v18, 16 }
   0x9   :  { %182 = vmatpush1.bf16.msra.mxu1 %v5995_v9 }
   0xa   :  { %4999 = vmatmul.mubr.msk.bf16.vlgmr.msra.gmra.mrb[0].mxu0 %vm175_vm0, %v104_v11  ;;  %222 = vmatprep.subr.bf16.mxu1 %v5998_v13 }
   0xb   :  { %483 = vmatprep.mubr.bf16.mxu0 %v7871_v2 }
   0xc   :  { %4993 = vmatmul.mubr.msk.bf16.vlgmr.msra.gmra.mrb[0].mxu1 %vm175_vm0, %v103_v15 }
   0xd   :  { %223 = vmatpush1.bf16.msra.mxu1 %v5996_v14  ;;  %254 = vmatprep.mubr.bf16.mxu1 %v7871_v2 }
   0xe   :  { %224 = vmatprep.subr.bf16.mxu1 %v6001_v16 }
  0x11   :  { %225 = vmatpush1.bf16.msra.mxu1 %v5999_v17 }
  0x14   :  { %4994 = vmatmul.mubr.msk.bf16.vlgmr.msra.gmra.mrb[4].mxu1 %vm175_vm0, %v103_v15 }
  0x15   :  { %397 = vmatprep.mubr.bf16.mxu1 %v7871_v2 }
  0x16   :  { %22 = vsyncpa [#allocation5], 0  ;;  %v6492_v19 = vld [vmem:[%s7858_s3 + $0x8] sm:$0xff]   ;;  %v6498_v20 = vld [vmem:[%s7858_s3 + $0x10] ss:$0 sps:$4 sm:$0xff]   ;;  %v115_v21 = vlaneseq  ;;  %vm358_vm1 = vcmask 1043456  }
  0x17   :  { %874 = vxpose.xlu0.c.b16.cont [2/3] (short) (narrow) %v6492_v19, 16  ;;  %v113_v24 = vld [vmem:[%s7863_s8] sm:$0xf]  ;;  %vm348_vm2 = vcmask 64512   ;;  %v6545_v54 = vld [vmem:[%s7859_s4 + $0x8] sm:$0xff]   ;;  %vm441_vm3 = vcmask 130048  }
  0x18   :  { %v116_v22 = vshrl.u32 %v115_v21, 7  ;;  %v6523_v37 = vld [vmem:[%s7859_s4] sm:$0xff]   ;;  %v6013_v61 = vld [vmem:[%s7865_s10 + $0x48] sm:$0xff]   ;;  %v6015_v3 = vld [vmem:[%s7865_s10 + $0x50] sm:$0xff]   ;;  %vm6345_vm14 = vmmov 0   ;;  %vm889_vm15 = vcmask 326656  }
  0x19   :  { %v6011_v50 = vld [vmem:[%s7865_s10 + $0x40] sm:$0xff]   ;;  %v6014_v1 = vld [vmem:[%s7865_s10 + $0x8] sm:$0xff]   ;;  %v6573_v5 = vld [vmem:[%s7859_s4 + $0x10] ss:$0 sps:$4 sm:$0xff]   ;;  %s6346_s1 = smov [#allocation4]  }
  0x1a   :  { %v6501_v23 = vsub.s32 0, %v116_v22  ;;  %v6506_v25 = vsub.s32 1, %v116_v22  ;;  %v6525_v39 = vsub.s32 2, %v116_v22  ;;  %v6527_v42 = vsub.s32 3, %v116_v22  ;;  %v6540_v52 = vld [vmem:[%s7857_s2] sm:$0xff]   ;;  %v6568_v4 = vld [vmem:[%s7857_s2 + $0x8] sm:$0xff]  }
  0x1b   :  { %875 = vxpose.xlu0.c.b16.end [3/3] (short) (narrow) %v6498_v20, 16  ;;  %v6012_v58 = vld [vmem:[%s7865_s10] sm:$0xff]   ;;  %v6016_v6 = vld [vmem:[%s7865_s10 + $0x10] sm:$0xff]   ;;  %v6017_v7 = vld [vmem:[%s7865_s10 + $0x58] sm:$0xff]   ;;  %s4973_s23 = sshll.u32 %s6346_s1, 4  ;;  %s4974_s23 = int_to_ptr.vmem [resolvable:$true] %s4973_s23 }
  0x1c   :  { %v118_v27 = vrot.slane %v113_v24, %v6501_v23  ;;  %v122_v30 = vrot.slane %v113_v24, %v6506_v25  ;;  %v126_v47 = vrot.slane %v113_v24, %v6525_v39  ;;  %v130_v49 = vrot.slane %v113_v24, %v6527_v42  ;;  %v6018_v8 = vld [vmem:[%s7865_s10 + $0x18] sm:$0xff]   ;;  %v6019_v9 = vld [vmem:[%s7865_s10 + $0x60] sm:$0xff]   ;;  %v6596_v10 = vld [vmem:[%s7857_s2 + $0x10] ss:$0 sps:$4 sm:$0xff]   ;;  %s6295_s24 = scalar_lea.vmem %s4974_s23, 128  ;;  %p6300_p1 = scmp.lt.s32.totalorder %s4974_s23, %s4974_s23 }
  0x1d   :  { %v6020_v11 = vld [vmem:[%s7865_s10 + $0x20] sm:$0xff]   ;;  %v6021_v12 = vld [vmem:[%s7865_s10 + $0x68] sm:$0xff]   ;;  %v6023_v14 = vld [vmem:[%s7865_s10 + $0x70] sm:$0xff]   ;;  %p6296_p0 = scmp.ne.s32.totalorder %s4974_s23, %s6295_s24  ;;  %p6301_p2 = scmp.lt.s32.totalorder %s6295_s24, %s6295_s24 }
  0x1e   :  { %v6022_v13 = vld [vmem:[%s7865_s10 + $0x28] sm:$0xff]   ;;  %v6024_v15 = vld [vmem:[%s7865_s10 + $0x30] sm:$0xff]   ;;  %v6025_v16 = vld [vmem:[%s7865_s10 + $0x78] sm:$0xff]  }
  0x1f   :  { %v6026_v17 = vld [vmem:[%s7865_s10 + $0x38] sm:$0xff]   ;;  %p6302_p3 = por %p6301_p2, %p6300_p1 }
  0x21   :  { %p6303_p4 = pnand %p6302_p3, %p6296_p0 }
  0xdd   :  { %v6508_v26 = vpop.f32.mrb[0].mxu0 }
  0xde   :  { %v333_v28 = vpack.c.bf16 %v6508_v26, %v6508_v26  ;;  %v6513_v29 = vpop.f32.mrb[1].mxu0 }
  0xdf   :  { %v334_v31 = vpack.c.bf16 %v6513_v29, %v6513_v29  ;;  %v330_v32 = vpop.f32.mrb[2].mxu0  ;;  %v213_v35 = vpop.f32.mrb[0].mxu1 }
  0xe0   :  { %v331_v33 = vpop.f32.mrb[3].mxu0  ;;  %v360_v34 = vsel %vm358_vm1, %v333_v28, 0  ;;  %v214_v36 = vadd.f32 %v213_v35, %v118_v27  ;;  %v215_v38 = vpop.f32.mrb[1].mxu1 }
  0xe1   :  { %5003 = vmatprep.subr.msk.bf16.mxu1 %vm358_vm1, %v334_v31  ;;  %v216_v40 = vadd.f32 %v215_v38, %v122_v30  ;;  %v217_v41 = vpop.f32.mrb[2].mxu1 }
  0xe2   :  { %366 = vmatpush1.bf16.msra.mxu1 %v360_v34  ;;  %v218_v43 = vadd.f32 %v217_v41, %v118_v27  ;;  %v219_v44 = vpop.f32.mrb[3].mxu1 }
  0xe3   :  { %v220_v45 = vadd.f32 %v219_v44, %v122_v30 }
  0xe4   :  { %v426_v46 = vpack.c.bf16 %v218_v43, %v214_v36 }
  0xe5   :  { %5004 = vmatmul.mubr.msk.bf16.vlgmr.msra.gmra.mrb[8].mxu1 %vm348_vm2, %v6523_v37  ;;  %v427_v48 = vpack.c.bf16 %v220_v45, %v216_v40 }
  0xe6   :  { %407 = vmatprep.mubr.bf16.mxu1 %v7871_v2 }
  0xe7   :  { %v256_v51 = vpop.f32.mrb[4].mxu1  ;;  %451 = vmatprep.subr.bf16.mxu0 %v427_v48 }
  0xe8   :  { %v257_v53 = vadd.f32 %v256_v51, %v126_v47  ;;  %v258_v55 = vpop.f32.mrb[5].mxu1  ;;  %452 = vmatpush1.bf16.msra.mxu0 %v426_v46 }
  0xe9   :  { %v259_v56 = vadd.f32 %v258_v55, %v130_v49  ;;  %v260_v57 = vpop.f32.mrb[6].mxu1  ;;  %5521 = vmatprep.subr.bf16.mxu0 %v6011_v50 }
  0xea   :  { %v261_v59 = vadd.f32 %v260_v57, %v126_v47  ;;  %v262_v60 = vpop.f32.mrb[7].mxu1 }
  0xeb   :  { %v263_v62 = vadd.f32 %v262_v60, %v130_v49  ;;  %5010 = vmatmul.mubr.msk.bf16.vlgmr.msra.gmra.mrb[4].mxu0 %vm441_vm3, %v6540_v52 }
  0xec   :  { %v512_v63 = vpack.c.bf16 %v261_v59, %v257_v53  ;;  %493 = vmatprep.mubr.bf16.mxu0 %v7871_v2  ;;  %5522 = vmatpush3.bf16.msra.mxu0 %v6012_v58 }
  0xed   :  { %5005 = vmatmul.mubr.msk.bf16.gmra.mrb[12].mxu1 %vm348_vm2, %v6545_v54  ;;  %v513_v0 = vpack.c.bf16 %v263_v62, %v259_v56  ;;  %5523 = vmatprep.subr.bf16.mxu0 %v6013_v61 }
  0xee   :  { %417 = vmatprep.mubr.bf16.mxu1 %v7871_v2 }
  0xef   :  { %536 = vmatprep.subr.bf16.mxu1 %v513_v0 }
  0xf0   :  { %537 = vmatpush1.bf16.msra.mxu1 %v512_v63  ;;  %5524 = vmatpush3.bf16.msra.mxu0 %v6014_v1 }
  0xf1   :  { %5525 = vmatprep.subr.bf16.mxu0 %v6015_v3 }
  0xf3   :  { %5011 = vmatmul.mubr.msk.bf16.gmra.mrb[8].mxu0 %vm441_vm3, %v6568_v4 }
  0xf4   :  { %503 = vmatprep.mubr.bf16.mxu0 %v7871_v2  ;;  %5526 = vmatpush3.bf16.msra.mxu0 %v6016_v6 }
  0xf5   :  { %5006 = vmatmul.mubr.msk.bf16.gmra.mrb[16].mxu1 %vm348_vm2, %v6573_v5  ;;  %5527 = vmatprep.subr.bf16.mxu0 %v6017_v7 }
  0xf6   :  { %568 = vmatprep.mubr.bf16.mxu1 %v7871_v2 }
  0xf8   :  { %5528 = vmatpush3.bf16.msra.mxu0 %v6018_v8 }
  0xf9   :  { %5529 = vmatprep.subr.bf16.mxu0 %v6019_v9 }
  0xfb   :  { %5012 = vmatmul.mubr.msk.bf16.gmra.mrb[12].mxu0 %vm441_vm3, %v6596_v10 }
  0xfc   :  { %5530 = vmatpush3.bf16.msra.mxu0 %v6020_v11 }
  0xfd   :  { %5016 = vmatmul.mubr.msk.bf16.vlgmr.msra.gmra.mrb[8].mxu1 %vm441_vm3, %v6486_v18  ;;  %5531 = vmatprep.subr.bf16.mxu0 %v6021_v12 }
  0xfe   :  { %578 = vmatprep.mubr.bf16.mxu1 %v7871_v2 }
 0x100   :  { %5532 = vmatpush3.bf16.msra.mxu0 %v6022_v13 }
 0x101   :  { %5533 = vmatprep.subr.bf16.mxu0 %v6023_v14 }
 0x104   :  { %5534 = vmatpush3.bf16.msra.mxu0 %v6024_v15 }
 0x105   :  { %5017 = vmatmul.mubr.msk.bf16.gmra.mrb[12].mxu1 %vm441_vm3, %v6492_v19  ;;  %5535 = vmatprep.subr.bf16.mxu0 %v6025_v16 }
 0x106   :  { %588 = vmatprep.mubr.bf16.mxu1 %v7871_v2 }
 0x108   :  { %5536 = vmatpush3.bf16.msra.mxu0 %v6026_v17 }
 0x10d   :  { %5018 = vmatmul.mubr.msk.bf16.gmra.mrb[16].mxu1 %vm441_vm3, %v6498_v20 }
 0x1be   :  { %v6629_v18 = vpop.f32.mrb[4].mxu0 }
 0x1bf   :  { %v6631_v19 = vpop.f32.mrb[5].mxu0 }
 0x1c0   :  { %v6633_v20 = vpop.f32.mrb[6].mxu0 }
 0x1c1   :  { %v6635_v21 = vpop.f32.mrb[7].mxu0 }
 0x1c6   :  { %v6637_v22 = vpop.f32.mrb[8].mxu0 }
 0x1c7   :  { %v6639_v24 = vpop.f32.mrb[9].mxu0 }
 0x1c8   :  { %v6641_v27 = vpop.f32.mrb[10].mxu0 }
 0x1c9   :  { %v6643_v28 = vpop.f32.mrb[11].mxu0 }
 0x1ce   :  { %v6645_v30 = vpop.f32.mrb[12].mxu0 }
 0x1cf   :  { %v6647_v32 = vpop.f32.mrb[13].mxu0 }
 0x1d0   :  { %v570_v31 = vpop.f32.mrb[8].mxu1  ;;  %v509_v35 = vpop.f32.mrb[14].mxu0 }
 0x1d1   :  { %v597_v33 = vadd.f32 %v570_v31, %v6629_v18  ;;  %v572_v34 = vpop.f32.mrb[9].mxu1  ;;  %v510_v40 = vpop.f32.mrb[15].mxu0 }
 0x1d2   :  { %v598_v36 = vadd.f32 %v572_v34, %v6631_v19  ;;  %v574_v38 = vpop.f32.mrb[10].mxu1 }
 0x1d3   :  { %v627_v41 = vmul.f32 0.2, %v597_v33  ;;  %v599_v43 = vadd.f32 %v574_v38, %v6633_v20  ;;  %v576_v44 = vpop.f32.mrb[11].mxu1  ;;  %vm617_vm4 = vcmp.ge.f32.partialorder %v597_v33, 0.0 }
 0x1d4   :  { %v628_v45 = vmul.f32 0.2, %v598_v36  ;;  %v600_v46 = vadd.f32 %v576_v44, %v6635_v21  ;;  %vm618_vm5 = vcmp.ge.f32.partialorder %v598_v36, 0.0  ;;  %v7873_v44 = vmov 0.0  }
 0x1d5   :  { %vm619_vm6 = vcmp.ge.f32.partialorder %v599_v43, 0.0  ;;  %v629_v47 = vmul.f32 0.2, %v599_v43  ;;  %v637_v49 = vsel %vm617_vm4, %v597_v33, %v627_v41  ;;  %5849 = vmatprep.subr.bf16.mxu1 %v7873_v44  ;;  %5855 = vmatprep.mubr.msk.bf16.mxu1 %vm6345_vm14, %v7873_v44 }
 0x1d6   :  { %vm620_vm7 = vcmp.ge.f32.partialorder %v600_v46, 0.0  ;;  %v630_v48 = vmul.f32 0.2, %v600_v46  ;;  %v638_v55 = vsel %vm618_vm5, %v598_v36, %v628_v45 }
 0x1d7   :  { %v639_v50 = vsel %vm619_vm6, %v599_v43, %v629_v47 }
 0x1d8   :  { %v647_v51 = vpack.c.bf16 %v639_v50, %v637_v49  ;;  %v580_v53 = vpop.f32.mrb[12].mxu1  ;;  %v640_v56 = vsel %vm620_vm7, %v600_v46, %v630_v48 }
 0x1d9   :  { %v601_v57 = vadd.f32 %v580_v53, %v6637_v22  ;;  %v582_v58 = vpop.f32.mrb[13].mxu1  ;;  %v648_v59 = vpack.c.bf16 %v640_v56, %v638_v55 }
 0x1da   :  { %v602_v60 = vadd.f32 %v582_v58, %v6639_v24  ;;  %v584_v61 = vpop.f32.mrb[14].mxu1 }
 0x1db   :  { %v631_v62 = vmul.f32 0.2, %v601_v57  ;;  %v603_v63 = vadd.f32 %v584_v61, %v6641_v27  ;;  %v586_v0 = vpop.f32.mrb[15].mxu1  ;;  %813 = vmatprep.mubr.bf16.mxu0 %v648_v59  ;;  %vm621_vm8 = vcmp.ge.f32.partialorder %v601_v57, 0.0 }
 0x1dc   :  { %v632_v1 = vmul.f32 0.2, %v602_v60  ;;  %v604_v3 = vadd.f32 %v586_v0, %v6643_v28  ;;  %814 = vmatmul.mubr.bf16.vlgmr.msra.gmra.mrb[16].mxu0 %v647_v51  ;;  %vm622_vm9 = vcmp.ge.f32.partialorder %v602_v60, 0.0 }
 0x1dd   :  { %vm623_vm10 = vcmp.ge.f32.partialorder %v603_v63, 0.0  ;;  %v633_v6 = vmul.f32 0.2, %v603_v63  ;;  %v641_v8 = vsel %vm621_vm8, %v601_v57, %v631_v62 }
 0x1de   :  { %vm624_vm11 = vcmp.ge.f32.partialorder %v604_v3, 0.0  ;;  %v634_v7 = vmul.f32 0.2, %v604_v3  ;;  %v642_v12 = vsel %vm622_vm9, %v602_v60, %v632_v1 }
 0x1df   :  { %v643_v9 = vsel %vm623_vm10, %v603_v63, %v633_v6 }
 0x1e0   :  { %v590_v11 = vpop.f32.mrb[16].mxu1  ;;  %v644_v13 = vsel %vm624_vm11, %v604_v3, %v634_v7  ;;  %v649_v14 = vpack.c.bf16 %v643_v9, %v641_v8 }
 0x1e1   :  { %v605_v15 = vadd.f32 %v590_v11, %v6645_v30  ;;  %v592_v16 = vpop.f32.mrb[17].mxu1  ;;  %v650_v17 = vpack.c.bf16 %v644_v13, %v642_v12 }
 0x1e2   :  { %v606_v31 = vadd.f32 %v592_v16, %v6647_v32  ;;  %v594_v33 = vpop.f32.mrb[18].mxu1 }
 0x1e3   :  { %v635_v34 = vmul.f32 0.2, %v605_v15  ;;  %v595_v35 = vpop.f32.mrb[19].mxu1  ;;  %821 = vmatprep.mubr.bf16.mxu0 %v650_v17  ;;  %vm625_vm12 = vcmp.ge.f32.partialorder %v605_v15, 0.0 }
 0x1e4   :  { %vm626_vm13 = vcmp.ge.f32.partialorder %v606_v31, 0.0  ;;  %v636_v36 = vmul.f32 0.2, %v606_v31  ;;  %822 = vmatmul.mubr.bf16.gmra.mrb[20].mxu0 %v649_v14 }
 0x1e5   :  { %v645_v41 = vsel %vm625_vm12, %v605_v15, %v635_v34 }
 0x1e6   :  { %v646_v38 = vsel %vm626_vm13, %v606_v31, %v636_v36  ;;  %v651_v43 = vpack.c.bf16 %v645_v41, %v645_v41 }
 0x1e7   :  { %v652_v40 = vpack.c.bf16 %v646_v38, %v646_v38 }
 0x1e9   :  { %829 = vmatprep.mubr.bf16.mxu0 %v652_v40 }
 0x1ec   :  { %830 = vmatmul.mubr.bf16.gmra.mrb[24].mxu0 %v651_v43 }
 0x1ed   :  { %1073 = vmatprep.mubr.bf16.mxu0 %v7871_v2 }
 0x2af   :  { %v5537_v45 = vpop.f32.mrb[16].mxu0 }
 0x2b0   :  { %v5538_v46 = vpop.f32.mrb[17].mxu0 }
 0x2b1   :  { %v5539_v47 = vadd.f32 %v5538_v46, %v5537_v45  ;;  %v5540_v48 = vpop.f32.mrb[18].mxu0 }
 0x2b2   :  { %v5541_v49 = vpop.f32.mrb[19].mxu0 }
 0x2b3   :  { %v5542_v50 = vadd.f32 %v5541_v49, %v5540_v48  ;;  %v837_v6 = vsel %vm348_vm2, %v5539_v47, -inf }
 0x2b5   :  { %v838_v9 = vsel %vm348_vm2, %v5542_v50, -inf }
 0x2b7   :  { %v5543_v51 = vpop.f32.mrb[20].mxu0 }
 0x2b8   :  { %v5544_v53 = vpop.f32.mrb[21].mxu0 }
 0x2b9   :  { %v5545_v55 = vadd.f32 %v5544_v53, %v5543_v51  ;;  %v5546_v56 = vpop.f32.mrb[22].mxu0 }
 0x2ba   :  { %v5547_v57 = vpop.f32.mrb[23].mxu0 }
 0x2bb   :  { %v5548_v58 = vadd.f32 %v5547_v57, %v5546_v56  ;;  %v839_v59 = vsel %vm348_vm2, %v5545_v55, -inf }
 0x2bd   :  { %v840_v60 = vsel %vm348_vm2, %v5548_v58, -inf }
 0x2be   :  { %v844_v61 = vmax.f32 %v839_v59, %v840_v60 }
 0x2bf   :  { %v5549_v62 = vpop.f32.mrb[24].mxu0 }
 0x2c0   :  { %v5550_v63 = vpop.f32.mrb[25].mxu0 }
 0x2c1   :  { %v5551_v0 = vadd.f32 %v5550_v63, %v5549_v62  ;;  %v5552_v1 = vpop.f32.mrb[26].mxu0  ;;  %v6695_v63 = vld [vmem:[%s7861_s6 + $0x40] sm:$0xff]  }
 0x2c2   :  { %v5553_v3 = vpop.f32.mrb[27].mxu0  ;;  %v6705_v1 = vld [vmem:[%s7861_s6 + $0x48] sm:$0xff]  }
 0x2c3   :  { %v841_v7 = vsel %vm348_vm2, %v5551_v0, -inf  ;;  %v6712_v3 = vld [vmem:[%s7861_s6 + $0x8] sm:$0xff]  }
 0x2c4   :  { %v842_v8 = vmax.f32 %v837_v6, %v841_v7  ;;  %v6718_v6 = vld [vmem:[%s7861_s6 + $0x50] sm:$0xff]  }
 0x2c5   :  { %v6724_v7 = vld [vmem:[%s7861_s6 + $0x10] sm:$0xff]  }
 0x2c6   :  { %v843_v11 = vmax.f32 %v842_v8, %v838_v9  ;;  %v6730_v8 = vld [vmem:[%s7861_s6 + $0x58] sm:$0xff]  }
 0x2c7   :  { %v6736_v9 = vld [vmem:[%s7861_s6 + $0x18] sm:$0xff]  }
 0x2c8   :  { %v845_v12 = vmax.f32 %v843_v11, %v844_v61  ;;  %v6676_v61 = vpop.trf.xlu0 }
 0x2ca   :  { %v846_v13 = vrot.slane %v845_v12, 4 }
 0x2cc   :  { %v847_v14 = vmax.f32 %v845_v12, %v846_v13 }
 0x2ce   :  { %v848_v15 = vrot.slane %v847_v14, 2 }
 0x2d0   :  { %v849_v16 = vmax.f32 %v847_v14, %v848_v15 }
 0x2d2   :  { %v850_v17 = vrot.slane %v849_v16, 1 }
 0x2d4   :  { %v851_v31 = vmax.f32 %v849_v16, %v850_v17 }
 0x2d6   :  { %v856_v33 = vsub.f32 %v5551_v0, %v851_v31  ;;  %v852_v34 = vsub.f32 %v5539_v47, %v851_v31  ;;  %v853_v35 = vsub.f32 %v5542_v50, %v851_v31  ;;  %v854_v36 = vsub.f32 %v5545_v55, %v851_v31  ;;  %v67_v50 = vld [vmem:[%s7860_s5] sm:$0xff] }
 0x2d7   :  { %v855_v38 = vsub.f32 %v5548_v58, %v851_v31  ;;  %v6673_v58 = vcombine.high %v67_v50, %v67_v50  ;;  %v5036_v59 = vcombine.low %v67_v50, %v67_v50  ;;  %v6700_v0 = vld [vmem:[%s7861_s6] sm:$0xff]  }
 0x2d8   :  { %v857_v40 = vmul.f32 1.442695, %v852_v34  ;;  %v859_v41 = vmul.f32 1.442695, %v853_v35  ;;  %v861_v43 = vmul.f32 1.442695, %v854_v36 }
 0x2d9   :  { %v863_v45 = vmul.f32 1.442695, %v855_v38  ;;  %v865_v46 = vmul.f32 1.442695, %v856_v33  ;;  %v6681_v62 = vsel %vm358_vm1, %v5036_v59, 0 }
 0x2da   :  { %6211 = vpow2.f32 %v857_v40 }
 0x2db   :  { %6213 = vpow2.f32 %v859_v41 }
 0x2dc   :  { %6215 = vpow2.f32 %v861_v43 }
 0x2dd   :  { %6217 = vpow2.f32 %v863_v45 }
 0x2de   :  { %6219 = vpow2.f32 %v865_v46 }
 0x2e4   :  { %v6212_v48 = vpop.eup %6211 }
 0x2e5   :  { %v6214_v49 = vpop.eup %6213 }
 0x2e6   :  { %v6216_v51 = vpop.eup %6215  ;;  %v867_v53 = vpack.c.bf16 %v6214_v49, %v6212_v48 }
 0x2e7   :  { %v6218_v56 = vpop.eup %6217 }
 0x2e8   :  { %v6220_v57 = vpop.eup %6219  ;;  %5850 = vmatpush3.bf16.msra.mxu1 %v867_v53  ;;  %v868_v47 = vpack.c.bf16 %v6218_v56, %v6216_v51 }
 0x2e9   :  { %5851 = vmatprep.subr.bf16.mxu1 %v7873_v44  ;;  %v869_v55 = vpack.c.bf16 %v6220_v57, %v6220_v57 }
 0x2eb   :  { %v894_v60 = vsel %vm358_vm1, %v869_v55, 0 }
 0x2ec   :  { %5852 = vmatpush3.bf16.msra.mxu1 %v868_v47 }
 0x2ed   :  { %5853 = vmatprep.subr.bf16.mxu1 %v7873_v44 }
 0x2f0   :  { %5854 = vmatpush3.bf16.msra.mxu1 %v894_v60 }
 0x2f1   :  { %5038 = vmatprep.subr.msk.bf16.mxu1 %vm358_vm1, %v6673_v58 }
 0x2f3   :  { %5856 = vmatmul.mubr.msk.bf16.vlgmr.msra.gmra.mrb[20].mxu1 %vm889_vm15, %v6676_v61 }
 0x2f4   :  { %959 = vmatpush1.bf16.msra.mxu1 %v6681_v62  ;;  %990 = vmatprep.mubr.bf16.mxu1 %v7871_v2 }
 0x2f5   :  { %5559 = vmatprep.subr.bf16.mxu1 %v6695_v63 }
 0x2fb   :  { %5039 = vmatmul.mubr.msk.bf16.vlgmr.msra.gmra.mrb[24].mxu1 %vm348_vm2, %v867_v53 }
 0x2fc   :  { %1000 = vmatprep.mubr.bf16.mxu1 %v7871_v2  ;;  %5560 = vmatpush3.bf16.msra.mxu1 %v6700_v0 }
 0x2fd   :  { %5561 = vmatprep.subr.bf16.mxu1 %v6705_v1 }
 0x300   :  { %5562 = vmatpush3.bf16.msra.mxu1 %v6712_v3 }
 0x301   :  { %5563 = vmatprep.subr.bf16.mxu1 %v6718_v6 }
 0x303   :  { %5040 = vmatmul.mubr.msk.bf16.gmra.mrb[28].mxu1 %vm348_vm2, %v868_v47 }
 0x304   :  { %1010 = vmatprep.mubr.bf16.mxu1 %v7871_v2  ;;  %5564 = vmatpush3.bf16.msra.mxu1 %v6724_v7 }
 0x305   :  { %5565 = vmatprep.subr.bf16.mxu1 %v6730_v8 }
 0x308   :  { %5566 = vmatpush3.bf16.msra.mxu1 %v6736_v9 }
 0x30b   :  { %5041 = vmatmul.mubr.msk.bf16.gmra.mrb[32].mxu1 %vm348_vm2, %v869_v55 }
 0x3c6   :  { %v930_v11 = vpop.f32.mrb[20].mxu1 }
 0x3c7   :  { %v931_v12 = vadd.f32 1e-16, %v930_v11  ;;  %v5857_v13 = vpop.f32.mrb[21].mxu1 }
 0x3c8   :  { %v933_v14 = vpop.f32.mrb[22].mxu1 }
 0x3c9   :  { %v934_v15 = vadd.f32 1e-16, %v933_v14  ;;  %v5858_v16 = vpop.f32.mrb[23].mxu1  ;;  %6221 = vrcp.f32 %v931_v12 }
 0x3ca   :  { %v6034_v16 = vld [vmem:[%s7867_s12 + $0x10] sm:$0xff]  }
 0x3cb   :  { %6223 = vrcp.f32 %v934_v15  ;;  %v6032_v15 = vld [vmem:[%s7867_s12 + $0x8] sm:$0xff]  }
 0x3ce   :  { %v992_v17 = vpop.f32.mrb[24].mxu1 }
 0x3cf   :  { %v1019_v31 = vmul.f32 %v992_v17, %v6629_v18  ;;  %v994_v33 = vpop.f32.mrb[25].mxu1  ;;  %v6035_v17 = vld [vmem:[%s7867_s12 + $0x58] sm:$0xff]  }
 0x3d0   :  { %v1020_v34 = vmul.f32 %v994_v33, %v6631_v19  ;;  %v996_v35 = vpop.f32.mrb[26].mxu1  ;;  %v6037_v33 = vld [vmem:[%s7867_s12 + $0x60] sm:$0xff]  }
 0x3d1   :  { %v1021_v36 = vmul.f32 %v996_v35, %v6633_v20  ;;  %v998_v38 = vpop.f32.mrb[27].mxu1  ;;  %v6039_v35 = vld [vmem:[%s7867_s12 + $0x68] sm:$0xff]  }
 0x3d2   :  { %v1022_v40 = vmul.f32 %v998_v38, %v6635_v21  ;;  %v6041_v38 = vld [vmem:[%s7867_s12 + $0x70] sm:$0xff]  }
 0x3d3   :  { %v1029_v41 = vpack.c.bf16 %v1021_v36, %v1019_v31  ;;  %v6222_v43 = vpop.eup %6221  ;;  %v6036_v31 = vld [vmem:[%s7867_s12 + $0x18] sm:$0xff]   ;;  %v6040_v36 = vld [vmem:[%s7867_s12 + $0x28] sm:$0xff]  }
 0x3d4   :  { %v1030_v45 = vpack.c.bf16 %v1022_v40, %v1020_v34  ;;  %v6038_v34 = vld [vmem:[%s7867_s12 + $0x20] sm:$0xff]   ;;  %v6042_v40 = vld [vmem:[%s7867_s12 + $0x30] sm:$0xff]  }
 0x3d5   :  { %v6224_v46 = vpop.eup %6223 }
 0x3d6   :  { %v1002_v48 = vpop.f32.mrb[28].mxu1  ;;  %1041 = vmatprep.subr.bf16.mxu0 %v1030_v45  ;;  %v1084_v49 = vpack.c.bf16 %v6224_v46, %v6222_v43  ;;  %v6044_v43 = vld [vmem:[%s7867_s12 + $0x38] sm:$0xff]   ;;  %v1281_v45 = vmax.f32 %v6508_v26, 0.0  ;;  %v6824_v26 = vld [vmem:[%s7861_s6 + $0x68] sm:$0xff]  }
 0x3d7   :  { %v1023_v51 = vmul.f32 %v1002_v48, %v6637_v22  ;;  %v1004_v53 = vpop.f32.mrb[29].mxu1  ;;  %1042 = vmatpush1.bf16.msra.mxu0 %v1029_v41  ;;  %v6043_v41 = vld [vmem:[%s7867_s12 + $0x78] sm:$0xff]   ;;  %v6813_v48 = vld [vmem:[%s7861_s6 + $0x60] sm:$0xff]  }
 0x3d8   :  { %v1024_v18 = vmul.f32 %v1004_v53, %v6639_v24  ;;  %v1006_v19 = vpop.f32.mrb[30].mxu1  ;;  %v1283_v46 = vpack.c.bf16 %v1281_v45, %v1281_v45  ;;  %5567 = vmatprep.subr.bf16.mxu1 %v6813_v48  ;;  %v6837_v53 = vld [vmem:[%s7861_s6 + $0x70] sm:$0xff]  }
 0x3d9   :  { %v1025_v56 = vmul.f32 %v1006_v19, %v6641_v27  ;;  %v1008_v20 = vpop.f32.mrb[31].mxu1  ;;  %v6029_v27 = vld [vmem:[%s7867_s12 + $0x40] sm:$0xff]   ;;  %v6849_v19 = vld [vmem:[%s7861_s6 + $0x78] sm:$0xff]  }
 0x3da   :  { %v1026_v57 = vmul.f32 %v1008_v20, %v6643_v28  ;;  %v1282_v28 = vmax.f32 %v6513_v29, 0.0  ;;  %v6033_v29 = vld [vmem:[%s7867_s12 + $0x50] sm:$0xff]   ;;  %v6063_v20 = vld [vmem:[%s7864_s9 + $0x24] ss:$8 sps:$4 sm:$0xff]  }
 0x3db   :  { %v1031_v21 = vpack.c.bf16 %v1025_v56, %v1023_v51  ;;  %v6830_v51 = vld [vmem:[%s7861_s6 + $0x28] sm:$0xff]   ;;  %v6854_v56 = vld [vmem:[%s7861_s6 + $0x38] sm:$0xff]  }
 0x3dc   :  { %v1032_v47 = vpack.c.bf16 %v1026_v57, %v1024_v18  ;;  %v1284_v14 = vpack.c.bf16 %v1282_v28, %v1282_v28  ;;  %v6842_v18 = vld [vmem:[%s7861_s6 + $0x30] sm:$0xff]   ;;  %v6061_v57 = vld [vmem:[%s7864_s9 + $0x20] ss:$8 sps:$4 sm:$0xff]  }
 0x3de   :  { %v1012_v50 = vpop.f32.mrb[32].mxu1  ;;  %1043 = vmatprep.subr.bf16.mxu0 %v1032_v47  ;;  %v6064_v47 = vld [vmem:[%s7864_s9 + $0x30] ss:$8 sps:$4 sm:$0xff]  }
 0x3df   :  { %v1027_v55 = vmul.f32 %v1012_v50, %v6645_v30  ;;  %v1014_v59 = vpop.f32.mrb[33].mxu1  ;;  %1044 = vmatpush1.bf16.msra.mxu0 %v1031_v21  ;;  %v6030_v30 = vld [vmem:[%s7867_s12] sm:$0xff]   ;;  %v6066_v21 = vld [vmem:[%s7864_s9 + $0x34] ss:$8 sps:$4 sm:$0xff]  }
 0x3e0   :  { %v1028_v22 = vmul.f32 %v1014_v59, %v6647_v32  ;;  %v1016_v60 = vpop.f32.mrb[34].mxu1  ;;  %v6031_v32 = vld [vmem:[%s7867_s12 + $0x48] sm:$0xff]  }
 0x3e1   :  { %v1033_v11 = vpack.c.bf16 %v1027_v55, %v1027_v55  ;;  %v1017_v12 = vpop.f32.mrb[35].mxu1 }
 0x3e2   :  { %v1034_v24 = vpack.c.bf16 %v1028_v22, %v1028_v22 }
 0x3e3   :  { %v1036_v13 = vsel %vm358_vm1, %v1033_v11, 0 }
 0x3e4   :  { %5042 = vmatprep.subr.msk.bf16.mxu0 %vm358_vm1, %v1034_v24 }
 0x3e5   :  { %1046 = vmatpush1.bf16.msra.mxu0 %v1036_v13 }
 0x3e6   :  { %5044 = vmatprep.subr.msk.bf16.mxu0 %vm358_vm1, %v6673_v58 }
 0x3e8   :  { %5043 = vmatmul.mubr.msk.bf16.vlgmr.msra.gmra.mrb[28].mxu0 %vm889_vm15, %v6676_v61 }
 0x3e9   :  { %1089 = vmatpush1.bf16.msra.mxu0 %v6681_v62  ;;  %1120 = vmatprep.mubr.bf16.mxu0 %v7871_v2 }
 0x3ea   :  { %5581 = vmatprep.subr.bf16.mxu0 %v6029_v27 }
 0x3f0   :  { %5045 = vmatmul.mubr.msk.bf16.vlgmr.msra.gmra.mrb[32].mxu0 %vm348_vm2, %v1084_v49  ;;  %v6818_v49 = vld [vmem:[%s7861_s6 + $0x20] sm:$0xff]  }
 0x3f1   :  { %5582 = vmatpush3.bf16.msra.mxu0 %v6030_v30  ;;  %1452 = vmatprep.mubr.bf16.mxu0 %v1284_v14 }
 0x3f2   :  { %5583 = vmatprep.subr.bf16.mxu0 %v6031_v32  ;;  %5568 = vmatpush3.bf16.msra.mxu1 %v6818_v49 }
 0x3f3   :  { %5569 = vmatprep.subr.bf16.mxu1 %v6824_v26 }
 0x3f5   :  { %5584 = vmatpush3.bf16.msra.mxu0 %v6032_v15 }
 0x3f6   :  { %5585 = vmatprep.subr.bf16.mxu0 %v6033_v29  ;;  %5570 = vmatpush3.bf16.msra.mxu1 %v6830_v51  ;;  %v5063_v29 = vld [vmem:[%s7868_s13] ss:$0 sm:$0xff] }
 0x3f7   :  { %5571 = vmatprep.subr.bf16.mxu1 %v6837_v53 }
 0x3f9   :  { %5586 = vmatpush3.bf16.msra.mxu0 %v6034_v16 }
 0x3fa   :  { %5587 = vmatprep.subr.bf16.mxu0 %v6035_v17  ;;  %5572 = vmatpush3.bf16.msra.mxu1 %v6842_v18 }
 0x3fb   :  { %5573 = vmatprep.subr.bf16.mxu1 %v6849_v19 }
 0x3fd   :  { %5588 = vmatpush3.bf16.msra.mxu0 %v6036_v31 }
 0x3fe   :  { %5589 = vmatprep.subr.bf16.mxu0 %v6037_v33  ;;  %5574 = vmatpush3.bf16.msra.mxu1 %v6854_v56 }
 0x401   :  { %5590 = vmatpush3.bf16.msra.mxu0 %v6038_v34 }
 0x402   :  { %5591 = vmatprep.subr.bf16.mxu0 %v6039_v35 }
 0x405   :  { %5592 = vmatpush3.bf16.msra.mxu0 %v6040_v36  ;;  %v6069_v36 = vld [vmem:[%s7862_s7 + $0x44] ss:$16 sps:$4 sm:$0xff]  }
 0x406   :  { %5593 = vmatprep.subr.bf16.mxu0 %v6041_v38  ;;  %v6067_v38 = vld [vmem:[%s7862_s7 + $0x40] ss:$16 sps:$4 sm:$0xff]   ;;  %1537 = vmatprep.subr.bf16.mxu1 %v6069_v36 }
 0x409   :  { %5594 = vmatpush3.bf16.msra.mxu0 %v6042_v40  ;;  %v6072_v40 = vld [vmem:[%s7862_s7 + $0x64] ss:$16 sps:$4 sm:$0xff]  }
 0x40a   :  { %5595 = vmatprep.subr.bf16.mxu0 %v6043_v41  ;;  %v6070_v41 = vld [vmem:[%s7862_s7 + $0x60] ss:$16 sps:$4 sm:$0xff]  }
 0x40d   :  { %5596 = vmatpush3.bf16.msra.mxu0 %v6044_v43  ;;  %v6075_v43 = vld [vmem:[%s7862_s7 + $0x4c] ss:$16 sps:$4 sm:$0xff]  }
 0x40e   :  { %1651 = vmatprep.subr.bf16.mxu0 %v6063_v20 }
 0x410   :  { %1453 = vmatmul.mubr.bf16.vlgmr.msra.gmra.mrb[36].mxu0 %v1283_v46 }
 0x411   :  { %1683 = vmatprep.mubr.bf16.mxu0 %v7871_v2  ;;  %1652 = vmatpush1.bf16.msra.mxu0 %v6061_v57 }
 0x412   :  { %1653 = vmatprep.subr.bf16.mxu0 %v6066_v21  ;;  %v5046_v21 = vld [vmem:[%s7866_s11] ss:$0 sm:$0xff] }
 0x415   :  { %1654 = vmatpush1.bf16.msra.mxu0 %v6064_v47 }
 0x4bb   :  { %v1075_v50 = vpop.f32.mrb[28].mxu0 }
 0x4bc   :  { %v1077_v55 = vpop.f32.mrb[29].mxu0 }
 0x4bd   :  { %v1079_v59 = vpop.f32.mrb[30].mxu0 }
 0x4be   :  { %v1081_v22 = vpop.f32.mrb[31].mxu0 }
 0x4c3   :  { %v1122_v60 = vpop.f32.mrb[32].mxu0 }
 0x4c4   :  { %v1131_v11 = vmul.f32 %v1122_v60, %v1075_v50  ;;  %v1124_v12 = vpop.f32.mrb[33].mxu0 }
 0x4c5   :  { %v1132_v24 = vmul.f32 %v1124_v12, %v1077_v55  ;;  %v1126_v13 = vpop.f32.mrb[34].mxu0  ;;  %v6076_v12 = vld [vmem:[%s7862_s7 + $0x68] ss:$16 sps:$4 sm:$0xff]  }
 0x4c6   :  { %v1133_v27 = vmul.f32 %v1126_v13, %v1079_v59  ;;  %v1128_v28 = vpop.f32.mrb[35].mxu0 }
 0x4c7   :  { %v1134_v30 = vmul.f32 %v1128_v28, %v1081_v22  ;;  %v6073_v22 = vld [vmem:[%s7862_s7 + $0x48] ss:$16 sps:$4 sm:$0xff]  }
 0x4c8   :  { %v1135_v32 = vpack.c.bf16 %v1133_v27, %v1131_v11  ;;  %v6078_v11 = vld [vmem:[%s7862_s7 + $0x6c] ss:$16 sps:$4 sm:$0xff]  }
 0x4c9   :  { %v1136_v14 = vpack.c.bf16 %v1134_v30, %v1132_v24 }
 0x4cb   :  { %1272 = vmatprep.mubr.bf16.mxu1 %v1136_v14 }
 0x4cc   :  { %1273 = vmatmul.mubr.bf16.vlgmr.msra.gmra.mrb[36].mxu1 %v1135_v32 }
 0x4cd   :  { %1569 = vmatprep.mubr.bf16.mxu1 %v7871_v2  ;;  %1538 = vmatpush1.bf16.msra.mxu1 %v6067_v38 }
 0x4ce   :  { %1539 = vmatprep.subr.bf16.mxu1 %v6072_v40  ;;  %v6079_v40 = vld [vmem:[%s7865_s10 + $0xc0] sm:$0xff]  }
 0x4d1   :  { %1540 = vmatpush1.bf16.msra.mxu1 %v6070_v41 }
 0x4d2   :  { %1580 = vmatprep.subr.bf16.mxu1 %v6075_v43 }
 0x4e3   :  { %v5597_v15 = vpop.f32.mrb[36].mxu0 }
 0x4e4   :  { %v5598_v16 = vpop.f32.mrb[37].mxu0 }
 0x4e5   :  { %v5599_v17 = vadd.f32 %v5598_v16, %v5597_v15  ;;  %v5600_v31 = vpop.f32.mrb[38].mxu0  ;;  %v5088_v15 = vld [vmem:[%s7863_s8 + $0x4] sm:$0xf] }
 0x4e6   :  { %v5601_v33 = vpop.f32.mrb[39].mxu0  ;;  %v1485_v41 = vrot.slane %v5088_v15, %v6525_v39 }
 0x4e7   :  { %v1455_v34 = vadd.f32 %v5599_v17, %v5063_v29  ;;  %v1477_v29 = vrot.slane %v5088_v15, %v6501_v23 }
 0x4e9   :  { %v1461_v35 = vpack.c.bf16 %v1455_v34, %v1455_v34 }
 0x4eb   :  { %5107 = vmatmul.mubr.msk.bf16.vlgmr.msra.gmra.mrb[40].mxu0 %vm175_vm0, %v1461_v35 }
 0x4ec   :  { %1795 = vmatprep.mubr.bf16.mxu0 %v7871_v2 }
 0x59f   :  { %v5575_v45 = vpop.f32.mrb[36].mxu1 }
 0x5a0   :  { %v5576_v46 = vpop.f32.mrb[37].mxu1 }
 0x5a1   :  { %v5577_v20 = vadd.f32 %v5576_v46, %v5575_v45  ;;  %v5578_v57 = vpop.f32.mrb[38].mxu1  ;;  %v1489_v45 = vrot.slane %v5088_v15, %v6527_v42 }
 0x5a2   :  { %v5579_v47 = vpop.f32.mrb[39].mxu1 }
 0x5a3   :  { %v5580_v50 = vadd.f32 %v5579_v47, %v5578_v57  ;;  %v1275_v55 = vadd.f32 %v5577_v20, %v5046_v21  ;;  %v6080_v20 = vld [vmem:[%s7865_s10 + $0x80] sm:$0xff]  }
 0x5a5   :  { %v1278_v59 = vadd.f32 %v5580_v50, %v5046_v21  ;;  %v6081_v21 = vld [vmem:[%s7865_s10 + $0xc8] sm:$0xff]  }
 0x5a7   :  { %v1460_v60 = vpack.c.bf16 %v1278_v59, %v1275_v55 }
 0x5a9   :  { %5097 = vmatmul.mubr.msk.bf16.vlgmr.msra.gmra.mrb[40].mxu1 %vm175_vm0, %v1460_v60 }
 0x5aa   :  { %1581 = vmatpush1.bf16.msra.mxu1 %v6073_v22  ;;  %1612 = vmatprep.mubr.bf16.mxu1 %v7871_v2 }
 0x5ab   :  { %1582 = vmatprep.subr.bf16.mxu1 %v6078_v11  ;;  %v6082_v11 = vld [vmem:[%s7865_s10 + $0x88] sm:$0xff]  }
 0x5ae   :  { %1583 = vmatpush1.bf16.msra.mxu1 %v6076_v12 }
 0x5b1   :  { %5098 = vmatmul.mubr.msk.bf16.vlgmr.msra.gmra.mrb[44].mxu1 %vm175_vm0, %v1460_v60 }
 0x5b2   :  { %1732 = vmatprep.mubr.bf16.mxu1 %v7871_v2 }
 0x5be   :  { %v6907_v24 = vpop.f32.mrb[40].mxu0 }
 0x5bf   :  { %v1692_v13 = vpack.c.bf16 %v6907_v24, %v6907_v24  ;;  %v6911_v27 = vpop.f32.mrb[41].mxu0 }
 0x5c0   :  { %v1693_v28 = vpack.c.bf16 %v6911_v27, %v6911_v27  ;;  %v1689_v30 = vpop.f32.mrb[42].mxu0 }
 0x5c1   :  { %v1690_v32 = vpop.f32.mrb[43].mxu0  ;;  %v1695_v14 = vsel %vm358_vm1, %v1692_v13, 0  ;;  %v6083_v13 = vld [vmem:[%s7865_s10 + $0xd0] sm:$0xff]   ;;  %v6961_v30 = vld [vmem:[%s7858_s3] sm:$0xff]  }
 0x5c2   :  { %5108 = vmatprep.subr.msk.bf16.mxu1 %vm358_vm1, %v1693_v28  ;;  %v6085_v28 = vld [vmem:[%s7865_s10 + $0xd8] sm:$0xff]  }
 0x5c3   :  { %1701 = vmatpush1.bf16.msra.mxu1 %v1695_v14  ;;  %v6086_v32 = vld [vmem:[%s7865_s10 + $0x98] sm:$0xff]   ;;  %v6087_v14 = vld [vmem:[%s7865_s10 + $0xe0] sm:$0xff]  }
 0x5c6   :  { %5109 = vmatmul.mubr.msk.bf16.vlgmr.msra.gmra.mrb[48].mxu1 %vm348_vm2, %v6523_v37  ;;  %v1481_v37 = vrot.slane %v5088_v15, %v6506_v25  ;;  %v6988_v15 = vld [vmem:[%s7858_s3 + $0x10] ss:$0 sps:$4 sm:$0xff]  }
 0x5c7   :  { %1742 = vmatprep.mubr.bf16.mxu1 %v7871_v2  ;;  %7876 = vst [vmem:[#allocation8_spill] sm:$0xff] %v6988_v15 }
 0x5ce   :  { %5110 = vmatmul.mubr.msk.bf16.gmra.mrb[52].mxu1 %vm348_vm2, %v6545_v54 }
 0x5cf   :  { %1752 = vmatprep.mubr.bf16.mxu1 %v7871_v2 }
 0x5d6   :  { %5111 = vmatmul.mubr.msk.bf16.gmra.mrb[56].mxu1 %vm348_vm2, %v6573_v5 }
 0x5d7   :  { %1858 = vmatprep.mubr.bf16.mxu1 %v7871_v2 }
 0x67c   :  { %v1571_v16 = vpop.f32.mrb[40].mxu1 }
 0x67d   :  { %v1573_v17 = vpop.f32.mrb[41].mxu1  ;;  %v1572_v33 = vadd.f32 %v1571_v16, %v1477_v29  ;;  %v6090_v16 = vld [vmem:[%s7865_s10 + $0xa8] sm:$0xff]  }
 0x67e   :  { %v1575_v31 = vpop.f32.mrb[42].mxu1  ;;  %v1574_v35 = vadd.f32 %v1573_v17, %v1481_v37  ;;  %v6092_v17 = vld [vmem:[%s7865_s10 + $0xb0] sm:$0xff]  }
 0x67f   :  { %v1576_v54 = vadd.f32 %v1575_v31, %v1477_v29  ;;  %v1577_v34 = vpop.f32.mrb[43].mxu1  ;;  %v6088_v29 = vld [vmem:[%s7865_s10 + $0xa0] sm:$0xff]   ;;  %v6093_v31 = vld [vmem:[%s7865_s10 + $0xf8] sm:$0xff]  }
 0x680   :  { %v1578_v36 = vadd.f32 %v1577_v34, %v1481_v37  ;;  %v6091_v37 = vld [vmem:[%s7865_s10 + $0xf0] sm:$0xff]  }
 0x681   :  { %v1761_v38 = vpack.c.bf16 %v1576_v54, %v1572_v33  ;;  %v6094_v33 = vld [vmem:[%s7865_s10 + $0xb8] sm:$0xff]  }
 0x682   :  { %v1762_v5 = vpack.c.bf16 %v1578_v36, %v1574_v35 }
 0x684   :  { %v1614_v43 = vpop.f32.mrb[44].mxu1  ;;  %1763 = vmatprep.subr.bf16.mxu0 %v1762_v5 }
 0x685   :  { %v1616_v46 = vpop.f32.mrb[45].mxu1  ;;  %1764 = vmatpush1.bf16.msra.mxu0 %v1761_v38  ;;  %v1615_v47 = vadd.f32 %v1614_v43, %v1485_v41 }
 0x686   :  { %v1618_v57 = vpop.f32.mrb[46].mxu1  ;;  %5603 = vmatprep.subr.bf16.mxu0 %v6079_v40  ;;  %v1617_v59 = vadd.f32 %v1616_v46, %v1489_v45 }
 0x687   :  { %v1619_v50 = vadd.f32 %v1618_v57, %v1485_v41  ;;  %v1620_v55 = vpop.f32.mrb[47].mxu1 }
 0x688   :  { %v1621_v22 = vadd.f32 %v1620_v55, %v1489_v45  ;;  %5112 = vmatmul.mubr.msk.bf16.vlgmr.msra.gmra.mrb[44].mxu0 %vm441_vm3, %v6540_v52  ;;  %v6084_v52 = vld [vmem:[%s7865_s10 + $0x90] sm:$0xff]  }
 0x689   :  { %v1824_v60 = vpack.c.bf16 %v1619_v50, %v1615_v47  ;;  %1805 = vmatprep.mubr.bf16.mxu0 %v7871_v2  ;;  %5604 = vmatpush3.bf16.msra.mxu0 %v6080_v20 }
 0x68a   :  { %v1825_v12 = vpack.c.bf16 %v1621_v22, %v1617_v59  ;;  %5605 = vmatprep.subr.bf16.mxu0 %v6081_v21 }
 0x68c   :  { %1826 = vmatprep.subr.bf16.mxu1 %v1825_v12 }
 0x68d   :  { %1827 = vmatpush1.bf16.msra.mxu1 %v1824_v60  ;;  %5606 = vmatpush3.bf16.msra.mxu0 %v6082_v11 }
 0x68e   :  { %5607 = vmatprep.subr.bf16.mxu0 %v6083_v13  ;;  %5859 = vmatprep.subr.bf16.mxu1 %v7873_v44 }
 0x690   :  { %5115 = vmatmul.mubr.msk.bf16.vlgmr.msra.gmra.mrb[48].mxu1 %vm441_vm3, %v6961_v30  ;;  %5113 = vmatmul.mubr.msk.bf16.gmra.mrb[48].mxu0 %vm441_vm3, %v6568_v4  ;;  %v6978_v4 = vld [vmem:[%s7858_s3 + $0x8] sm:$0xff]  }
 0x691   :  { %1868 = vmatprep.mubr.bf16.mxu1 %v7871_v2  ;;  %1815 = vmatprep.mubr.bf16.mxu0 %v7871_v2 }
 0x692   :  { %5608 = vmatpush3.bf16.msra.mxu0 %v6084_v52 }
 0x693   :  { %5609 = vmatprep.subr.bf16.mxu0 %v6085_v28 }
 0x696   :  { %5610 = vmatpush3.bf16.msra.mxu0 %v6086_v32 }
 0x697   :  { %5611 = vmatprep.subr.bf16.mxu0 %v6087_v14 }
 0x698   :  { %5116 = vmatmul.mubr.msk.bf16.gmra.mrb[52].mxu1 %vm441_vm3, %v6978_v4  ;;  %5114 = vmatmul.mubr.msk.bf16.gmra.mrb[52].mxu0 %vm441_vm3, %v6596_v10  ;;  %v6089_v10 = vld [vmem:[%s7865_s10 + $0xe8] sm:$0xff]  }
 0x699   :  { %1878 = vmatprep.mubr.bf16.mxu1 %v7871_v2 }
 0x69a   :  { %5612 = vmatpush3.bf16.msra.mxu0 %v6088_v29 }
 0x69b   :  { %5613 = vmatprep.subr.bf16.mxu0 %v6089_v10 }
 0x69e   :  { %5614 = vmatpush3.bf16.msra.mxu0 %v6090_v16 }
 0x69f   :  { %5615 = vmatprep.subr.bf16.mxu0 %v6091_v37 }
 0x6a0   :  { %5117 = vmatmul.mubr.msk.bf16.gmra.mrb[56].mxu1 %vm441_vm3, %v6988_v15 }
 0x6a1   :  { %5865 = vmatprep.mubr.msk.bf16.mxu1 %vm6345_vm14, %v7873_v44 }
 0x6a2   :  { %5616 = vmatpush3.bf16.msra.mxu0 %v6092_v17 }
 0x6a3   :  { %5617 = vmatprep.subr.bf16.mxu0 %v6093_v31 }
 0x6a6   :  { %5618 = vmatpush3.bf16.msra.mxu0 %v6094_v33 }
 0x75b   :  { %v7015_v54 = vpop.f32.mrb[44].mxu0 }
 0x75c   :  { %v7017_v34 = vpop.f32.mrb[45].mxu0 }
 0x75d   :  { %v7019_v35 = vpop.f32.mrb[46].mxu0 }
 0x75e   :  { %v7021_v36 = vpop.f32.mrb[47].mxu0 }
 0x763   :  { %v1860_v38 = vpop.f32.mrb[48].mxu1  ;;  %v7023_v5 = vpop.f32.mrb[48].mxu0 }
 0x764   :  { %v1887_v40 = vadd.f32 %v1860_v38, %v7015_v54  ;;  %v1862_v41 = vpop.f32.mrb[49].mxu1  ;;  %v7026_v43 = vpop.f32.mrb[49].mxu0 }
 0x765   :  { %v1888_v45 = vadd.f32 %v1862_v41, %v7017_v34  ;;  %v1864_v46 = vpop.f32.mrb[50].mxu1  ;;  %v7029_v20 = vpop.f32.mrb[50].mxu0 }
 0x766   :  { %v1917_v57 = vmul.f32 0.2, %v1887_v40  ;;  %v1889_v21 = vadd.f32 %v1864_v46, %v7019_v35  ;;  %v1866_v47 = vpop.f32.mrb[51].mxu1  ;;  %v7032_v50 = vpop.f32.mrb[51].mxu0  ;;  %vm1907_vm4 = vcmp.ge.f32.partialorder %v1887_v40, 0.0 }
 0x767   :  { %v1918_v55 = vmul.f32 0.2, %v1888_v45  ;;  %v1890_v59 = vadd.f32 %v1866_v47, %v7021_v36  ;;  %vm1908_vm5 = vcmp.ge.f32.partialorder %v1888_v45, 0.0 }
 0x768   :  { %vm1909_vm6 = vcmp.ge.f32.partialorder %v1889_v21, 0.0  ;;  %v1919_v22 = vmul.f32 0.2, %v1889_v21  ;;  %v1927_v11 = vsel %vm1907_vm4, %v1887_v40, %v1917_v57 }
 0x769   :  { %vm1910_vm7 = vcmp.ge.f32.partialorder %v1890_v59, 0.0  ;;  %v1920_v60 = vmul.f32 0.2, %v1890_v59  ;;  %v1928_v28 = vsel %vm1908_vm5, %v1888_v45, %v1918_v55 }
 0x76a   :  { %v1929_v12 = vsel %vm1909_vm6, %v1889_v21, %v1919_v22 }
 0x76b   :  { %v1937_v13 = vpack.c.bf16 %v1929_v12, %v1927_v11  ;;  %v1870_v52 = vpop.f32.mrb[52].mxu1  ;;  %v1930_v32 = vsel %vm1910_vm7, %v1890_v59, %v1920_v60  ;;  %v7035_v14 = vpop.f32.mrb[52].mxu0 }
 0x76c   :  { %v1891_v29 = vadd.f32 %v1870_v52, %v7023_v5  ;;  %v1872_v10 = vpop.f32.mrb[53].mxu1  ;;  %v1938_v16 = vpack.c.bf16 %v1930_v32, %v1928_v28  ;;  %v7038_v37 = vpop.f32.mrb[53].mxu0 }
 0x76d   :  { %v1892_v17 = vadd.f32 %v1872_v10, %v7026_v43  ;;  %v1874_v31 = vpop.f32.mrb[54].mxu1  ;;  %v1821_v33 = vpop.f32.mrb[54].mxu0 }
 0x76e   :  { %v1921_v38 = vmul.f32 0.2, %v1891_v29  ;;  %v1893_v40 = vadd.f32 %v1874_v31, %v7029_v20  ;;  %v1876_v41 = vpop.f32.mrb[55].mxu1  ;;  %2104 = vmatprep.mubr.bf16.mxu0 %v1938_v16  ;;  %v1822_v46 = vpop.f32.mrb[55].mxu0  ;;  %vm1911_vm8 = vcmp.ge.f32.partialorder %v1891_v29, 0.0 }
 0x76f   :  { %v1922_v45 = vmul.f32 0.2, %v1892_v17  ;;  %v1894_v57 = vadd.f32 %v1876_v41, %v7032_v50  ;;  %2105 = vmatmul.mubr.bf16.vlgmr.msra.gmra.mrb[56].mxu0 %v1937_v13  ;;  %vm1912_vm9 = vcmp.ge.f32.partialorder %v1892_v17, 0.0 }
 0x770   :  { %vm1913_vm10 = vcmp.ge.f32.partialorder %v1893_v40, 0.0  ;;  %v1923_v21 = vmul.f32 0.2, %v1893_v40  ;;  %v1931_v55 = vsel %vm1911_vm8, %v1891_v29, %v1921_v38 }
 0x771   :  { %vm1914_vm11 = vcmp.ge.f32.partialorder %v1894_v57, 0.0  ;;  %v1924_v47 = vmul.f32 0.2, %v1894_v57  ;;  %v1932_v60 = vsel %vm1912_vm9, %v1892_v17, %v1922_v45 }
 0x772   :  { %v1933_v59 = vsel %vm1913_vm10, %v1893_v40, %v1923_v21 }
 0x773   :  { %v1880_v22 = vpop.f32.mrb[56].mxu1  ;;  %v1934_v11 = vsel %vm1914_vm11, %v1894_v57, %v1924_v47  ;;  %v1939_v12 = vpack.c.bf16 %v1933_v59, %v1931_v55 }
 0x774   :  { %v1895_v52 = vadd.f32 %v1880_v22, %v7035_v14  ;;  %v1882_v28 = vpop.f32.mrb[57].mxu1  ;;  %v1940_v32 = vpack.c.bf16 %v1934_v11, %v1932_v60 }
 0x775   :  { %v1896_v10 = vadd.f32 %v1882_v28, %v7038_v37  ;;  %v1884_v16 = vpop.f32.mrb[58].mxu1 }
 0x776   :  { %v1925_v31 = vmul.f32 0.2, %v1895_v52  ;;  %v1885_v13 = vpop.f32.mrb[59].mxu1  ;;  %2112 = vmatprep.mubr.bf16.mxu0 %v1940_v32  ;;  %vm1915_vm12 = vcmp.ge.f32.partialorder %v1895_v52, 0.0 }
 0x777   :  { %vm1916_vm13 = vcmp.ge.f32.partialorder %v1896_v10, 0.0  ;;  %v1926_v33 = vmul.f32 0.2, %v1896_v10  ;;  %2113 = vmatmul.mubr.bf16.gmra.mrb[60].mxu0 %v1939_v12 }
 0x778   :  { %v1935_v40 = vsel %vm1915_vm12, %v1895_v52, %v1925_v31 }
 0x779   :  { %v1936_v29 = vsel %vm1916_vm13, %v1896_v10, %v1926_v33  ;;  %v1941_v17 = vpack.c.bf16 %v1935_v40, %v1935_v40 }
 0x77a   :  { %v1942_v38 = vpack.c.bf16 %v1936_v29, %v1936_v29 }
 0x77c   :  { %2120 = vmatprep.mubr.bf16.mxu0 %v1942_v38 }
 0x77f   :  { %2121 = vmatmul.mubr.bf16.gmra.mrb[64].mxu0 %v1941_v17 }
 0x780   :  { %2330 = vmatprep.mubr.bf16.mxu0 %v7871_v2 }
 0x842   :  { %v5619_v41 = vpop.f32.mrb[56].mxu0 }
 0x843   :  { %v5620_v46 = vpop.f32.mrb[57].mxu0 }
 0x844   :  { %v5621_v45 = vadd.f32 %v5620_v46, %v5619_v41  ;;  %v5622_v57 = vpop.f32.mrb[58].mxu0 }
 0x845   :  { %v5623_v21 = vpop.f32.mrb[59].mxu0 }
 0x846   :  { %v5624_v47 = vadd.f32 %v5623_v21, %v5622_v57  ;;  %v2128_v29 = vsel %vm348_vm2, %v5621_v45, -inf }
 0x848   :  { %v2129_v17 = vsel %vm348_vm2, %v5624_v47, -inf }
 0x84a   :  { %v5625_v55 = vpop.f32.mrb[60].mxu0 }
 0x84b   :  { %v5626_v59 = vpop.f32.mrb[61].mxu0 }
 0x84c   :  { %v5627_v22 = vadd.f32 %v5626_v59, %v5625_v55  ;;  %v5628_v60 = vpop.f32.mrb[62].mxu0 }
 0x84d   :  { %v5629_v11 = vpop.f32.mrb[63].mxu0 }
 0x84e   :  { %v5630_v12 = vadd.f32 %v5629_v11, %v5628_v60  ;;  %v2130_v28 = vsel %vm348_vm2, %v5627_v22, -inf }
 0x850   :  { %v2131_v52 = vsel %vm348_vm2, %v5630_v12, -inf }
 0x851   :  { %v2135_v32 = vmax.f32 %v2130_v28, %v2131_v52 }
 0x852   :  { %v5631_v10 = vpop.f32.mrb[64].mxu0 }
 0x853   :  { %v5632_v16 = vpop.f32.mrb[65].mxu0 }
 0x854   :  { %v5633_v31 = vadd.f32 %v5632_v16, %v5631_v10  ;;  %v5634_v13 = vpop.f32.mrb[66].mxu0 }
 0x855   :  { %v5635_v33 = vpop.f32.mrb[67].mxu0 }
 0x856   :  { %v2132_v38 = vsel %vm348_vm2, %v5633_v31, -inf }
 0x857   :  { %v2133_v40 = vmax.f32 %v2128_v29, %v2132_v38 }
 0x859   :  { %v2134_v41 = vmax.f32 %v2133_v40, %v2129_v17 }
 0x85b   :  { %v2136_v46 = vmax.f32 %v2134_v41, %v2135_v32 }
 0x85d   :  { %v2137_v57 = vrot.slane %v2136_v46, 4 }
 0x85f   :  { %v2138_v21 = vmax.f32 %v2136_v46, %v2137_v57 }
 0x861   :  { %v2139_v55 = vrot.slane %v2138_v21, 2 }
 0x863   :  { %v2140_v59 = vmax.f32 %v2138_v21, %v2139_v55 }
 0x865   :  { %v2141_v60 = vrot.slane %v2140_v59, 1 }
 0x867   :  { %v2142_v11 = vmax.f32 %v2140_v59, %v2141_v60 }
 0x869   :  { %v2147_v28 = vsub.f32 %v5633_v31, %v2142_v11  ;;  %v2143_v52 = vsub.f32 %v5621_v45, %v2142_v11  ;;  %v2144_v10 = vsub.f32 %v5624_v47, %v2142_v11  ;;  %v2145_v16 = vsub.f32 %v5627_v22, %v2142_v11 }
 0x86a   :  { %v2146_v13 = vsub.f32 %v5630_v12, %v2142_v11  ;;  %v7877_v47 = vmov 0.0  }
 0x86b   :  { %v2148_v33 = vmul.f32 1.442695, %v2143_v52  ;;  %v2150_v2 = vmul.f32 1.442695, %v2144_v10  ;;  %v2152_v44 = vmul.f32 1.442695, %v2145_v16 }
 0x86c   :  { %v2154_v15 = vmul.f32 1.442695, %v2146_v13  ;;  %v2156_v29 = vmul.f32 1.442695, %v2147_v28 }
 0x86d   :  { %6225 = vpow2.f32 %v2148_v33 }
 0x86e   :  { %6227 = vpow2.f32 %v2150_v2  ;;  %v7878_v2 = vmov 0  }
 0x86f   :  { %6229 = vpow2.f32 %v2152_v44 }
 0x870   :  { %6231 = vpow2.f32 %v2154_v15 }
 0x871   :  { %6233 = vpow2.f32 %v2156_v29 }
 0x877   :  { %v6226_v32 = vpop.eup %6225 }
 0x878   :  { %v6228_v38 = vpop.eup %6227 }
 0x879   :  { %v6230_v40 = vpop.eup %6229  ;;  %v2158_v17 = vpack.c.bf16 %v6228_v38, %v6226_v32  ;;  %v6098_v38 = vld [vmem:[%s7867_s12 + $0x88] sm:$0xff]  }
 0x87a   :  { %v6232_v41 = vpop.eup %6231 }
 0x87b   :  { %v6234_v31 = vpop.eup %6233  ;;  %5860 = vmatpush3.bf16.msra.mxu1 %v2158_v17  ;;  %v2159_v45 = vpack.c.bf16 %v6232_v41, %v6230_v40  ;;  %v6100_v40 = vld [vmem:[%s7867_s12 + $0x90] sm:$0xff]   ;;  %v6102_v41 = vld [vmem:[%s7867_s12 + $0x98] sm:$0xff]  }
 0x87c   :  { %5861 = vmatprep.subr.bf16.mxu1 %v7877_v47  ;;  %v2160_v22 = vpack.c.bf16 %v6234_v31, %v6234_v31  ;;  %v6103_v31 = vld [vmem:[%s7867_s12 + $0xe0] sm:$0xff]  }
 0x87e   :  { %v2162_v12 = vsel %vm358_vm1, %v2160_v22, 0 }
 0x87f   :  { %5862 = vmatpush3.bf16.msra.mxu1 %v2159_v45 }
 0x880   :  { %5863 = vmatprep.subr.bf16.mxu1 %v7877_v47 }
 0x883   :  { %5864 = vmatpush3.bf16.msra.mxu1 %v2162_v12  ;;  %v6106_v12 = vld [vmem:[%s7867_s12 + $0xa8] sm:$0xff]  }
 0x884   :  { %5167 = vmatprep.subr.msk.bf16.mxu1 %vm358_vm1, %v6673_v58 }
 0x886   :  { %5866 = vmatmul.mubr.msk.bf16.vlgmr.msra.gmra.mrb[60].mxu1 %vm889_vm15, %v6676_v61 }
 0x887   :  { %2216 = vmatpush1.bf16.msra.mxu1 %v6681_v62  ;;  %2247 = vmatprep.mubr.bf16.mxu1 %v7878_v2 }
 0x888   :  { %5641 = vmatprep.subr.bf16.mxu1 %v6695_v63 }
 0x88e   :  { %5168 = vmatmul.mubr.msk.bf16.vlgmr.msra.gmra.mrb[64].mxu1 %vm348_vm2, %v2158_v17  ;;  %v6101_v17 = vld [vmem:[%s7867_s12 + $0xd8] sm:$0xff]  }
 0x88f   :  { %2257 = vmatprep.mubr.bf16.mxu1 %v7878_v2  ;;  %5642 = vmatpush3.bf16.msra.mxu1 %v6700_v0 }
 0x890   :  { %5643 = vmatprep.subr.bf16.mxu1 %v6705_v1 }
 0x893   :  { %5644 = vmatpush3.bf16.msra.mxu1 %v6712_v3 }
 0x894   :  { %5645 = vmatprep.subr.bf16.mxu1 %v6718_v6 }
 0x896   :  { %5169 = vmatmul.mubr.msk.bf16.gmra.mrb[68].mxu1 %vm348_vm2, %v2159_v45  ;;  %v6104_v45 = vld [vmem:[%s7867_s12 + $0xa0] sm:$0xff]  }
 0x897   :  { %2267 = vmatprep.mubr.bf16.mxu1 %v7878_v2  ;;  %5646 = vmatpush3.bf16.msra.mxu1 %v6724_v7 }
 0x898   :  { %5647 = vmatprep.subr.bf16.mxu1 %v6730_v8 }
 0x89b   :  { %5648 = vmatpush3.bf16.msra.mxu1 %v6736_v9 }
 0x89c   :  { %5649 = vmatprep.subr.bf16.mxu1 %v6813_v48 }
 0x89e   :  { %5170 = vmatmul.mubr.msk.bf16.gmra.mrb[72].mxu1 %vm348_vm2, %v2160_v22  ;;  %v6105_v22 = vld [vmem:[%s7867_s12 + $0xe8] sm:$0xff]  }
 0x89f   :  { %5650 = vmatpush3.bf16.msra.mxu1 %v6818_v49 }
 0x8a0   :  { %5651 = vmatprep.subr.bf16.mxu1 %v6824_v26 }
 0x8a3   :  { %5652 = vmatpush3.bf16.msra.mxu1 %v6830_v51 }
 0x8a4   :  { %5653 = vmatprep.subr.bf16.mxu1 %v6837_v53 }
 0x8a7   :  { %5654 = vmatpush3.bf16.msra.mxu1 %v6842_v18 }
 0x8a8   :  { %5655 = vmatprep.subr.bf16.mxu1 %v6849_v19 }
 0x8ab   :  { %5656 = vmatpush3.bf16.msra.mxu1 %v6854_v56 }
 0x959   :  { %v2198_v44 = vpop.f32.mrb[60].mxu1 }
 0x95a   :  { %v2199_v63 = vadd.f32 1e-16, %v2198_v44  ;;  %v5867_v0 = vpop.f32.mrb[61].mxu1  ;;  %v6107_v44 = vld [vmem:[%s7867_s12 + $0xf0] sm:$0xff]  }
 0x95b   :  { %v2201_v1 = vpop.f32.mrb[62].mxu1  ;;  %v6109_v0 = vld [vmem:[%s7867_s12 + $0xf8] sm:$0xff]  }
 0x95c   :  { %v2202_v3 = vadd.f32 1e-16, %v2201_v1  ;;  %v5868_v6 = vpop.f32.mrb[63].mxu1  ;;  %6235 = vrcp.f32 %v2199_v63  ;;  %v6108_v63 = vld [vmem:[%s7867_s12 + $0xb0] sm:$0xff]   ;;  %v6110_v1 = vld [vmem:[%s7867_s12 + $0xb8] sm:$0xff]  }
 0x95e   :  { %6237 = vrcp.f32 %v2202_v3  ;;  %v2443_v3 = vmax.f32 %v6907_v24, 0.0  ;;  %v6116_v24 = vld [vmem:[%s7864_s9 + $0x54] ss:$8 sps:$4 sm:$0xff]  }
 0x960   :  { %v2445_v6 = vpack.c.bf16 %v2443_v3, %v2443_v3  ;;  %v7213_v3 = vld [vmem:[%s7859_s4] sm:$0xff]  }
 0x961   :  { %v2249_v7 = vpop.f32.mrb[64].mxu1 }
 0x962   :  { %v2276_v8 = vmul.f32 %v2249_v7, %v7015_v54  ;;  %v2251_v9 = vpop.f32.mrb[65].mxu1  ;;  %v6113_v7 = vld [vmem:[%s7864_s9 + $0x44] ss:$8 sps:$4 sm:$0xff]  }
 0x963   :  { %v2277_v48 = vmul.f32 %v2251_v9, %v7017_v34  ;;  %v2253_v49 = vpop.f32.mrb[66].mxu1  ;;  %v6114_v9 = vld [vmem:[%s7864_s9 + $0x50] ss:$8 sps:$4 sm:$0xff]  }
 0x964   :  { %v2278_v26 = vmul.f32 %v2253_v49, %v7019_v35  ;;  %v2255_v51 = vpop.f32.mrb[67].mxu1 }
 0x965   :  { %v2279_v53 = vmul.f32 %v2255_v51, %v7021_v36 }
 0x966   :  { %v2286_v18 = vpack.c.bf16 %v2278_v26, %v2276_v8  ;;  %v6236_v19 = vpop.eup %6235  ;;  %v6111_v8 = vld [vmem:[%s7864_s9 + $0x40] ss:$8 sps:$4 sm:$0xff]  }
 0x967   :  { %v2287_v56 = vpack.c.bf16 %v2279_v53, %v2277_v48 }
 0x968   :  { %v6238_v15 = vpop.eup %6237 }
 0x969   :  { %v2259_v46 = vpop.f32.mrb[68].mxu1  ;;  %2298 = vmatprep.subr.bf16.mxu0 %v2287_v56  ;;  %v2341_v57 = vpack.c.bf16 %v6238_v15, %v6236_v19 }
 0x96a   :  { %v2280_v21 = vmul.f32 %v2259_v46, %v7023_v5  ;;  %v2261_v55 = vpop.f32.mrb[69].mxu1  ;;  %2299 = vmatpush1.bf16.msra.mxu0 %v2286_v18 }
 0x96b   :  { %v2281_v54 = vmul.f32 %v2261_v55, %v7026_v43  ;;  %v2263_v34 = vpop.f32.mrb[70].mxu1 }
 0x96c   :  { %v2282_v59 = vmul.f32 %v2263_v34, %v7029_v20  ;;  %v2265_v35 = vpop.f32.mrb[71].mxu1  ;;  %v6095_v20 = vld [vmem:[%s7867_s12 + $0xc0] sm:$0xff]  }
 0x96d   :  { %v2283_v60 = vmul.f32 %v2265_v35, %v7032_v50  ;;  %v2444_v50 = vmax.f32 %v6911_v27, 0.0  ;;  %v6099_v27 = vld [vmem:[%s7867_s12 + $0xd0] sm:$0xff]  }
 0x96e   :  { %v2288_v36 = vpack.c.bf16 %v2282_v59, %v2280_v21  ;;  %v5210_v59 = vld [vmem:[%s7868_s13 + $0x1] ss:$0 sm:$0xff] }
 0x96f   :  { %v2289_v11 = vpack.c.bf16 %v2283_v60, %v2281_v54  ;;  %v2446_v32 = vpack.c.bf16 %v2444_v50, %v2444_v50 }
 0x971   :  { %v2269_v28 = vpop.f32.mrb[72].mxu1  ;;  %2300 = vmatprep.subr.bf16.mxu0 %v2289_v11 }
 0x972   :  { %v2284_v52 = vmul.f32 %v2269_v28, %v7035_v14  ;;  %v2271_v10 = vpop.f32.mrb[73].mxu1  ;;  %2301 = vmatpush1.bf16.msra.mxu0 %v2288_v36  ;;  %v6096_v14 = vld [vmem:[%s7867_s12 + $0x80] sm:$0xff]  }
 0x973   :  { %v2285_v5 = vmul.f32 %v2271_v10, %v7038_v37  ;;  %v2273_v16 = vpop.f32.mrb[74].mxu1  ;;  %v6097_v37 = vld [vmem:[%s7867_s12 + $0xc8] sm:$0xff]   ;;  %v6119_v10 = vld [vmem:[%s7862_s7 + $0x84] ss:$16 sps:$4 sm:$0xff]  }
 0x974   :  { %v2290_v13 = vpack.c.bf16 %v2284_v52, %v2284_v52  ;;  %v2274_v33 = vpop.f32.mrb[75].mxu1  ;;  %2701 = vmatprep.subr.bf16.mxu1 %v6119_v10  ;;  %v6122_v16 = vld [vmem:[%s7862_s7 + $0xa4] ss:$16 sps:$4 sm:$0xff]  }
 0x975   :  { %v2291_v43 = vpack.c.bf16 %v2285_v5, %v2285_v5  ;;  %v6117_v5 = vld [vmem:[%s7862_s7 + $0x80] ss:$16 sps:$4 sm:$0xff]   ;;  %v6125_v33 = vld [vmem:[%s7862_s7 + $0x8c] ss:$16 sps:$4 sm:$0xff]  }
 0x976   :  { %v2293_v29 = vsel %vm358_vm1, %v2290_v13, 0  ;;  %v6120_v13 = vld [vmem:[%s7862_s7 + $0xa0] ss:$16 sps:$4 sm:$0xff]  }
 0x977   :  { %5171 = vmatprep.subr.msk.bf16.mxu0 %vm358_vm1, %v2291_v43 }
 0x978   :  { %2303 = vmatpush1.bf16.msra.mxu0 %v2293_v29 }
 0x979   :  { %5173 = vmatprep.subr.msk.bf16.mxu0 %vm358_vm1, %v6673_v58 }
 0x97b   :  { %5172 = vmatmul.mubr.msk.bf16.vlgmr.msra.gmra.mrb[68].mxu0 %vm889_vm15, %v6676_v61 }
 0x97c   :  { %2346 = vmatpush1.bf16.msra.mxu0 %v6681_v62  ;;  %2377 = vmatprep.mubr.bf16.mxu0 %v7878_v2 }
 0x97d   :  { %5663 = vmatprep.subr.bf16.mxu0 %v6095_v20 }
 0x983   :  { %5174 = vmatmul.mubr.msk.bf16.vlgmr.msra.gmra.mrb[72].mxu0 %vm348_vm2, %v2341_v57 }
 0x984   :  { %5664 = vmatpush3.bf16.msra.mxu0 %v6096_v14  ;;  %2616 = vmatprep.mubr.bf16.mxu0 %v2446_v32  ;;  %v5176_v14 = vld [vmem:[%s7866_s11 + $0x1] ss:$0 sm:$0xff] }
 0x985   :  { %5665 = vmatprep.subr.bf16.mxu0 %v6097_v37 }
 0x988   :  { %5666 = vmatpush3.bf16.msra.mxu0 %v6098_v38 }
 0x989   :  { %5667 = vmatprep.subr.bf16.mxu0 %v6099_v27 }
 0x98c   :  { %5668 = vmatpush3.bf16.msra.mxu0 %v6100_v40  ;;  %v6123_v40 = vld [vmem:[%s7862_s7 + $0x88] ss:$16 sps:$4 sm:$0xff]  }
 0x98d   :  { %5669 = vmatprep.subr.bf16.mxu0 %v6101_v17 }
 0x990   :  { %5670 = vmatpush3.bf16.msra.mxu0 %v6102_v41  ;;  %v6128_v41 = vld [vmem:[%s7862_s7 + $0xac] ss:$16 sps:$4 sm:$0xff]  }
 0x991   :  { %5671 = vmatprep.subr.bf16.mxu0 %v6103_v31  ;;  %v6126_v31 = vld [vmem:[%s7862_s7 + $0xa8] ss:$16 sps:$4 sm:$0xff]  }
 0x994   :  { %5672 = vmatpush3.bf16.msra.mxu0 %v6104_v45 }
 0x995   :  { %5673 = vmatprep.subr.bf16.mxu0 %v6105_v22 }
 0x998   :  { %5674 = vmatpush3.bf16.msra.mxu0 %v6106_v12 }
 0x999   :  { %5675 = vmatprep.subr.bf16.mxu0 %v6107_v44 }
 0x99c   :  { %5676 = vmatpush3.bf16.msra.mxu0 %v6108_v63 }
 0x99d   :  { %5677 = vmatprep.subr.bf16.mxu0 %v6109_v0 }
 0x9a0   :  { %5678 = vmatpush3.bf16.msra.mxu0 %v6110_v1 }
 0x9a1   :  { %2815 = vmatprep.subr.bf16.mxu0 %v6113_v7  ;;  %v7229_v7 = vld [vmem:[%s7859_s4 + $0x10] ss:$0 sps:$4 sm:$0xff]  }
 0x9a3   :  { %2617 = vmatmul.mubr.bf16.vlgmr.msra.gmra.mrb[76].mxu0 %v2445_v6  ;;  %v7221_v6 = vld [vmem:[%s7859_s4 + $0x8] sm:$0xff]  }
 0x9a4   :  { %2847 = vmatprep.mubr.bf16.mxu0 %v7878_v2  ;;  %2816 = vmatpush1.bf16.msra.mxu0 %v6111_v8  ;;  %v5235_v8 = vld [vmem:[%s7863_s8 + $0x8] sm:$0xf] }
 0x9a5   :  { %2817 = vmatprep.subr.bf16.mxu0 %v6116_v24  ;;  %v2641_v24 = vrot.slane %v5235_v8, %v6501_v23 }
 0x9a8   :  { %2818 = vmatpush1.bf16.msra.mxu0 %v6114_v9 }
 0xa4e   :  { %v2332_v48 = vpop.f32.mrb[68].mxu0 }
 0xa4f   :  { %v2334_v49 = vpop.f32.mrb[69].mxu0 }
 0xa50   :  { %v2336_v26 = vpop.f32.mrb[70].mxu0 }
 0xa51   :  { %v2338_v51 = vpop.f32.mrb[71].mxu0 }
 0xa56   :  { %v2379_v53 = vpop.f32.mrb[72].mxu0 }
 0xa57   :  { %v2388_v18 = vmul.f32 %v2379_v53, %v2332_v48  ;;  %v2381_v19 = vpop.f32.mrb[73].mxu0  ;;  %v2645_v48 = vrot.slane %v5235_v8, %v6506_v25 }
 0xa58   :  { %v2389_v56 = vmul.f32 %v2381_v19, %v2334_v49  ;;  %v2383_v15 = vpop.f32.mrb[74].mxu0 }
 0xa59   :  { %v2390_v46 = vmul.f32 %v2383_v15, %v2336_v26  ;;  %v2385_v57 = vpop.f32.mrb[75].mxu0 }
 0xa5a   :  { %v2391_v21 = vmul.f32 %v2385_v57, %v2338_v51  ;;  %v6129_v57 = vld [vmem:[%s7865_s10 + $0x140] sm:$0xff]  }
 0xa5b   :  { %v2392_v55 = vpack.c.bf16 %v2390_v46, %v2388_v18 }
 0xa5c   :  { %v2393_v54 = vpack.c.bf16 %v2391_v21, %v2389_v56  ;;  %v2649_v21 = vrot.slane %v5235_v8, %v6525_v39 }
 0xa5e   :  { %2434 = vmatprep.mubr.bf16.mxu1 %v2393_v54  ;;  %v2653_v54 = vrot.slane %v5235_v8, %v6527_v42 }
 0xa5f   :  { %2435 = vmatmul.mubr.bf16.vlgmr.msra.gmra.mrb[76].mxu1 %v2392_v55 }
 0xa60   :  { %2733 = vmatprep.mubr.bf16.mxu1 %v7878_v2  ;;  %2702 = vmatpush1.bf16.msra.mxu1 %v6117_v5  ;;  %v7253_v5 = vld [vmem:[%s7857_s2] sm:$0xff]  }
 0xa61   :  { %2703 = vmatprep.subr.bf16.mxu1 %v6122_v16 }
 0xa64   :  { %2704 = vmatpush1.bf16.msra.mxu1 %v6120_v13  ;;  %v6132_v13 = vld [vmem:[%s7865_s10 + $0x108] sm:$0xff]  }
 0xa65   :  { %2744 = vmatprep.subr.bf16.mxu1 %v6125_v33 }
 0xa76   :  { %v5679_v34 = vpop.f32.mrb[76].mxu0 }
 0xa77   :  { %v5680_v35 = vpop.f32.mrb[77].mxu0 }
 0xa78   :  { %v5681_v60 = vadd.f32 %v5680_v35, %v5679_v34  ;;  %v5682_v36 = vpop.f32.mrb[78].mxu0 }
 0xa79   :  { %v5683_v11 = vpop.f32.mrb[79].mxu0 }
 0xa7a   :  { %v2619_v28 = vadd.f32 %v5681_v60, %v5210_v59  ;;  %v6130_v59 = vld [vmem:[%s7865_s10 + $0x100] sm:$0xff]   ;;  %v6131_v60 = vld [vmem:[%s7865_s10 + $0x148] sm:$0xff]  }
 0xa7c   :  { %v2625_v52 = vpack.c.bf16 %v2619_v28, %v2619_v28 }
 0xa7e   :  { %5254 = vmatmul.mubr.msk.bf16.vlgmr.msra.gmra.mrb[80].mxu0 %vm175_vm0, %v2625_v52 }
 0xa7f   :  { %2959 = vmatprep.mubr.bf16.mxu0 %v7878_v2 }
 0xb32   :  { %v5657_v43 = vpop.f32.mrb[76].mxu1 }
 0xb33   :  { %v5658_v29 = vpop.f32.mrb[77].mxu1 }
 0xb34   :  { %v5659_v20 = vadd.f32 %v5658_v29, %v5657_v43  ;;  %v5660_v50 = vpop.f32.mrb[78].mxu1  ;;  %v6133_v43 = vld [vmem:[%s7865_s10 + $0x150] sm:$0xff]  }
 0xb35   :  { %v5661_v37 = vpop.f32.mrb[79].mxu1  ;;  %v6134_v29 = vld [vmem:[%s7865_s10 + $0x110] sm:$0xff]  }
 0xb36   :  { %v5662_v32 = vadd.f32 %v5661_v37, %v5660_v50  ;;  %v2437_v38 = vadd.f32 %v5659_v20, %v5176_v14  ;;  %v6135_v20 = vld [vmem:[%s7865_s10 + $0x158] sm:$0xff]   ;;  %v7276_v50 = vld [vmem:[%s7857_s2 + $0x8] sm:$0xff]   ;;  %v7293_v37 = vld [vmem:[%s7857_s2 + $0x10] ss:$0 sps:$4 sm:$0xff]  }
 0xb38   :  { %v2440_v27 = vadd.f32 %v5662_v32, %v5176_v14  ;;  %v6136_v14 = vld [vmem:[%s7865_s10 + $0x118] sm:$0xff]  }
 0xb39   :  { %v7879_v32 = vld [vmem:[#allocation8_spill] sm:$0xff] }
 0xb3a   :  { %v2624_v17 = vpack.c.bf16 %v2440_v27, %v2437_v38  ;;  %v6139_v38 = vld [vmem:[%s7865_s10 + $0x168] sm:$0xff]  }
 0xb3b   :  { %v6140_v27 = vld [vmem:[%s7865_s10 + $0x128] sm:$0xff]  }
 0xb3c   :  { %5244 = vmatmul.mubr.msk.bf16.vlgmr.msra.gmra.mrb[80].mxu1 %vm175_vm0, %v2624_v17 }
 0xb3d   :  { %2745 = vmatpush1.bf16.msra.mxu1 %v6123_v40  ;;  %2776 = vmatprep.mubr.bf16.mxu1 %v7878_v2  ;;  %v6141_v40 = vld [vmem:[%s7865_s10 + $0x170] sm:$0xff]  }
 0xb3e   :  { %2746 = vmatprep.subr.bf16.mxu1 %v6128_v41  ;;  %v6143_v41 = vld [vmem:[%s7865_s10 + $0x178] sm:$0xff]  }
 0xb41   :  { %2747 = vmatpush1.bf16.msra.mxu1 %v6126_v31  ;;  %v6144_v31 = vld [vmem:[%s7865_s10 + $0x138] sm:$0xff]  }
 0xb44   :  { %5245 = vmatmul.mubr.msk.bf16.vlgmr.msra.gmra.mrb[84].mxu1 %vm175_vm0, %v2624_v17  ;;  %v6142_v17 = vld [vmem:[%s7865_s10 + $0x130] sm:$0xff]  }
 0xb45   :  { %2896 = vmatprep.mubr.bf16.mxu1 %v7878_v2 }
 0xb51   :  { %v7200_v45 = vpop.f32.mrb[80].mxu0 }
 0xb52   :  { %v2856_v22 = vpack.c.bf16 %v7200_v45, %v7200_v45  ;;  %v7204_v12 = vpop.f32.mrb[81].mxu0 }
 0xb53   :  { %v2857_v44 = vpack.c.bf16 %v7204_v12, %v7204_v12  ;;  %v2853_v63 = vpop.f32.mrb[82].mxu0 }
 0xb54   :  { %v2854_v0 = vpop.f32.mrb[83].mxu0  ;;  %v2859_v1 = vsel %vm358_vm1, %v2856_v22, 0 }
 0xb55   :  { %5255 = vmatprep.subr.msk.bf16.mxu1 %vm358_vm1, %v2857_v44 }
 0xb56   :  { %2865 = vmatpush1.bf16.msra.mxu1 %v2859_v1 }
 0xb59   :  { %5256 = vmatmul.mubr.msk.bf16.vlgmr.msra.gmra.mrb[88].mxu1 %vm348_vm2, %v7213_v3 }
 0xb5a   :  { %2906 = vmatprep.mubr.bf16.mxu1 %v7878_v2 }
 0xb61   :  { %5257 = vmatmul.mubr.msk.bf16.gmra.mrb[92].mxu1 %vm348_vm2, %v7221_v6 }
 0xb62   :  { %2916 = vmatprep.mubr.bf16.mxu1 %v7878_v2 }
 0xb69   :  { %5258 = vmatmul.mubr.msk.bf16.gmra.mrb[96].mxu1 %vm348_vm2, %v7229_v7 }
 0xb6a   :  { %3022 = vmatprep.mubr.bf16.mxu1 %v7878_v2 }
 0xc0f   :  { %v2735_v9 = vpop.f32.mrb[80].mxu1 }
 0xc10   :  { %v2737_v49 = vpop.f32.mrb[81].mxu1  ;;  %v2736_v51 = vadd.f32 %v2735_v9, %v2641_v24 }
 0xc11   :  { %v2739_v26 = vpop.f32.mrb[82].mxu1  ;;  %v2738_v19 = vadd.f32 %v2737_v49, %v2645_v48 }
 0xc12   :  { %v2740_v53 = vadd.f32 %v2739_v26, %v2641_v24  ;;  %v2741_v18 = vpop.f32.mrb[83].mxu1 }
 0xc13   :  { %v2742_v56 = vadd.f32 %v2741_v18, %v2645_v48 }
 0xc14   :  { %v2925_v15 = vpack.c.bf16 %v2740_v53, %v2736_v51 }
 0xc15   :  { %v2926_v46 = vpack.c.bf16 %v2742_v56, %v2738_v19 }
 0xc17   :  { %v2778_v55 = vpop.f32.mrb[84].mxu1  ;;  %2927 = vmatprep.subr.bf16.mxu0 %v2926_v46 }
 0xc18   :  { %v2780_v34 = vpop.f32.mrb[85].mxu1  ;;  %2928 = vmatpush1.bf16.msra.mxu0 %v2925_v15  ;;  %v2779_v36 = vadd.f32 %v2778_v55, %v2649_v21 }
 0xc19   :  { %v2782_v35 = vpop.f32.mrb[86].mxu1  ;;  %5685 = vmatprep.subr.bf16.mxu0 %v6129_v57  ;;  %v2781_v52 = vadd.f32 %v2780_v34, %v2653_v54 }
 0xc1a   :  { %v2783_v11 = vadd.f32 %v2782_v35, %v2649_v21  ;;  %v2784_v28 = vpop.f32.mrb[87].mxu1 }
 0xc1b   :  { %v2785_v10 = vadd.f32 %v2784_v28, %v2653_v54  ;;  %5259 = vmatmul.mubr.msk.bf16.vlgmr.msra.gmra.mrb[84].mxu0 %vm441_vm3, %v7253_v5 }
 0xc1c   :  { %v2988_v16 = vpack.c.bf16 %v2783_v11, %v2779_v36  ;;  %2969 = vmatprep.mubr.bf16.mxu0 %v7878_v2  ;;  %5686 = vmatpush3.bf16.msra.mxu0 %v6130_v59 }
 0xc1d   :  { %v2989_v33 = vpack.c.bf16 %v2785_v10, %v2781_v52  ;;  %5687 = vmatprep.subr.bf16.mxu0 %v6131_v60 }
 0xc1f   :  { %2990 = vmatprep.subr.bf16.mxu1 %v2989_v33 }
 0xc20   :  { %2991 = vmatpush1.bf16.msra.mxu1 %v2988_v16  ;;  %5688 = vmatpush3.bf16.msra.mxu0 %v6132_v13 }
 0xc21   :  { %5689 = vmatprep.subr.bf16.mxu0 %v6133_v43  ;;  %5869 = vmatprep.subr.bf16.mxu1 %v7877_v47 }
 0xc23   :  { %5262 = vmatmul.mubr.msk.bf16.vlgmr.msra.gmra.mrb[88].mxu1 %vm441_vm3, %v6961_v30  ;;  %5260 = vmatmul.mubr.msk.bf16.gmra.mrb[88].mxu0 %vm441_vm3, %v7276_v50  ;;  %v6137_v30 = vld [vmem:[%s7865_s10 + $0x160] sm:$0xff]  }
 0xc24   :  { %3032 = vmatprep.mubr.bf16.mxu1 %v7878_v2  ;;  %2979 = vmatprep.mubr.bf16.mxu0 %v7878_v2 }
 0xc25   :  { %5690 = vmatpush3.bf16.msra.mxu0 %v6134_v29 }
 0xc26   :  { %5691 = vmatprep.subr.bf16.mxu0 %v6135_v20 }
 0xc29   :  { %5692 = vmatpush3.bf16.msra.mxu0 %v6136_v14 }
 0xc2a   :  { %5693 = vmatprep.subr.bf16.mxu0 %v6137_v30 }
 0xc2b   :  { %5263 = vmatmul.mubr.msk.bf16.gmra.mrb[92].mxu1 %vm441_vm3, %v6978_v4  ;;  %5261 = vmatmul.mubr.msk.bf16.gmra.mrb[92].mxu0 %vm441_vm3, %v7293_v37  ;;  %v6138_v4 = vld [vmem:[%s7865_s10 + $0x120] sm:$0xff]  }
 0xc2c   :  { %3042 = vmatprep.mubr.bf16.mxu1 %v7878_v2 }
 0xc2d   :  { %5694 = vmatpush3.bf16.msra.mxu0 %v6138_v4 }
 0xc2e   :  { %5695 = vmatprep.subr.bf16.mxu0 %v6139_v38 }
 0xc31   :  { %5696 = vmatpush3.bf16.msra.mxu0 %v6140_v27 }
 0xc32   :  { %5697 = vmatprep.subr.bf16.mxu0 %v6141_v40 }
 0xc33   :  { %5264 = vmatmul.mubr.msk.bf16.gmra.mrb[96].mxu1 %vm441_vm3, %v7879_v32 }
 0xc34   :  { %5875 = vmatprep.mubr.msk.bf16.mxu1 %vm6345_vm14, %v7877_v47 }
 0xc35   :  { %5698 = vmatpush3.bf16.msra.mxu0 %v6142_v17 }
 0xc36   :  { %5699 = vmatprep.subr.bf16.mxu0 %v6143_v41 }
 0xc39   :  { %5700 = vmatpush3.bf16.msra.mxu0 %v6144_v31 }
 0xcee   :  { %v7323_v22 = vpop.f32.mrb[84].mxu0 }
 0xcef   :  { %v7325_v44 = vpop.f32.mrb[85].mxu0 }
 0xcf0   :  { %v7327_v63 = vpop.f32.mrb[86].mxu0 }
 0xcf1   :  { %v7329_v0 = vpop.f32.mrb[87].mxu0 }
 0xcf6   :  { %v3024_v1 = vpop.f32.mrb[88].mxu1  ;;  %v7331_v8 = vpop.f32.mrb[88].mxu0 }
 0xcf7   :  { %v3051_v24 = vadd.f32 %v3024_v1, %v7323_v22  ;;  %v3026_v9 = vpop.f32.mrb[89].mxu1  ;;  %v7334_v48 = vpop.f32.mrb[89].mxu0 }
 0xcf8   :  { %v3052_v49 = vadd.f32 %v3026_v9, %v7325_v44  ;;  %v3028_v26 = vpop.f32.mrb[90].mxu1  ;;  %v7337_v51 = vpop.f32.mrb[90].mxu0 }
 0xcf9   :  { %v3081_v53 = vmul.f32 0.2, %v3051_v24  ;;  %v3053_v18 = vadd.f32 %v3028_v26, %v7327_v63  ;;  %v3030_v19 = vpop.f32.mrb[91].mxu1  ;;  %v7340_v56 = vpop.f32.mrb[91].mxu0  ;;  %vm3071_vm4 = vcmp.ge.f32.partialorder %v3051_v24, 0.0 }
 0xcfa   :  { %v3082_v15 = vmul.f32 0.2, %v3052_v49  ;;  %v3054_v46 = vadd.f32 %v3030_v19, %v7329_v0  ;;  %vm3072_vm5 = vcmp.ge.f32.partialorder %v3052_v49, 0.0 }
 0xcfb   :  { %vm3073_vm6 = vcmp.ge.f32.partialorder %v3053_v18, 0.0  ;;  %v3083_v57 = vmul.f32 0.2, %v3053_v18  ;;  %v3091_v55 = vsel %vm3071_vm4, %v3051_v24, %v3081_v53 }
 0xcfc   :  { %vm3074_vm7 = vcmp.ge.f32.partialorder %v3054_v46, 0.0  ;;  %v3084_v21 = vmul.f32 0.2, %v3054_v46  ;;  %v3092_v35 = vsel %vm3072_vm5, %v3052_v49, %v3082_v15 }
 0xcfd   :  { %v3093_v54 = vsel %vm3073_vm6, %v3053_v18, %v3083_v57 }
 0xcfe   :  { %v3101_v34 = vpack.c.bf16 %v3093_v54, %v3091_v55  ;;  %v3034_v59 = vpop.f32.mrb[92].mxu1  ;;  %v3094_v60 = vsel %vm3074_vm7, %v3054_v46, %v3084_v21  ;;  %v7343_v36 = vpop.f32.mrb[92].mxu0 }
 0xcff   :  { %v3055_v11 = vadd.f32 %v3034_v59, %v7331_v8  ;;  %v3036_v28 = vpop.f32.mrb[93].mxu1  ;;  %v3102_v52 = vpack.c.bf16 %v3094_v60, %v3092_v35  ;;  %v7346_v10 = vpop.f32.mrb[93].mxu0 }
 0xd00   :  { %v3056_v16 = vadd.f32 %v3036_v28, %v7334_v48  ;;  %v3038_v13 = vpop.f32.mrb[94].mxu1  ;;  %v2985_v33 = vpop.f32.mrb[94].mxu0 }
 0xd01   :  { %v3085_v43 = vmul.f32 0.2, %v3055_v11  ;;  %v3057_v29 = vadd.f32 %v3038_v13, %v7337_v51  ;;  %v3040_v20 = vpop.f32.mrb[95].mxu1  ;;  %3268 = vmatprep.mubr.bf16.mxu0 %v3102_v52  ;;  %v2986_v14 = vpop.f32.mrb[95].mxu0  ;;  %vm3075_vm8 = vcmp.ge.f32.partialorder %v3055_v11, 0.0 }
 0xd02   :  { %v3086_v30 = vmul.f32 0.2, %v3056_v16  ;;  %v3058_v32 = vadd.f32 %v3040_v20, %v7340_v56  ;;  %3269 = vmatmul.mubr.bf16.vlgmr.msra.gmra.mrb[96].mxu0 %v3101_v34  ;;  %vm3076_vm9 = vcmp.ge.f32.partialorder %v3056_v16, 0.0 }
 0xd03   :  { %vm3077_vm10 = vcmp.ge.f32.partialorder %v3057_v29, 0.0  ;;  %v3087_v4 = vmul.f32 0.2, %v3057_v29  ;;  %v3095_v27 = vsel %vm3075_vm8, %v3055_v11, %v3085_v43 }
 0xd04   :  { %vm3078_vm11 = vcmp.ge.f32.partialorder %v3058_v32, 0.0  ;;  %v3088_v38 = vmul.f32 0.2, %v3058_v32  ;;  %v3096_v41 = vsel %vm3076_vm9, %v3056_v16, %v3086_v30 }
 0xd05   :  { %v3097_v40 = vsel %vm3077_vm10, %v3057_v29, %v3087_v4 }
 0xd06   :  { %v3044_v17 = vpop.f32.mrb[96].mxu1  ;;  %v3098_v31 = vsel %vm3078_vm11, %v3058_v32, %v3088_v38  ;;  %v3103_v1 = vpack.c.bf16 %v3097_v40, %v3095_v27 }
 0xd07   :  { %v3059_v24 = vadd.f32 %v3044_v17, %v7343_v36  ;;  %v3046_v9 = vpop.f32.mrb[97].mxu1  ;;  %v3104_v49 = vpack.c.bf16 %v3098_v31, %v3096_v41 }
 0xd08   :  { %v3060_v26 = vadd.f32 %v3046_v9, %v7346_v10  ;;  %v3048_v53 = vpop.f32.mrb[98].mxu1 }
 0xd09   :  { %v3089_v18 = vmul.f32 0.2, %v3059_v24  ;;  %v3049_v19 = vpop.f32.mrb[99].mxu1  ;;  %3276 = vmatprep.mubr.bf16.mxu0 %v3104_v49  ;;  %vm3079_vm12 = vcmp.ge.f32.partialorder %v3059_v24, 0.0 }
 0xd0a   :  { %vm3080_vm13 = vcmp.ge.f32.partialorder %v3060_v26, 0.0  ;;  %v3090_v15 = vmul.f32 0.2, %v3060_v26  ;;  %3277 = vmatmul.mubr.bf16.gmra.mrb[100].mxu0 %v3103_v1 }
 0xd0b   :  { %v3099_v21 = vsel %vm3079_vm12, %v3059_v24, %v3089_v18 }
 0xd0c   :  { %v3100_v46 = vsel %vm3080_vm13, %v3060_v26, %v3090_v15  ;;  %v3105_v55 = vpack.c.bf16 %v3099_v21, %v3099_v21 }
 0xd0d   :  { %v3106_v57 = vpack.c.bf16 %v3100_v46, %v3100_v46 }
 0xd0f   :  { %3284 = vmatprep.mubr.bf16.mxu0 %v3106_v57 }
 0xd12   :  { %3285 = vmatmul.mubr.bf16.gmra.mrb[104].mxu0 %v3105_v55 }
 0xd13   :  { %3494 = vmatprep.mubr.bf16.mxu0 %v7878_v2 }
 0xdd5   :  { %v5701_v54 = vpop.f32.mrb[96].mxu0 }
 0xdd6   :  { %v5702_v34 = vpop.f32.mrb[97].mxu0 }
 0xdd7   :  { %v5703_v59 = vadd.f32 %v5702_v34, %v5701_v54  ;;  %v5704_v35 = vpop.f32.mrb[98].mxu0 }
 0xdd8   :  { %v5705_v60 = vpop.f32.mrb[99].mxu0 }
 0xdd9   :  { %v5706_v11 = vadd.f32 %v5705_v60, %v5704_v35  ;;  %v3292_v40 = vsel %vm348_vm2, %v5703_v59, -inf }
 0xddb   :  { %v3293_v31 = vsel %vm348_vm2, %v5706_v11, -inf }
 0xddd   :  { %v5707_v28 = vpop.f32.mrb[100].mxu0 }
 0xdde   :  { %v5708_v52 = vpop.f32.mrb[101].mxu0 }
 0xddf   :  { %v5709_v16 = vadd.f32 %v5708_v52, %v5707_v28  ;;  %v5710_v13 = vpop.f32.mrb[102].mxu0 }
 0xde0   :  { %v5711_v33 = vpop.f32.mrb[103].mxu0 }
 0xde1   :  { %v5712_v43 = vadd.f32 %v5711_v33, %v5710_v13  ;;  %v3294_v29 = vsel %vm348_vm2, %v5709_v16, -inf }
 0xde3   :  { %v3295_v20 = vsel %vm348_vm2, %v5712_v43, -inf }
 0xde4   :  { %v3299_v14 = vmax.f32 %v3294_v29, %v3295_v20 }
 0xde5   :  { %v5713_v30 = vpop.f32.mrb[104].mxu0 }
 0xde6   :  { %v5714_v32 = vpop.f32.mrb[105].mxu0 }
 0xde7   :  { %v5715_v4 = vadd.f32 %v5714_v32, %v5713_v30  ;;  %v5716_v38 = vpop.f32.mrb[106].mxu0  ;;  %v7379_v30 = vld [vmem:[%s7861_s6] sm:$0xff]   ;;  %v7385_v32 = vld [vmem:[%s7861_s6 + $0x48] sm:$0xff]  }
 0xde8   :  { %v5717_v27 = vpop.f32.mrb[107].mxu0  ;;  %v7397_v38 = vld [vmem:[%s7861_s6 + $0x50] sm:$0xff]  }
 0xde9   :  { %v3296_v17 = vsel %vm348_vm2, %v5715_v4, -inf  ;;  %v7405_v27 = vld [vmem:[%s7861_s6 + $0x10] sm:$0xff]  }
 0xdea   :  { %v3297_v41 = vmax.f32 %v3292_v40, %v3296_v17  ;;  %v7411_v40 = vld [vmem:[%s7861_s6 + $0x58] sm:$0xff]  }
 0xdeb   :  { %v7417_v17 = vld [vmem:[%s7861_s6 + $0x18] sm:$0xff]  }
 0xdec   :  { %v3298_v1 = vmax.f32 %v3297_v41, %v3293_v31  ;;  %v7423_v41 = vld [vmem:[%s7861_s6 + $0x60] sm:$0xff]  }
 0xded   :  { %v7430_v31 = vld [vmem:[%s7861_s6 + $0x20] sm:$0xff]  }
 0xdee   :  { %v3300_v24 = vmax.f32 %v3298_v1, %v3299_v14  ;;  %v7436_v1 = vld [vmem:[%s7861_s6 + $0x68] sm:$0xff]  }
 0xdf0   :  { %v3301_v9 = vrot.slane %v3300_v24, 4 }
 0xdf2   :  { %v3302_v49 = vmax.f32 %v3300_v24, %v3301_v9  ;;  %v7442_v24 = vld [vmem:[%s7861_s6 + $0x28] sm:$0xff]   ;;  %v7448_v9 = vld [vmem:[%s7861_s6 + $0x70] sm:$0xff]  }
 0xdf4   :  { %v3303_v26 = vrot.slane %v3302_v49, 2 }
 0xdf6   :  { %v3304_v53 = vmax.f32 %v3302_v49, %v3303_v26  ;;  %v7454_v49 = vld [vmem:[%s7861_s6 + $0x30] sm:$0xff]   ;;  %v7460_v26 = vld [vmem:[%s7861_s6 + $0x78] sm:$0xff]  }
 0xdf8   :  { %v3305_v18 = vrot.slane %v3304_v53, 1 }
 0xdfa   :  { %v3306_v19 = vmax.f32 %v3304_v53, %v3305_v18  ;;  %v7466_v53 = vld [vmem:[%s7861_s6 + $0x38] sm:$0xff]  }
 0xdfc   :  { %v3311_v15 = vsub.f32 %v5715_v4, %v3306_v19  ;;  %v3307_v46 = vsub.f32 %v5703_v59, %v3306_v19  ;;  %v3308_v57 = vsub.f32 %v5706_v11, %v3306_v19  ;;  %v3309_v21 = vsub.f32 %v5709_v16, %v3306_v19  ;;  %v7391_v4 = vld [vmem:[%s7861_s6 + $0x8] sm:$0xff]  }
 0xdfd   :  { %v3310_v55 = vsub.f32 %v5712_v43, %v3306_v19  ;;  %v7371_v43 = vld [vmem:[%s7861_s6 + $0x40] sm:$0xff]  }
 0xdfe   :  { %v3312_v54 = vmul.f32 1.442695, %v3307_v46  ;;  %v3314_v34 = vmul.f32 1.442695, %v3308_v57  ;;  %v3316_v35 = vmul.f32 1.442695, %v3309_v21 }
 0xdff   :  { %v3318_v60 = vmul.f32 1.442695, %v3310_v55  ;;  %v3320_v28 = vmul.f32 1.442695, %v3311_v15 }
 0xe00   :  { %6239 = vpow2.f32 %v3312_v54 }
 0xe01   :  { %6241 = vpow2.f32 %v3314_v34 }
 0xe02   :  { %6243 = vpow2.f32 %v3316_v35 }
 0xe03   :  { %6245 = vpow2.f32 %v3318_v60 }
 0xe04   :  { %6247 = vpow2.f32 %v3320_v28 }
 0xe0a   :  { %v6240_v52 = vpop.eup %6239 }
 0xe0b   :  { %v6242_v13 = vpop.eup %6241 }
 0xe0c   :  { %v6244_v33 = vpop.eup %6243  ;;  %v3322_v29 = vpack.c.bf16 %v6242_v13, %v6240_v52 }
 0xe0d   :  { %v6246_v20 = vpop.eup %6245 }
 0xe0e   :  { %v6248_v14 = vpop.eup %6247  ;;  %5870 = vmatpush3.bf16.msra.mxu1 %v3322_v29  ;;  %v3323_v59 = vpack.c.bf16 %v6246_v20, %v6244_v33 }
 0xe0f   :  { %5871 = vmatprep.subr.bf16.mxu1 %v7877_v47  ;;  %v3324_v11 = vpack.c.bf16 %v6248_v14, %v6248_v14 }
 0xe11   :  { %v3326_v16 = vsel %vm358_vm1, %v3324_v11, 0 }
 0xe12   :  { %5872 = vmatpush3.bf16.msra.mxu1 %v3323_v59 }
 0xe13   :  { %5873 = vmatprep.subr.bf16.mxu1 %v7877_v47 }
 0xe16   :  { %5874 = vmatpush3.bf16.msra.mxu1 %v3326_v16 }
 0xe17   :  { %5314 = vmatprep.subr.msk.bf16.mxu1 %vm358_vm1, %v6673_v58 }
 0xe19   :  { %5876 = vmatmul.mubr.msk.bf16.vlgmr.msra.gmra.mrb[100].mxu1 %vm889_vm15, %v6676_v61 }
 0xe1a   :  { %3380 = vmatpush1.bf16.msra.mxu1 %v6681_v62  ;;  %3411 = vmatprep.mubr.bf16.mxu1 %v7878_v2 }
 0xe1b   :  { %5723 = vmatprep.subr.bf16.mxu1 %v7371_v43 }
 0xe21   :  { %5315 = vmatmul.mubr.msk.bf16.vlgmr.msra.gmra.mrb[104].mxu1 %vm348_vm2, %v3322_v29 }
 0xe22   :  { %3421 = vmatprep.mubr.bf16.mxu1 %v7878_v2  ;;  %5724 = vmatpush3.bf16.msra.mxu1 %v7379_v30 }
 0xe23   :  { %5725 = vmatprep.subr.bf16.mxu1 %v7385_v32 }
 0xe26   :  { %5726 = vmatpush3.bf16.msra.mxu1 %v7391_v4 }
 0xe27   :  { %5727 = vmatprep.subr.bf16.mxu1 %v7397_v38 }
 0xe29   :  { %5316 = vmatmul.mubr.msk.bf16.gmra.mrb[108].mxu1 %vm348_vm2, %v3323_v59 }
 0xe2a   :  { %3431 = vmatprep.mubr.bf16.mxu1 %v7878_v2  ;;  %5728 = vmatpush3.bf16.msra.mxu1 %v7405_v27 }
 0xe2b   :  { %5729 = vmatprep.subr.bf16.mxu1 %v7411_v40 }
 0xe2e   :  { %5730 = vmatpush3.bf16.msra.mxu1 %v7417_v17 }
 0xe2f   :  { %5731 = vmatprep.subr.bf16.mxu1 %v7423_v41 }
 0xe31   :  { %5317 = vmatmul.mubr.msk.bf16.gmra.mrb[112].mxu1 %vm348_vm2, %v3324_v11 }
 0xe32   :  { %5732 = vmatpush3.bf16.msra.mxu1 %v7430_v31 }
 0xe33   :  { %5733 = vmatprep.subr.bf16.mxu1 %v7436_v1 }
 0xe36   :  { %5734 = vmatpush3.bf16.msra.mxu1 %v7442_v24 }
 0xe37   :  { %5735 = vmatprep.subr.bf16.mxu1 %v7448_v9 }
 0xe3a   :  { %5736 = vmatpush3.bf16.msra.mxu1 %v7454_v49 }
 0xe3b   :  { %5737 = vmatprep.subr.bf16.mxu1 %v7460_v26 }
 0xe3e   :  { %5738 = vmatpush3.bf16.msra.mxu1 %v7466_v53 }
 0xeec   :  { %v3362_v18 = vpop.f32.mrb[100].mxu1 }
 0xeed   :  { %v3363_v19 = vadd.f32 1e-16, %v3362_v18  ;;  %v5877_v15 = vpop.f32.mrb[101].mxu1 }
 0xeee   :  { %v3365_v46 = vpop.f32.mrb[102].mxu1 }
 0xeef   :  { %v3366_v57 = vadd.f32 1e-16, %v3365_v46  ;;  %v5878_v21 = vpop.f32.mrb[103].mxu1  ;;  %6249 = vrcp.f32 %v3363_v19 }
 0xef1   :  { %6251 = vrcp.f32 %v3366_v57 }
 0xef4   :  { %v3413_v55 = vpop.f32.mrb[104].mxu1 }
 0xef5   :  { %v3440_v54 = vmul.f32 %v3413_v55, %v7323_v22  ;;  %v3415_v34 = vpop.f32.mrb[105].mxu1 }
 0xef6   :  { %v3441_v35 = vmul.f32 %v3415_v34, %v7325_v44  ;;  %v3417_v60 = vpop.f32.mrb[106].mxu1 }
 0xef7   :  { %v3442_v28 = vmul.f32 %v3417_v60, %v7327_v63  ;;  %v3419_v52 = vpop.f32.mrb[107].mxu1 }
 0xef8   :  { %v3443_v13 = vmul.f32 %v3419_v52, %v7329_v0  ;;  %v6148_v52 = vld [vmem:[%s7867_s12 + $0x108] sm:$0xff]  }
 0xef9   :  { %v3450_v33 = vpack.c.bf16 %v3442_v28, %v3440_v54  ;;  %v6250_v29 = vpop.eup %6249 }
 0xefa   :  { %v3451_v20 = vpack.c.bf16 %v3443_v13, %v3441_v35  ;;  %v6150_v13 = vld [vmem:[%s7867_s12 + $0x110] sm:$0xff]  }
 0xefb   :  { %v6252_v14 = vpop.eup %6251 }
 0xefc   :  { %v3423_v59 = vpop.f32.mrb[108].mxu1  ;;  %3462 = vmatprep.subr.bf16.mxu0 %v3451_v20  ;;  %v3505_v11 = vpack.c.bf16 %v6252_v14, %v6250_v29  ;;  %v6152_v29 = vld [vmem:[%s7867_s12 + $0x118] sm:$0xff]   ;;  %v6153_v20 = vld [vmem:[%s7867_s12 + $0x160] sm:$0xff]  }
 0xefd   :  { %v3444_v16 = vmul.f32 %v3423_v59, %v7331_v8  ;;  %v3425_v18 = vpop.f32.mrb[109].mxu1  ;;  %3463 = vmatpush1.bf16.msra.mxu0 %v3450_v33  ;;  %v6151_v33 = vld [vmem:[%s7867_s12 + $0x158] sm:$0xff]   ;;  %v6154_v14 = vld [vmem:[%s7867_s12 + $0x120] sm:$0xff]   ;;  %v6155_v59 = vld [vmem:[%s7867_s12 + $0x168] sm:$0xff]  }
 0xefe   :  { %v3445_v22 = vmul.f32 %v3425_v18, %v7334_v48  ;;  %v3427_v44 = vpop.f32.mrb[110].mxu1  ;;  %v6158_v18 = vld [vmem:[%s7867_s12 + $0x130] sm:$0xff]  }
 0xeff   :  { %v3446_v19 = vmul.f32 %v3427_v44, %v7337_v51  ;;  %v3429_v63 = vpop.f32.mrb[111].mxu1  ;;  %v6145_v51 = vld [vmem:[%s7867_s12 + $0x140] sm:$0xff]   ;;  %v6160_v44 = vld [vmem:[%s7867_s12 + $0x138] sm:$0xff]  }
 0xf00   :  { %v3447_v15 = vmul.f32 %v3429_v63, %v7340_v56  ;;  %v3608_v56 = vmax.f32 %v7204_v12, 0.0  ;;  %v6149_v12 = vld [vmem:[%s7867_s12 + $0x150] sm:$0xff]  }
 0xf01   :  { %v3452_v0 = vpack.c.bf16 %v3446_v19, %v3444_v16  ;;  %v6157_v16 = vld [vmem:[%s7867_s12 + $0x170] sm:$0xff]   ;;  %v3607_v19 = vmax.f32 %v7200_v45, 0.0 }
 0xf02   :  { %v3453_v46 = vpack.c.bf16 %v3447_v15, %v3445_v22  ;;  %v3610_v28 = vpack.c.bf16 %v3608_v56, %v3608_v56  ;;  %v6159_v22 = vld [vmem:[%s7867_s12 + $0x178] sm:$0xff]   ;;  %v6163_v15 = vld [vmem:[%s7864_s9 + $0x64] ss:$8 sps:$4 sm:$0xff]  }
 0xf03   :  { %v3609_v63 = vpack.c.bf16 %v3607_v19, %v3607_v19  ;;  %v6166_v45 = vld [vmem:[%s7864_s9 + $0x74] ss:$8 sps:$4 sm:$0xff]  }
 0xf04   :  { %v3433_v57 = vpop.f32.mrb[112].mxu1  ;;  %3464 = vmatprep.subr.bf16.mxu0 %v3453_v46  ;;  %v6164_v46 = vld [vmem:[%s7864_s9 + $0x70] ss:$8 sps:$4 sm:$0xff]  }
 0xf05   :  { %v3448_v21 = vmul.f32 %v3433_v57, %v7343_v36  ;;  %v3435_v55 = vpop.f32.mrb[113].mxu1  ;;  %3465 = vmatpush1.bf16.msra.mxu0 %v3452_v0  ;;  %v6146_v36 = vld [vmem:[%s7867_s12 + $0x100] sm:$0xff]  }
 0xf06   :  { %v3449_v8 = vmul.f32 %v3435_v55, %v7346_v10  ;;  %v3437_v54 = vpop.f32.mrb[114].mxu1  ;;  %v6147_v10 = vld [vmem:[%s7867_s12 + $0x148] sm:$0xff]  }
 0xf07   :  { %v3454_v34 = vpack.c.bf16 %v3448_v21, %v3448_v21  ;;  %v3438_v35 = vpop.f32.mrb[115].mxu1  ;;  %v6161_v0 = vld [vmem:[%s7864_s9 + $0x60] ss:$8 sps:$4 sm:$0xff]  }
 0xf08   :  { %v3455_v48 = vpack.c.bf16 %v3449_v8, %v3449_v8 }
 0xf09   :  { %v3457_v60 = vsel %vm358_vm1, %v3454_v34, 0 }
 0xf0a   :  { %5318 = vmatprep.subr.msk.bf16.mxu0 %vm358_vm1, %v3455_v48 }
 0xf0b   :  { %3467 = vmatpush1.bf16.msra.mxu0 %v3457_v60 }
 0xf0c   :  { %5320 = vmatprep.subr.msk.bf16.mxu0 %vm358_vm1, %v6673_v58 }
 0xf0e   :  { %5319 = vmatmul.mubr.msk.bf16.vlgmr.msra.gmra.mrb[108].mxu0 %vm889_vm15, %v6676_v61 }
 0xf0f   :  { %3510 = vmatpush1.bf16.msra.mxu0 %v6681_v62  ;;  %3541 = vmatprep.mubr.bf16.mxu0 %v7878_v2 }
 0xf10   :  { %5745 = vmatprep.subr.bf16.mxu0 %v6145_v51 }
 0xf16   :  { %5321 = vmatmul.mubr.msk.bf16.vlgmr.msra.gmra.mrb[112].mxu0 %vm348_vm2, %v3505_v11  ;;  %v6156_v11 = vld [vmem:[%s7867_s12 + $0x128] sm:$0xff]  }
 0xf17   :  { %5746 = vmatpush3.bf16.msra.mxu0 %v6146_v36  ;;  %3780 = vmatprep.mubr.bf16.mxu0 %v3610_v28 }
 0xf18   :  { %5747 = vmatprep.subr.bf16.mxu0 %v6147_v10 }
 0xf1b   :  { %5748 = vmatpush3.bf16.msra.mxu0 %v6148_v52 }
 0xf1c   :  { %5749 = vmatprep.subr.bf16.mxu0 %v6149_v12  ;;  %v5357_v12 = vld [vmem:[%s7868_s13 + $0x2] ss:$0 sm:$0xff] }
 0xf1f   :  { %5750 = vmatpush3.bf16.msra.mxu0 %v6150_v13 }
 0xf20   :  { %5751 = vmatprep.subr.bf16.mxu0 %v6151_v33 }
 0xf23   :  { %5752 = vmatpush3.bf16.msra.mxu0 %v6152_v29 }
 0xf24   :  { %5753 = vmatprep.subr.bf16.mxu0 %v6153_v20 }
 0xf27   :  { %5754 = vmatpush3.bf16.msra.mxu0 %v6154_v14 }
 0xf28   :  { %5755 = vmatprep.subr.bf16.mxu0 %v6155_v59 }
 0xf2b   :  { %5756 = vmatpush3.bf16.msra.mxu0 %v6156_v11  ;;  %v6169_v11 = vld [vmem:[%s7862_s7 + $0xc4] ss:$16 sps:$4 sm:$0xff]  }
 0xf2c   :  { %5757 = vmatprep.subr.bf16.mxu0 %v6157_v16  ;;  %v6167_v16 = vld [vmem:[%s7862_s7 + $0xc0] ss:$16 sps:$4 sm:$0xff]   ;;  %3865 = vmatprep.subr.bf16.mxu1 %v6169_v11 }
 0xf2f   :  { %5758 = vmatpush3.bf16.msra.mxu0 %v6158_v18  ;;  %v6172_v18 = vld [vmem:[%s7862_s7 + $0xe4] ss:$16 sps:$4 sm:$0xff]  }
 0xf30   :  { %5759 = vmatprep.subr.bf16.mxu0 %v6159_v22  ;;  %v6170_v22 = vld [vmem:[%s7862_s7 + $0xe0] ss:$16 sps:$4 sm:$0xff]  }
 0xf33   :  { %5760 = vmatpush3.bf16.msra.mxu0 %v6160_v44  ;;  %v6175_v44 = vld [vmem:[%s7862_s7 + $0xcc] ss:$16 sps:$4 sm:$0xff]  }
 0xf34   :  { %3979 = vmatprep.subr.bf16.mxu0 %v6163_v15 }
 0xf36   :  { %3781 = vmatmul.mubr.bf16.vlgmr.msra.gmra.mrb[116].mxu0 %v3609_v63 }
 0xf37   :  { %4011 = vmatprep.mubr.bf16.mxu0 %v7878_v2  ;;  %3980 = vmatpush1.bf16.msra.mxu0 %v6161_v0 }
 0xf38   :  { %3981 = vmatprep.subr.bf16.mxu0 %v6166_v45  ;;  %v5323_v45 = vld [vmem:[%s7866_s11 + $0x2] ss:$0 sm:$0xff] }
 0xf3b   :  { %3982 = vmatpush1.bf16.msra.mxu0 %v6164_v46 }
 0xfe1   :  { %v3496_v57 = vpop.f32.mrb[108].mxu0 }
 0xfe2   :  { %v3498_v21 = vpop.f32.mrb[109].mxu0 }
 0xfe3   :  { %v3500_v55 = vpop.f32.mrb[110].mxu0 }
 0xfe4   :  { %v3502_v8 = vpop.f32.mrb[111].mxu0 }
 0xfe9   :  { %v3543_v54 = vpop.f32.mrb[112].mxu0 }
 0xfea   :  { %v3552_v34 = vmul.f32 %v3543_v54, %v3496_v57  ;;  %v3545_v35 = vpop.f32.mrb[113].mxu0 }
 0xfeb   :  { %v3553_v48 = vmul.f32 %v3545_v35, %v3498_v21  ;;  %v3547_v60 = vpop.f32.mrb[114].mxu0  ;;  %v6176_v35 = vld [vmem:[%s7862_s7 + $0xe8] ss:$16 sps:$4 sm:$0xff]  }
 0xfec   :  { %v3554_v51 = vmul.f32 %v3547_v60, %v3500_v55  ;;  %v3549_v56 = vpop.f32.mrb[115].mxu0 }
 0xfed   :  { %v3555_v36 = vmul.f32 %v3549_v56, %v3502_v8  ;;  %v6173_v8 = vld [vmem:[%s7862_s7 + $0xc8] ss:$16 sps:$4 sm:$0xff]  }
 0xfee   :  { %v3556_v10 = vpack.c.bf16 %v3554_v51, %v3552_v34  ;;  %v6178_v34 = vld [vmem:[%s7862_s7 + $0xec] ss:$16 sps:$4 sm:$0xff]  }
 0xfef   :  { %v3557_v28 = vpack.c.bf16 %v3555_v36, %v3553_v48 }
 0xff1   :  { %3598 = vmatprep.mubr.bf16.mxu1 %v3557_v28 }
 0xff2   :  { %3599 = vmatmul.mubr.bf16.vlgmr.msra.gmra.mrb[116].mxu1 %v3556_v10 }
 0xff3   :  { %3897 = vmatprep.mubr.bf16.mxu1 %v7878_v2  ;;  %3866 = vmatpush1.bf16.msra.mxu1 %v6167_v16 }
 0xff4   :  { %3867 = vmatprep.subr.bf16.mxu1 %v6172_v18  ;;  %v6179_v18 = vld [vmem:[%s7865_s10 + $0x1c0] sm:$0xff]  }
 0xff7   :  { %3868 = vmatpush1.bf16.msra.mxu1 %v6170_v22 }
 0xff8   :  { %3908 = vmatprep.subr.bf16.mxu1 %v6175_v44 }
0x1009   :  { %v5761_v52 = vpop.f32.mrb[116].mxu0 }
0x100a   :  { %v5762_v13 = vpop.f32.mrb[117].mxu0 }
0x100b   :  { %v5763_v33 = vadd.f32 %v5762_v13, %v5761_v52  ;;  %v5764_v29 = vpop.f32.mrb[118].mxu0  ;;  %v5382_v52 = vld [vmem:[%s7863_s8 + $0xc] sm:$0xf] }
0x100c   :  { %v5765_v20 = vpop.f32.mrb[119].mxu0  ;;  %v3813_v22 = vrot.slane %v5382_v52, %v6525_v39 }
0x100d   :  { %v3783_v14 = vadd.f32 %v5763_v33, %v5357_v12  ;;  %v3805_v12 = vrot.slane %v5382_v52, %v6501_v23  ;;  %v3817_v23 = vrot.slane %v5382_v52, %v6527_v42 }
0x100f   :  { %v3789_v59 = vpack.c.bf16 %v3783_v14, %v3783_v14 }
0x1011   :  { %5401 = vmatmul.mubr.msk.bf16.vlgmr.msra.gmra.mrb[120].mxu0 %vm175_vm0, %v3789_v59 }
0x1012   :  { %4123 = vmatprep.mubr.bf16.mxu0 %v7878_v2 }
0x10c5   :  { %v5739_v19 = vpop.f32.mrb[116].mxu1 }
0x10c6   :  { %v5740_v63 = vpop.f32.mrb[117].mxu1 }
0x10c7   :  { %v5741_v15 = vadd.f32 %v5740_v63, %v5739_v19  ;;  %v5742_v0 = vpop.f32.mrb[118].mxu1  ;;  %v6180_v19 = vld [vmem:[%s7865_s10 + $0x180] sm:$0xff]  }
0x10c8   :  { %v5743_v46 = vpop.f32.mrb[119].mxu1 }
0x10c9   :  { %v5744_v57 = vadd.f32 %v5743_v46, %v5742_v0  ;;  %v3601_v21 = vadd.f32 %v5741_v15, %v5323_v45  ;;  %v6181_v15 = vld [vmem:[%s7865_s10 + $0x1c8] sm:$0xff]  }
0x10cb   :  { %v3604_v55 = vadd.f32 %v5744_v57, %v5323_v45 }
0x10cd   :  { %v3788_v54 = vpack.c.bf16 %v3604_v55, %v3601_v21  ;;  %v6182_v21 = vld [vmem:[%s7865_s10 + $0x188] sm:$0xff]  }
0x10cf   :  { %5391 = vmatmul.mubr.msk.bf16.vlgmr.msra.gmra.mrb[120].mxu1 %vm175_vm0, %v3788_v54 }
0x10d0   :  { %3909 = vmatpush1.bf16.msra.mxu1 %v6173_v8  ;;  %3940 = vmatprep.mubr.bf16.mxu1 %v7878_v2  ;;  %v6183_v8 = vld [vmem:[%s7865_s10 + $0x1d0] sm:$0xff]  }
0x10d1   :  { %3910 = vmatprep.subr.bf16.mxu1 %v6178_v34  ;;  %v6292_v34 = vld [vmem:[%s7858_s3] sm:$0xff]  }
0x10d4   :  { %3911 = vmatpush1.bf16.msra.mxu1 %v6176_v35  ;;  %v6186_v35 = vld [vmem:[%s7865_s10 + $0x198] sm:$0xff]  }
0x10d7   :  { %5392 = vmatmul.mubr.msk.bf16.vlgmr.msra.gmra.mrb[124].mxu1 %vm175_vm0, %v3788_v54  ;;  %v6185_v54 = vld [vmem:[%s7865_s10 + $0x1d8] sm:$0xff]  }
0x10d8   :  { %4060 = vmatprep.mubr.bf16.mxu1 %v7878_v2 }
0x10e4   :  { %v7588_v48 = vpop.f32.mrb[120].mxu0 }
0x10e5   :  { %v4020_v60 = vpack.c.bf16 %v7588_v48, %v7588_v48  ;;  %v7592_v51 = vpop.f32.mrb[121].mxu0 }
0x10e6   :  { %v4021_v56 = vpack.c.bf16 %v7592_v51, %v7592_v51  ;;  %v4017_v36 = vpop.f32.mrb[122].mxu0 }
0x10e7   :  { %v4018_v10 = vpop.f32.mrb[123].mxu0  ;;  %v4023_v28 = vsel %vm358_vm1, %v4020_v60, 0  ;;  %v6187_v60 = vld [vmem:[%s7865_s10 + $0x1e0] sm:$0xff]   ;;  %v6294_v36 = vld [vmem:[%s7858_s3 + $0x10] ss:$0 sps:$4 sm:$0xff]  }
0x10e8   :  { %5402 = vmatprep.subr.msk.bf16.mxu1 %vm358_vm1, %v4021_v56  ;;  %v6188_v56 = vld [vmem:[%s7865_s10 + $0x1a0] sm:$0xff]   ;;  %v6189_v10 = vld [vmem:[%s7865_s10 + $0x1e8] sm:$0xff]  }
0x10e9   :  { %4029 = vmatpush1.bf16.msra.mxu1 %v4023_v28  ;;  %v6191_v28 = vld [vmem:[%s7865_s10 + $0x1f0] sm:$0xff]  }
0x10ec   :  { %5403 = vmatmul.mubr.msk.bf16.vlgmr.msra.gmra.mrb[128].mxu1 %vm348_vm2, %v7213_v3  ;;  %v3809_v3 = vrot.slane %v5382_v52, %v6506_v25  ;;  %v6192_v52 = vld [vmem:[%s7865_s10 + $0x1b0] sm:$0xff]  }
0x10ed   :  { %4070 = vmatprep.mubr.bf16.mxu1 %v7878_v2 }
0x10f4   :  { %5404 = vmatmul.mubr.msk.bf16.gmra.mrb[132].mxu1 %vm348_vm2, %v7221_v6 }
0x10f5   :  { %4080 = vmatprep.mubr.bf16.mxu1 %v7878_v2 }
0x10fc   :  { %5405 = vmatmul.mubr.msk.bf16.gmra.mrb[136].mxu1 %vm348_vm2, %v7229_v7 }
0x10fd   :  { %4186 = vmatprep.mubr.bf16.mxu1 %v7878_v2 }
0x11a2   :  { %v3899_v13 = vpop.f32.mrb[120].mxu1 }
0x11a3   :  { %v3901_v33 = vpop.f32.mrb[121].mxu1  ;;  %v3900_v20 = vadd.f32 %v3899_v13, %v3805_v12  ;;  %v6194_v13 = vld [vmem:[%s7865_s10 + $0x1b8] sm:$0xff]  }
0x11a4   :  { %v3903_v29 = vpop.f32.mrb[122].mxu1  ;;  %v3902_v59 = vadd.f32 %v3901_v33, %v3809_v3 }
0x11a5   :  { %v3904_v6 = vadd.f32 %v3903_v29, %v3805_v12  ;;  %v3905_v14 = vpop.f32.mrb[123].mxu1  ;;  %v6193_v12 = vld [vmem:[%s7865_s10 + $0x1f8] sm:$0xff]  }
0x11a6   :  { %v3906_v11 = vadd.f32 %v3905_v14, %v3809_v3 }
0x11a7   :  { %v4089_v16 = vpack.c.bf16 %v3904_v6, %v3900_v20 }
0x11a8   :  { %v4090_v7 = vpack.c.bf16 %v3906_v11, %v3902_v59 }
0x11aa   :  { %v3942_v44 = vpop.f32.mrb[124].mxu1  ;;  %4091 = vmatprep.subr.bf16.mxu0 %v4090_v7 }
0x11ab   :  { %v3944_v25 = vpop.f32.mrb[125].mxu1  ;;  %4092 = vmatpush1.bf16.msra.mxu0 %v4089_v16  ;;  %v3943_v0 = vadd.f32 %v3942_v44, %v3813_v22 }
0x11ac   :  { %v3946_v63 = vpop.f32.mrb[126].mxu1  ;;  %5767 = vmatprep.subr.bf16.mxu0 %v6179_v18  ;;  %v3945_v39 = vadd.f32 %v3944_v25, %v3817_v23 }
0x11ad   :  { %v3947_v45 = vadd.f32 %v3946_v63, %v3813_v22  ;;  %v3948_v46 = vpop.f32.mrb[127].mxu1 }
0x11ae   :  { %v3949_v57 = vadd.f32 %v3948_v46, %v3817_v23  ;;  %5406 = vmatmul.mubr.msk.bf16.vlgmr.msra.gmra.mrb[124].mxu0 %vm441_vm3, %v7253_v5  ;;  %v6184_v5 = vld [vmem:[%s7865_s10 + $0x190] sm:$0xff]  }
0x11af   :  { %v4152_v42 = vpack.c.bf16 %v3947_v45, %v3943_v0  ;;  %4133 = vmatprep.mubr.bf16.mxu0 %v7878_v2  ;;  %5768 = vmatpush3.bf16.msra.mxu0 %v6180_v19 }
0x11b0   :  { %v4153_v55 = vpack.c.bf16 %v3949_v57, %v3945_v39  ;;  %5769 = vmatprep.subr.bf16.mxu0 %v6181_v15 }
0x11b2   :  { %4154 = vmatprep.subr.bf16.mxu1 %v4153_v55 }
0x11b3   :  { %4155 = vmatpush1.bf16.msra.mxu1 %v4152_v42  ;;  %5770 = vmatpush3.bf16.msra.mxu0 %v6182_v21 }
0x11b4   :  { %5771 = vmatprep.subr.bf16.mxu0 %v6183_v8  ;;  %5879 = vmatprep.subr.bf16.mxu1 %v7877_v47 }
0x11b6   :  { %5409 = vmatmul.mubr.msk.bf16.vlgmr.msra.gmra.mrb[128].mxu1 %vm441_vm3, %v6292_v34  ;;  %5407 = vmatmul.mubr.msk.bf16.gmra.mrb[128].mxu0 %vm441_vm3, %v7276_v50  ;;  %v6293_v50 = vld [vmem:[%s7858_s3 + $0x8] sm:$0xff]  }
0x11b7   :  { %4196 = vmatprep.mubr.bf16.mxu1 %v7878_v2  ;;  %4143 = vmatprep.mubr.bf16.mxu0 %v7878_v2 }
0x11b8   :  { %5772 = vmatpush3.bf16.msra.mxu0 %v6184_v5 }
0x11b9   :  { %5773 = vmatprep.subr.bf16.mxu0 %v6185_v54 }
0x11bc   :  { %5774 = vmatpush3.bf16.msra.mxu0 %v6186_v35 }
0x11bd   :  { %5775 = vmatprep.subr.bf16.mxu0 %v6187_v60 }
0x11be   :  { %5410 = vmatmul.mubr.msk.bf16.gmra.mrb[132].mxu1 %vm441_vm3, %v6293_v50  ;;  %5408 = vmatmul.mubr.msk.bf16.gmra.mrb[132].mxu0 %vm441_vm3, %v7293_v37  ;;  %v6190_v37 = vld [vmem:[%s7865_s10 + $0x1a8] sm:$0xff]  }
0x11bf   :  { %4206 = vmatprep.mubr.bf16.mxu1 %v7878_v2 }
0x11c0   :  { %5776 = vmatpush3.bf16.msra.mxu0 %v6188_v56 }
0x11c1   :  { %5777 = vmatprep.subr.bf16.mxu0 %v6189_v10 }
0x11c4   :  { %5778 = vmatpush3.bf16.msra.mxu0 %v6190_v37 }
0x11c5   :  { %5779 = vmatprep.subr.bf16.mxu0 %v6191_v28 }
0x11c6   :  { %5411 = vmatmul.mubr.msk.bf16.gmra.mrb[136].mxu1 %vm441_vm3, %v6294_v36 }
0x11c7   :  { %5885 = vmatprep.mubr.msk.bf16.mxu1 %vm6345_vm14, %v7877_v47 }
0x11c8   :  { %5780 = vmatpush3.bf16.msra.mxu0 %v6192_v52 }
0x11c9   :  { %5781 = vmatprep.subr.bf16.mxu0 %v6193_v12 }
0x11cc   :  { %5782 = vmatpush3.bf16.msra.mxu0 %v6194_v13 }
0x1281   :  { %v7687_v3 = vpop.f32.mrb[124].mxu0 }
0x1282   :  { %v7689_v33 = vpop.f32.mrb[125].mxu0 }
0x1283   :  { %v7691_v29 = vpop.f32.mrb[126].mxu0 }
0x1284   :  { %v7693_v20 = vpop.f32.mrb[127].mxu0 }
0x1289   :  { %v4188_v6 = vpop.f32.mrb[128].mxu1  ;;  %v7695_v14 = vpop.f32.mrb[128].mxu0 }
0x128a   :  { %v4215_v59 = vadd.f32 %v4188_v6, %v7687_v3  ;;  %v4190_v11 = vpop.f32.mrb[129].mxu1  ;;  %v7698_v16 = vpop.f32.mrb[129].mxu0 }
0x128b   :  { %v4216_v7 = vadd.f32 %v4190_v11, %v7689_v33  ;;  %v4192_v18 = vpop.f32.mrb[130].mxu1  ;;  %v7701_v22 = vpop.f32.mrb[130].mxu0 }
0x128c   :  { %v4245_v44 = vmul.f32 0.2, %v4215_v59  ;;  %v4217_v23 = vadd.f32 %v4192_v18, %v7691_v29  ;;  %v4194_v25 = vpop.f32.mrb[131].mxu1  ;;  %v7704_v19 = vpop.f32.mrb[131].mxu0  ;;  %vm4235_vm3 = vcmp.ge.f32.partialorder %v4215_v59, 0.0 }
0x128d   :  { %v4246_v63 = vmul.f32 0.2, %v4216_v7  ;;  %v4218_v15 = vadd.f32 %v4194_v25, %v7693_v20  ;;  %vm4236_vm14 = vcmp.ge.f32.partialorder %v4216_v7, 0.0 }
0x128e   :  { %vm4237_vm4 = vcmp.ge.f32.partialorder %v4217_v23, 0.0  ;;  %v4247_v0 = vmul.f32 0.2, %v4217_v23  ;;  %v4255_v46 = vsel %vm4235_vm3, %v4215_v59, %v4245_v44 }
0x128f   :  { %vm4238_vm5 = vcmp.ge.f32.partialorder %v4218_v15, 0.0  ;;  %v4248_v45 = vmul.f32 0.2, %v4218_v15  ;;  %v4256_v21 = vsel %vm4236_vm14, %v4216_v7, %v4246_v63 }
0x1290   :  { %v4257_v39 = vsel %vm4237_vm4, %v4217_v23, %v4247_v0 }
0x1291   :  { %v4265_v57 = vpack.c.bf16 %v4257_v39, %v4255_v46  ;;  %v4198_v42 = vpop.f32.mrb[132].mxu1  ;;  %v4258_v55 = vsel %vm4238_vm5, %v4218_v15, %v4248_v45  ;;  %v7707_v8 = vpop.f32.mrb[132].mxu0 }
0x1292   :  { %v4219_v5 = vadd.f32 %v4198_v42, %v7695_v14  ;;  %v4200_v54 = vpop.f32.mrb[133].mxu1  ;;  %v4266_v34 = vpack.c.bf16 %v4258_v55, %v4256_v21  ;;  %v7710_v35 = vpop.f32.mrb[133].mxu0 }
0x1293   :  { %v4220_v60 = vadd.f32 %v4200_v54, %v7698_v16  ;;  %v4202_v56 = vpop.f32.mrb[134].mxu1  ;;  %v4149_v50 = vpop.f32.mrb[134].mxu0 }
0x1294   :  { %v4249_v36 = vmul.f32 0.2, %v4219_v5  ;;  %v4221_v10 = vadd.f32 %v4202_v56, %v7701_v22  ;;  %v4204_v37 = vpop.f32.mrb[135].mxu1  ;;  %4432 = vmatprep.mubr.bf16.mxu0 %v4266_v34  ;;  %v4150_v28 = vpop.f32.mrb[135].mxu0  ;;  %vm4239_vm6 = vcmp.ge.f32.partialorder %v4219_v5, 0.0 }
0x1295   :  { %v4250_v52 = vmul.f32 0.2, %v4220_v60  ;;  %v4222_v12 = vadd.f32 %v4204_v37, %v7704_v19  ;;  %4433 = vmatmul.mubr.bf16.vlgmr.msra.gmra.mrb[136].mxu0 %v4265_v57  ;;  %vm4240_vm7 = vcmp.ge.f32.partialorder %v4220_v60, 0.0 }
0x1296   :  { %vm4241_vm8 = vcmp.ge.f32.partialorder %v4221_v10, 0.0  ;;  %v4251_v13 = vmul.f32 0.2, %v4221_v10  ;;  %v4259_v59 = vsel %vm4239_vm6, %v4219_v5, %v4249_v36 }
0x1297   :  { %vm4242_vm9 = vcmp.ge.f32.partialorder %v4222_v12, 0.0  ;;  %v4252_v6 = vmul.f32 0.2, %v4222_v12  ;;  %v4260_v18 = vsel %vm4240_vm7, %v4220_v60, %v4250_v52 }
0x1298   :  { %v4261_v11 = vsel %vm4241_vm8, %v4221_v10, %v4251_v13 }
0x1299   :  { %v4208_v7 = vpop.f32.mrb[136].mxu1  ;;  %v4262_v44 = vsel %vm4242_vm9, %v4222_v12, %v4252_v6  ;;  %v4267_v23 = vpack.c.bf16 %v4261_v11, %v4259_v59 }
0x129a   :  { %v4223_v25 = vadd.f32 %v4208_v7, %v7707_v8  ;;  %v4210_v63 = vpop.f32.mrb[137].mxu1  ;;  %v4268_v15 = vpack.c.bf16 %v4262_v44, %v4260_v18 }
0x129b   :  { %v4224_v0 = vadd.f32 %v4210_v63, %v7710_v35  ;;  %v4212_v45 = vpop.f32.mrb[138].mxu1 }
0x129c   :  { %v4253_v46 = vmul.f32 0.2, %v4223_v25  ;;  %v4213_v39 = vpop.f32.mrb[139].mxu1  ;;  %4440 = vmatprep.mubr.bf16.mxu0 %v4268_v15  ;;  %vm4243_vm10 = vcmp.ge.f32.partialorder %v4223_v25, 0.0 }
0x129d   :  { %vm4244_vm11 = vcmp.ge.f32.partialorder %v4224_v0, 0.0  ;;  %v4254_v57 = vmul.f32 0.2, %v4224_v0  ;;  %4441 = vmatmul.mubr.bf16.gmra.mrb[140].mxu0 %v4267_v23 }
0x129e   :  { %v4263_v55 = vsel %vm4243_vm10, %v4223_v25, %v4253_v46 }
0x129f   :  { %v4264_v42 = vsel %vm4244_vm11, %v4224_v0, %v4254_v57  ;;  %v4269_v5 = vpack.c.bf16 %v4263_v55, %v4263_v55 }
0x12a0   :  { %v4270_v21 = vpack.c.bf16 %v4264_v42, %v4264_v42 }
0x12a2   :  { %4448 = vmatprep.mubr.bf16.mxu0 %v4270_v21 }
0x12a5   :  { %4449 = vmatmul.mubr.bf16.gmra.mrb[144].mxu0 %v4269_v5 }
0x12a6   :  { %4658 = vmatprep.mubr.bf16.mxu0 %v7878_v2 }
0x1368   :  { %v5783_v54 = vpop.f32.mrb[136].mxu0 }
0x1369   :  { %v5784_v34 = vpop.f32.mrb[137].mxu0 }
0x136a   :  { %v5785_v60 = vadd.f32 %v5784_v34, %v5783_v54  ;;  %v5786_v56 = vpop.f32.mrb[138].mxu0 }
0x136b   :  { %v5787_v50 = vpop.f32.mrb[139].mxu0 }
0x136c   :  { %v5788_v36 = vadd.f32 %v5787_v50, %v5786_v56  ;;  %v4456_v63 = vsel %vm348_vm2, %v5785_v60, -inf }
0x136e   :  { %v4457_v45 = vsel %vm348_vm2, %v5788_v36, -inf }
0x1370   :  { %v5789_v10 = vpop.f32.mrb[140].mxu0 }
0x1371   :  { %v5790_v37 = vpop.f32.mrb[141].mxu0 }
0x1372   :  { %v5791_v28 = vadd.f32 %v5790_v37, %v5789_v10  ;;  %v5792_v52 = vpop.f32.mrb[142].mxu0 }
0x1373   :  { %v5793_v12 = vpop.f32.mrb[143].mxu0 }
0x1374   :  { %v5794_v13 = vadd.f32 %v5793_v12, %v5792_v52  ;;  %v4458_v6 = vsel %vm348_vm2, %v5791_v28, -inf }
0x1376   :  { %v4459_v59 = vsel %vm348_vm2, %v5794_v13, -inf }
0x1377   :  { %v4463_v11 = vmax.f32 %v4458_v6, %v4459_v59 }
0x1378   :  { %v5795_v7 = vpop.f32.mrb[144].mxu0 }
0x1379   :  { %v5796_v18 = vpop.f32.mrb[145].mxu0 }
0x137a   :  { %v5797_v44 = vadd.f32 %v5796_v18, %v5795_v7  ;;  %v5798_v23 = vpop.f32.mrb[146].mxu0 }
0x137b   :  { %v5799_v25 = vpop.f32.mrb[147].mxu0 }
0x137c   :  { %v4460_v15 = vsel %vm348_vm2, %v5797_v44, -inf }
0x137d   :  { %v4461_v0 = vmax.f32 %v4456_v63, %v4460_v15 }
0x137f   :  { %v4462_v46 = vmax.f32 %v4461_v0, %v4457_v45 }
0x1381   :  { %v4464_v39 = vmax.f32 %v4462_v46, %v4463_v11 }
0x1383   :  { %v4465_v57 = vrot.slane %v4464_v39, 4 }
0x1385   :  { %v4466_v42 = vmax.f32 %v4464_v39, %v4465_v57 }
0x1387   :  { %v4467_v21 = vrot.slane %v4466_v42, 2 }
0x1389   :  { %v4468_v55 = vmax.f32 %v4466_v42, %v4467_v21 }
0x138b   :  { %v4469_v5 = vrot.slane %v4468_v55, 1 }
0x138d   :  { %v4470_v54 = vmax.f32 %v4468_v55, %v4469_v5 }
0x138f   :  { %v4475_v34 = vsub.f32 %v5797_v44, %v4470_v54  ;;  %v4471_v56 = vsub.f32 %v5785_v60, %v4470_v54  ;;  %v4472_v50 = vsub.f32 %v5788_v36, %v4470_v54  ;;  %v4473_v10 = vsub.f32 %v5791_v28, %v4470_v54 }
0x1390   :  { %v4474_v37 = vsub.f32 %v5794_v13, %v4470_v54 }
0x1391   :  { %v4476_v52 = vmul.f32 1.442695, %v4471_v56  ;;  %v4478_v12 = vmul.f32 1.442695, %v4472_v50  ;;  %v4480_v6 = vmul.f32 1.442695, %v4473_v10 }
0x1392   :  { %v4482_v59 = vmul.f32 1.442695, %v4474_v37  ;;  %v4484_v7 = vmul.f32 1.442695, %v4475_v34  ;;  %v6202_v10 = vld [vmem:[%s7867_s12 + $0x198] sm:$0xff]   ;;  %v6203_v37 = vld [vmem:[%s7867_s12 + $0x1e0] sm:$0xff]  }
0x1393   :  { %6253 = vpow2.f32 %v4476_v52  ;;  %v6204_v52 = vld [vmem:[%s7867_s12 + $0x1a0] sm:$0xff]  }
0x1394   :  { %6255 = vpow2.f32 %v4478_v12  ;;  %v6205_v12 = vld [vmem:[%s7867_s12 + $0x1e8] sm:$0xff]  }
0x1395   :  { %6257 = vpow2.f32 %v4480_v6  ;;  %v6206_v6 = vld [vmem:[%s7867_s12 + $0x1a8] sm:$0xff]  }
0x1396   :  { %6259 = vpow2.f32 %v4482_v59  ;;  %v6207_v59 = vld [vmem:[%s7867_s12 + $0x1f0] sm:$0xff]  }
0x1397   :  { %6261 = vpow2.f32 %v4484_v7  ;;  %v6208_v7 = vld [vmem:[%s7867_s12 + $0x1b0] sm:$0xff]  }
0x139d   :  { %v6254_v11 = vpop.eup %6253 }
0x139e   :  { %v6256_v18 = vpop.eup %6255 }
0x139f   :  { %v6258_v23 = vpop.eup %6257  ;;  %v4486_v25 = vpack.c.bf16 %v6256_v18, %v6254_v11  ;;  %v6209_v11 = vld [vmem:[%s7867_s12 + $0x1f8] sm:$0xff]  }
0x13a0   :  { %v6260_v63 = vpop.eup %6259  ;;  %v6210_v18 = vld [vmem:[%s7867_s12 + $0x1b8] sm:$0xff]  }
0x13a1   :  { %v6262_v44 = vpop.eup %6261  ;;  %5880 = vmatpush3.bf16.msra.mxu1 %v4486_v25  ;;  %v4487_v60 = vpack.c.bf16 %v6260_v63, %v6258_v23  ;;  %v4771_v23 = vmax.f32 %v7588_v48, 0.0 }
0x13a2   :  { %5881 = vmatprep.subr.bf16.mxu1 %v7877_v47  ;;  %v4488_v36 = vpack.c.bf16 %v6262_v44, %v6262_v44 }
0x13a4   :  { %v4490_v28 = vsel %vm358_vm1, %v4488_v36, 0 }
0x13a5   :  { %5882 = vmatpush3.bf16.msra.mxu1 %v4487_v60 }
0x13a6   :  { %5883 = vmatprep.subr.bf16.mxu1 %v7877_v47 }
0x13a9   :  { %5884 = vmatpush3.bf16.msra.mxu1 %v4490_v28 }
0x13aa   :  { %5461 = vmatprep.subr.msk.bf16.mxu1 %vm358_vm1, %v6673_v58 }
0x13ac   :  { %5886 = vmatmul.mubr.msk.bf16.vlgmr.msra.gmra.mrb[140].mxu1 %vm889_vm15, %v6676_v61 }
0x13ad   :  { %4544 = vmatpush1.bf16.msra.mxu1 %v6681_v62  ;;  %4575 = vmatprep.mubr.bf16.mxu1 %v7878_v2 }
0x13ae   :  { %5805 = vmatprep.subr.bf16.mxu1 %v7371_v43 }
0x13b4   :  { %5462 = vmatmul.mubr.msk.bf16.vlgmr.msra.gmra.mrb[144].mxu1 %vm348_vm2, %v4486_v25  ;;  %v4773_v25 = vpack.c.bf16 %v4771_v23, %v4771_v23 }
0x13b5   :  { %4585 = vmatprep.mubr.bf16.mxu1 %v7878_v2  ;;  %5806 = vmatpush3.bf16.msra.mxu1 %v7379_v30 }
0x13b6   :  { %5807 = vmatprep.subr.bf16.mxu1 %v7385_v32 }
0x13b9   :  { %5808 = vmatpush3.bf16.msra.mxu1 %v7391_v4 }
0x13ba   :  { %5809 = vmatprep.subr.bf16.mxu1 %v7397_v38 }
0x13bc   :  { %5463 = vmatmul.mubr.msk.bf16.gmra.mrb[148].mxu1 %vm348_vm2, %v4487_v60 }
0x13bd   :  { %4595 = vmatprep.mubr.bf16.mxu1 %v7878_v2  ;;  %5810 = vmatpush3.bf16.msra.mxu1 %v7405_v27 }
0x13be   :  { %5811 = vmatprep.subr.bf16.mxu1 %v7411_v40 }
0x13c1   :  { %5812 = vmatpush3.bf16.msra.mxu1 %v7417_v17 }
0x13c2   :  { %5813 = vmatprep.subr.bf16.mxu1 %v7423_v41 }
0x13c4   :  { %5464 = vmatmul.mubr.msk.bf16.gmra.mrb[152].mxu1 %vm348_vm2, %v4488_v36 }
0x13c5   :  { %5814 = vmatpush3.bf16.msra.mxu1 %v7430_v31 }
0x13c6   :  { %5815 = vmatprep.subr.bf16.mxu1 %v7436_v1 }
0x13c9   :  { %5816 = vmatpush3.bf16.msra.mxu1 %v7442_v24 }
0x13ca   :  { %5817 = vmatprep.subr.bf16.mxu1 %v7448_v9 }
0x13cd   :  { %5818 = vmatpush3.bf16.msra.mxu1 %v7454_v49 }
0x13ce   :  { %5819 = vmatprep.subr.bf16.mxu1 %v7460_v26 }
0x13d1   :  { %5820 = vmatpush3.bf16.msra.mxu1 %v7466_v53 }
0x147f   :  { %v4526_v47 = vpop.f32.mrb[140].mxu1 }
0x1480   :  { %v4527_v43 = vadd.f32 1e-16, %v4526_v47  ;;  %v5887_v30 = vpop.f32.mrb[141].mxu1 }
0x1481   :  { %v4529_v32 = vpop.f32.mrb[142].mxu1 }
0x1482   :  { %v4530_v4 = vadd.f32 1e-16, %v4529_v32  ;;  %v5888_v38 = vpop.f32.mrb[143].mxu1  ;;  %6263 = vrcp.f32 %v4527_v43 }
0x1484   :  { %6265 = vrcp.f32 %v4530_v4 }
0x1487   :  { %v4577_v27 = vpop.f32.mrb[144].mxu1 }
0x1488   :  { %v4604_v40 = vmul.f32 %v4577_v27, %v7687_v3  ;;  %v4579_v17 = vpop.f32.mrb[145].mxu1 }
0x1489   :  { %v4605_v41 = vmul.f32 %v4579_v17, %v7689_v33  ;;  %v4581_v31 = vpop.f32.mrb[146].mxu1 }
0x148a   :  { %v4606_v1 = vmul.f32 %v4581_v31, %v7691_v29  ;;  %v4583_v24 = vpop.f32.mrb[147].mxu1 }
0x148b   :  { %v4607_v9 = vmul.f32 %v4583_v24, %v7693_v20 }
0x148c   :  { %v4614_v49 = vpack.c.bf16 %v4606_v1, %v4604_v40  ;;  %v6264_v26 = vpop.eup %6263 }
0x148d   :  { %v4615_v53 = vpack.c.bf16 %v4607_v9, %v4605_v41  ;;  %v5504_v41 = vld [vmem:[%s7868_s13 + $0x3] ss:$0 sm:$0xff] }
0x148e   :  { %v6266_v13 = vpop.eup %6265 }
0x148f   :  { %v4587_v15 = vpop.f32.mrb[148].mxu1  ;;  %4626 = vmatprep.subr.bf16.mxu0 %v4615_v53  ;;  %v4669_v0 = vpack.c.bf16 %v6266_v13, %v6264_v26 }
0x1490   :  { %v4608_v45 = vmul.f32 %v4587_v15, %v7695_v14  ;;  %v4589_v46 = vpop.f32.mrb[149].mxu1  ;;  %4627 = vmatpush1.bf16.msra.mxu0 %v4614_v49 }
0x1491   :  { %v4609_v3 = vmul.f32 %v4589_v46, %v7698_v16  ;;  %v4591_v33 = vpop.f32.mrb[150].mxu1 }
0x1492   :  { %v4610_v39 = vmul.f32 %v4591_v33, %v7701_v22  ;;  %v4593_v29 = vpop.f32.mrb[151].mxu1  ;;  %v6195_v22 = vld [vmem:[%s7867_s12 + $0x1c0] sm:$0xff]  }
0x1493   :  { %v4611_v57 = vmul.f32 %v4593_v29, %v7704_v19  ;;  %v4772_v19 = vmax.f32 %v7592_v51, 0.0  ;;  %v6201_v51 = vld [vmem:[%s7867_s12 + $0x1d8] sm:$0xff]  }
0x1494   :  { %v4616_v20 = vpack.c.bf16 %v4610_v39, %v4608_v45 }
0x1495   :  { %v4617_v42 = vpack.c.bf16 %v4611_v57, %v4609_v3 }
0x1497   :  { %v4597_v21 = vpop.f32.mrb[152].mxu1  ;;  %4628 = vmatprep.subr.bf16.mxu0 %v4617_v42 }
0x1498   :  { %v4612_v55 = vmul.f32 %v4597_v21, %v7707_v8  ;;  %v4599_v5 = vpop.f32.mrb[153].mxu1  ;;  %4629 = vmatpush1.bf16.msra.mxu0 %v4616_v20  ;;  %v6196_v8 = vld [vmem:[%s7867_s12 + $0x180] sm:$0xff]  }
0x1499   :  { %v4613_v14 = vmul.f32 %v4599_v5, %v7710_v35  ;;  %v4601_v54 = vpop.f32.mrb[154].mxu1  ;;  %v4774_v35 = vpack.c.bf16 %v4772_v19, %v4772_v19 }
0x149a   :  { %v4618_v34 = vpack.c.bf16 %v4612_v55, %v4612_v55  ;;  %v4602_v56 = vpop.f32.mrb[155].mxu1 }
0x149b   :  { %v4619_v16 = vpack.c.bf16 %v4613_v14, %v4613_v14 }
0x149c   :  { %v4621_v50 = vsel %vm358_vm1, %v4618_v34, 0 }
0x149d   :  { %5465 = vmatprep.subr.msk.bf16.mxu0 %vm358_vm1, %v4619_v16 }
0x149e   :  { %4631 = vmatpush1.bf16.msra.mxu0 %v4621_v50 }
0x149f   :  { %5467 = vmatprep.subr.msk.bf16.mxu0 %vm358_vm1, %v6673_v58  ;;  %v6197_v58 = vld [vmem:[%s7867_s12 + $0x1c8] sm:$0xff]  }
0x14a1   :  { %5466 = vmatmul.mubr.msk.bf16.vlgmr.msra.gmra.mrb[148].mxu0 %vm889_vm15, %v6676_v61  ;;  %v6198_v61 = vld [vmem:[%s7867_s12 + $0x188] sm:$0xff]  }
0x14a2   :  { %4674 = vmatpush1.bf16.msra.mxu0 %v6681_v62  ;;  %4705 = vmatprep.mubr.bf16.mxu0 %v7878_v2  ;;  %v6199_v62 = vld [vmem:[%s7867_s12 + $0x1d0] sm:$0xff]  }
0x14a3   :  { %5827 = vmatprep.subr.bf16.mxu0 %v6195_v22  ;;  %v6200_v2 = vld [vmem:[%s7867_s12 + $0x190] sm:$0xff]  }
0x14a9   :  { %5468 = vmatmul.mubr.msk.bf16.vlgmr.msra.gmra.mrb[152].mxu0 %vm348_vm2, %v4669_v0 }
0x14aa   :  { %5828 = vmatpush3.bf16.msra.mxu0 %v6196_v8  ;;  %4944 = vmatprep.mubr.bf16.mxu0 %v4774_v35 }
0x14ab   :  { %5829 = vmatprep.subr.bf16.mxu0 %v6197_v58 }
0x14ae   :  { %5830 = vmatpush3.bf16.msra.mxu0 %v6198_v61 }
0x14af   :  { %5831 = vmatprep.subr.bf16.mxu0 %v6199_v62 }
0x14b2   :  { %5832 = vmatpush3.bf16.msra.mxu0 %v6200_v2 }
0x14b3   :  { %5833 = vmatprep.subr.bf16.mxu0 %v6201_v51 }
0x14b6   :  { %5834 = vmatpush3.bf16.msra.mxu0 %v6202_v10 }
0x14b7   :  { %5835 = vmatprep.subr.bf16.mxu0 %v6203_v37 }
0x14ba   :  { %5836 = vmatpush3.bf16.msra.mxu0 %v6204_v52 }
0x14bb   :  { %5837 = vmatprep.subr.bf16.mxu0 %v6205_v12 }
0x14be   :  { %5838 = vmatpush3.bf16.msra.mxu0 %v6206_v6 }
0x14bf   :  { %5839 = vmatprep.subr.bf16.mxu0 %v6207_v59 }
0x14c2   :  { %5840 = vmatpush3.bf16.msra.mxu0 %v6208_v7 }
0x14c3   :  { %5841 = vmatprep.subr.bf16.mxu0 %v6209_v11 }
0x14c6   :  { %5842 = vmatpush3.bf16.msra.mxu0 %v6210_v18 }
0x14c9   :  { %4945 = vmatmul.mubr.bf16.vlgmr.msra.gmra.mrb[156].mxu0 %v4773_v25 }
0x1574   :  { %v4660_v63 = vpop.f32.mrb[148].mxu0 }
0x1575   :  { %v4662_v44 = vpop.f32.mrb[149].mxu0 }
0x1576   :  { %v4664_v60 = vpop.f32.mrb[150].mxu0 }
0x1577   :  { %v4666_v36 = vpop.f32.mrb[151].mxu0 }
0x157c   :  { %v4707_v28 = vpop.f32.mrb[152].mxu0 }
0x157d   :  { %v4716_v47 = vmul.f32 %v4707_v28, %v4660_v63  ;;  %v4709_v43 = vpop.f32.mrb[153].mxu0 }
0x157e   :  { %v4717_v30 = vmul.f32 %v4709_v43, %v4662_v44  ;;  %v4711_v32 = vpop.f32.mrb[154].mxu0 }
0x157f   :  { %v4718_v4 = vmul.f32 %v4711_v32, %v4664_v60  ;;  %v4713_v38 = vpop.f32.mrb[155].mxu0 }
0x1580   :  { %v4719_v27 = vmul.f32 %v4713_v38, %v4666_v36 }
0x1581   :  { %v4720_v40 = vpack.c.bf16 %v4718_v4, %v4716_v47 }
0x1582   :  { %v4721_v17 = vpack.c.bf16 %v4719_v27, %v4717_v30 }
0x1584   :  { %4762 = vmatprep.mubr.bf16.mxu1 %v4721_v17 }
0x1585   :  { %4763 = vmatmul.mubr.bf16.vlgmr.msra.gmra.mrb[156].mxu1 %v4720_v40 }
0x159c   :  { %v5843_v48 = vpop.f32.mrb[156].mxu0 }
0x159d   :  { %v5844_v31 = vpop.f32.mrb[157].mxu0 }
0x159e   :  { %v5845_v1 = vadd.f32 %v5844_v31, %v5843_v48  ;;  %v5846_v24 = vpop.f32.mrb[158].mxu0 }
0x159f   :  { %v5847_v9 = vpop.f32.mrb[159].mxu0 }
0x15a0   :  { %v4947_v49 = vadd.f32 %v5845_v1, %v5504_v41 }
0x15a2   :  { %4954 = vst.msk [vmem:[#allocation4] sm:$0xff] %vm175_vm0, %v4947_v49 }
0x15a3   :  { %6306 = shalt.err (!%p6303_p4)
}
0x15a4   :  { %s6307_s13 = scalar_lea.hbm %s7870_s15, 128 }
0x15a5   :  { %p6308_p5 = scmp.ne.s32.totalorder %s7870_s15, %s6307_s13  ;;  %p6311_p6 = scmp.lt.u32.totalorder %s6307_s13, %s7870_s15 }
0x15a7   :  { %p6313_p7 = pnand %p6311_p6, %p6308_p5 }
0x15a9   :  { %6316 = shalt.err (!%p6313_p7)
}
0x15aa   :  { %4976 = dma.vmem_to_hbm [thread:$0]  %s4974_s23, 128, %s7870_s15, [#allocation5]   ;;  %v5470_v53 = vld [vmem:[%s7866_s11 + $0x3] ss:$0 sm:$0xff] }
0x15ab   :  { %s6347_s3 = smov [#allocation2]  }
0x15ac   :  { %s4960_s0 = sshll.u32 %s6347_s3, 4  ;;  %s4961_s0 = int_to_ptr.vmem [resolvable:$true] %s4960_s0 }
0x15ad   :  { %s6317_s15 = scalar_lea.vmem %s4961_s0, 256  ;;  %p6322_p9 = scmp.lt.s32.totalorder %s4961_s0, %s4961_s0 }
0x15ae   :  { %p6318_p8 = scmp.ne.s32.totalorder %s4961_s0, %s6317_s15  ;;  %p6323_p10 = scmp.lt.s32.totalorder %s6317_s15, %s6317_s15 }
0x15b0   :  { %p6324_p11 = por %p6323_p10, %p6322_p9 }
0x15b2   :  { %p6325_p12 = pnand %p6324_p11, %p6318_p8 }
0x1658   :  { %v5821_v26 = vpop.f32.mrb[156].mxu1 }
0x1659   :  { %v5822_v13 = vpop.f32.mrb[157].mxu1 }
0x165a   :  { %v5823_v15 = vadd.f32 %v5822_v13, %v5821_v26  ;;  %v5824_v0 = vpop.f32.mrb[158].mxu1 }
0x165b   :  { %v5825_v45 = vpop.f32.mrb[159].mxu1 }
0x165c   :  { %v4765_v46 = vadd.f32 %v5823_v15, %v5470_v53  ;;  %v5826_v3 = vadd.f32 %v5825_v45, %v5824_v0 }
0x165e   :  { %4952 = vst.msk [vmem:[#allocation2] sm:$0xff] %vm175_vm0, %v4765_v46  ;;  %v4768_v33 = vadd.f32 %v5826_v3, %v5470_v53 }
0x1660   :  { %4953 = vst.msk [vmem:[#allocation2 + $0x8] sm:$0xff] %vm175_vm0, %v4768_v33 }
0x1661   :  { %6328 = shalt.err (!%p6325_p12)
}
0x1662   :  { %s6329_s16 = scalar_lea.hbm %s7869_s14, 256 }
0x1663   :  { %p6330_p13 = scmp.ne.s32.totalorder %s7869_s14, %s6329_s16  ;;  %p6333_p0 = scmp.lt.u32.totalorder %s6329_s16, %s7869_s14 }
0x1665   :  { %p6335_p1 = pnand %p6333_p0, %p6330_p13 }
0x1667   :  { %6338 = shalt.err (!%p6335_p1)
}
0x1668   :  { %s6348_s19 = smov 128   ;;  %s6349_s4 = smov 8  }
0x1669   :  { %4966 = dma.vmem_to_hbm [thread:$0]  %s4961_s0, 256, %s7869_s14, [#allocation3], %s6348_s19, %s6348_s19, %s6349_s4  }
0x166a   :  { %6339 = dma.done.wait [#allocation3], 256  }
0x166b   :  { %6340 = vsyncadd [#allocation3], 4294967040 }
0x166c   :  { %6341 = dma.done.wait [#allocation5], 128  }
0x166d   :  { %6342 = vsyncadd [#allocation5], 4294967168 }
0x166e   :  { %4983 = vsyncpa [#allocation3], 1 }
0x166f   :  { %4984 = vsyncpa [#allocation5], 1 }

</bundles_post_ra>
